<compile_context>
chip_gen: v7x
topology: tpu7x:2x2x1
jax: 0.10.0
libtpu: 0.0.40
codegen_flags: <defaults>
</compile_context>

<pallas_src>
import functools

import jax
import jax.numpy as jnp
from jax.experimental import pallas as pl
from jax.experimental.pallas import tpu as pltpu


def _round_up(a, b):
    return (a + b - 1) // b * b


# ----------------------------------------------------------------------------
# Fused kernel: packed gated scores -> online softmax -> pooling -> classifier.
# ----------------------------------------------------------------------------
def _fused_attention_kernel(n_valid, tile_n, d_pad, need_mask, emit_scores,
                            x_ref, wvu_ref, bvu_ref, wa_ref, ba_ref,
                            wc_ref, bc_ref, *out_and_scratch):
    if emit_scores:
        scores_ref, m_out_ref, logits_ref, m_sc, l_sc, acc_sc = out_and_scratch
    else:
        m_out_ref, logits_ref, m_sc, l_sc, acc_sc = out_and_scratch
        scores_ref = None

    i = pl.program_id(0)

    @pl.when(i == 0)
    def _init():
        m_sc[...] = jnp.full_like(m_sc, -jnp.inf)
        l_sc[...] = jnp.zeros_like(l_sc)
        acc_sc[...] = jnp.zeros_like(acc_sc)

    x = x_ref[...]                                        # (tile_n, L), storage dtype

    # ONE packed MXU matmul for both attention branches: x @ [Wv | Wu].
    h = jnp.dot(x, wvu_ref[...], preferred_element_type=jnp.float32)
    h = h + bvu_ref[...].astype(jnp.float32)              # (tile_n, 2*Dp) f32
    v = jnp.tanh(h[:, :d_pad])                            # lane-aligned split
    u = jax.nn.sigmoid(h[:, d_pad:])
    gated = v * u                                         # (tile_n, Dp) f32

    # Raw attention scores as a lane-dense (1, tile_n) row: contract Dp of wa
    # (1, Dp) with Dp of gated (tile_n, Dp).  ba is an SMEM scalar.
    # TODO(synk): if a bundle dump shows Mosaic relayouting the full gated
    #             tile for this contraction, switch to gated @ wa^T and
    #             transpose only the tiny (tile_n, 1) column via XLU.
    s_row = jax.lax.dot_general(
        wa_ref[...], gated,
        dimension_numbers=(((1,), (1,)), ((), ())),
        preferred_element_type=jnp.float32)                # (1, tile_n) f32
    s_row = s_row + ba_ref[0]

    if need_mask:
        # Skipped statically when N is a tile multiple; otherwise cheap
        # (iota + compare + select on tile_n/1024 vregs per step).
        col = i * tile_n + jax.lax.broadcasted_iota(jnp.int32, (1, tile_n), 1)
        s_row = jnp.where(col < n_valid, s_row, -1e30)

    if emit_scores:
        scores_ref[...] = s_row

    # Online softmax + pooling accumulation (flash-style).
    m_prev = m_sc[...]                                     # (1, 1)
    m_new = jnp.maximum(m_prev, jnp.max(s_row, axis=-1, keepdims=True))
    alpha = jnp.exp(m_prev - m_new)
    p = jnp.exp(s_row - m_new)                             # (1, tile_n) f32
    l_sc[...] = alpha * l_sc[...] + jnp.sum(p, axis=-1, keepdims=True)
    acc_sc[...] = alpha * acc_sc[...] + jnp.dot(
        p.astype(x.dtype), x, preferred_element_type=jnp.float32)
    m_sc[...] = m_new

    # Epilogue: normalize the pooled bag feature and apply the bag classifier.
    @pl.when(i == pl.num_programs(0) - 1)
    def _epilogue():
        inv_l = pl.reciprocal(l_sc[...])       # exact; epilogue cost negligible
        m = acc_sc[...] * inv_l                            # (1, L) f32
        m_out_ref[...] = m
        logits_ref[...] = (
            jnp.dot(m, wc_ref[...].astype(jnp.float32),
                    preferred_element_type=jnp.float32)
            + bc_ref[...].astype(jnp.float32))


def _vmem_estimate(tile_n, l, d_pad, c, x_bytes, w_bytes, need_scores):
    """Honest footprint: 2x (double buffering) for every pipelined operand."""
    est = 2 * tile_n * l * x_bytes                 # x tile
    if need_scores:
        est += 2 * tile_n * 4                      # score row output
    est += 2 * l * 2 * d_pad * w_bytes             # packed [Wv|Wu]
    est += 2 * (3 * d_pad) * 4                     # [bv|bu] + wa
    est += 2 * (l * c + c) * 4                     # wc + bc
    est += 2 * (l + c) * 4                         # M / logits outputs
    est += (l + 2) * 4                             # accumulator scratch
    return est


def fused_gated_attention(x, wv, bv, wu, bu, wa, ba, wc, bc, *,
                          tile_n=2048, storage_dtype=jnp.bfloat16,
                          need_scores=True, vmem_budget_bytes=56 << 20):
    """Returns (raw_scores (1,N) or None, M (1,L), logits (1,C)) for one bag."""
    n, l = x.shape
    d = wv.shape[1]
    c = wc.shape[1]
    d_pad = _round_up(d, 128)

    # Pack attention_V / attention_U into one (L, 2*Dp) weight; D is padded to
    # a 128-lane multiple so the in-kernel column split is lane-aligned.
    # Padded V columns are exactly zero (zero weight + zero bias -> tanh(0)=0),
    # so gated padded columns vanish and wa's padded columns are zero.
    pad_d = ((0, 0), (0, d_pad - d))
    w_vu = jnp.concatenate([jnp.pad(wv, pad_d), jnp.pad(wu, pad_d)], axis=1)
    b_vu = jnp.concatenate([jnp.pad(bv, pad_d), jnp.pad(bu, pad_d)], axis=1)
    wa_p = jnp.pad(wa, pad_d).astype(jnp.float32)
    ba = ba.astype(jnp.float32)                    # SMEM scalar, stays f32

    if storage_dtype is not None:
        x = x.astype(storage_dtype)
        w_vu = w_vu.astype(storage_dtype)
    # biases / wa / wc / bc stay f32: score math, softmax and epilogue in f32.

    x_bytes = jnp.dtype(x.dtype).itemsize
    w_bytes = jnp.dtype(w_vu.dtype).itemsize

    # Tile size: 128-aligned, as large as the VMEM budget allows (>= 256).
    if n <= tile_n:
        tile_n_eff = _round_up(max(n, 128), 128)
    else:
        tile_n_eff = _round_up(tile_n, 128)
    while (tile_n_eff > 256 and
           _vmem_estimate(tile_n_eff, l, d_pad, c, x_bytes, w_bytes,
                          need_scores) > vmem_budget_bytes - (8 << 20)):
        tile_n_eff = max(_round_up(tile_n_eff // 2, 128), 256)

    n_pad = _round_up(n, tile_n_eff)
    grid = n_pad // tile_n_eff
    if n_pad != n:
        x = jnp.pad(x, ((0, n_pad - n), (0, 0)))

    vmem_est = _vmem_estimate(tile_n_eff, l, d_pad, c, x_bytes, w_bytes,
                              need_scores)
    compiler_params = pltpu.CompilerParams(
        dimension_semantics=("arbitrary",),        # softmax reduction over N
        vmem_limit_bytes=int(min(vmem_budget_bytes,
                                 max(vmem_est + (4 << 20), 24 << 20))),
    )

    kernel = functools.partial(_fused_attention_kernel, n, tile_n_eff, d_pad,
                               n_pad != n, need_scores)

    out_shape = []
    out_specs = []
    if need_scores:
        out_shape.append(jax.ShapeDtypeStruct((1, n_pad), jnp.float32))
        out_specs.append(pl.BlockSpec((1, tile_n_eff), lambda i: (0, i)))
    out_shape += [jax.ShapeDtypeStruct((1, l), jnp.float32),   # pooled M
                  jax.ShapeDtypeStruct((1, c), jnp.float32)]   # bag logits
    out_specs += [pl.BlockSpec((1, l), lambda i: (0, 0)),
                  pl.BlockSpec((1, c), lambda i: (0, 0))]

    outs = pl.pallas_call(
        kernel,
        out_shape=tuple(out_shape),
        grid_spec=pltpu.PrefetchScalarGridSpec(
            num_scalar_prefetch=0,
            grid=(grid,),
            in_specs=[
                pl.BlockSpec((tile_n_eff, l), lambda i: (i, 0)),     # x tile
                pl.BlockSpec((l, 2 * d_pad), lambda i: (0, 0)),      # [Wv|Wu]
                pl.BlockSpec((1, 2 * d_pad), lambda i: (0, 0)),      # [bv|bu]
                pl.BlockSpec((1, d_pad), lambda i: (0, 0)),          # wa row
                pl.BlockSpec(memory_space=pltpu.MemorySpace.SMEM),   # ba scalar
                pl.BlockSpec((l, c), lambda i: (0, 0)),              # wc
                pl.BlockSpec((1, c), lambda i: (0, 0)),              # bc
            ],
            out_specs=out_specs,
            scratch_shapes=[
                pltpu.VMEM((1, 1), jnp.float32),   # running max
                pltpu.VMEM((1, 1), jnp.float32),   # running softmax denom
                pltpu.VMEM((1, l), jnp.float32),   # running A_unnorm @ x
            ],
        ),
        compiler_params=compiler_params,
    )(x, w_vu, b_vu, wa_p, ba, wc, bc)

    if need_scores:
        scores, m, logits = outs
        return scores[:, :n], m, logits
    m, logits = outs
    return None, m, logits


# ----------------------------------------------------------------------------
# Parameter init (deterministic, PyTorch-Linear-style uniform bounds).
# ----------------------------------------------------------------------------
def init_params(key, L, D, n_classes):
    keys = jax.random.split(key, 5)

    def lin(k, fan_in, fan_out, shape_w=None, shape_b=None):
        kw, kb = jax.random.split(k)
        bound = 1.0 / jnp.sqrt(jnp.float32(fan_in))
        w = jax.random.uniform(kw, shape_w or (fan_in, fan_out), jnp.float32,
                               -bound, bound)
        b = jax.random.uniform(kb, shape_b or (1, fan_out), jnp.float32,
                               -bound, bound)
        return w, b

    params = {}
    params["wv"], params["bv"] = lin(keys[0], L, D)
    params["wu"], params["bu"] = lin(keys[1], L, D)
    # attention_weights Linear(D, 1): stored as a (1, D) row + scalar bias.
    params["wa"], params["ba"] = lin(keys[2], D, 1, shape_w=(1, D), shape_b=(1,))
    params["wc"], params["bc"] = lin(keys[3], L, n_classes)
    # Instance classifiers stacked: (n_classes, L, 2) / (n_classes, 1, 2).
    ik = jax.random.split(keys[4], n_classes)
    ws, bs = zip(*[lin(ik[i], L, 2) for i in range(n_classes)])
    params["inst_w"] = jnp.stack(ws)
    params["inst_b"] = jnp.stack(bs)
    return params


def _cross_entropy(logits, targets):
    lse = jax.nn.logsumexp(logits, axis=-1)
    picked = jnp.take_along_axis(logits, targets[:, None].astype(jnp.int32),
                                 axis=-1)[:, 0]
    return jnp.mean(lse - picked)


# ----------------------------------------------------------------------------
# Full GatedAttention forward (jittable end-to-end).
# ----------------------------------------------------------------------------
@functools.partial(jax.jit, static_argnames=(
    "n_classes", "k_sample", "subtyping", "instance_eval", "tile_n",
    "storage_dtype"))
def gated_attention_forward(params, x, label, *, n_classes=2, k_sample=8,
                            subtyping=False, instance_eval=True, tile_n=2048,
                            storage_dtype=jnp.bfloat16):
    scores, m_pooled, logits = fused_gated_attention(
        x, params["wv"], params["bv"], params["wu"], params["bu"],
        params["wa"], params["ba"], params["wc"], params["bc"],
        tile_n=tile_n, storage_dtype=storage_dtype, need_scores=instance_eval)
    y_prob = jax.nn.softmax(logits, axis=1)

    results = {"logits": logits, "Y_prob": y_prob, "M": m_pooled}
    if instance_eval:
        # Softmax is monotonic: top-k over the raw scores equals top-k over
        # the softmaxed attention A used by the PyTorch reference.
        a_last = scores[0]                                     # (N,)
        _, top_p_ids = jax.lax.top_k(a_last, k_sample)
        _, top_n_ids = jax.lax.top_k(-a_last, k_sample)
        top_p = jnp.take(x, top_p_ids, axis=0)                 # (k, L)
        top_n = jnp.take(x, top_n_ids, axis=0)                 # (k, L)
        all_inst = jnp.concatenate([top_p, top_n], axis=0)     # (2k, L)

        # All instance classifiers in one tiny batched matmul (XLA): a
        # standalone pallas_call here would be pure launch + DMA overhead.
        inst_logits = (jnp.einsum("nl,clk->cnk", all_inst, params["inst_w"])
                       + params["inst_b"])                     # (C, 2k, 2)

        one_hot = jax.nn.one_hot(jnp.asarray(label).reshape(()), n_classes)
        in_targets = jnp.concatenate(
            [jnp.ones((k_sample,), jnp.int32),
             jnp.zeros((k_sample,), jnp.int32)])
        out_targets = jnp.zeros((k_sample,), jnp.int32)

        in_loss = jax.vmap(lambda lg: _cross_entropy(lg, in_targets))(inst_logits)
        out_loss = jax.vmap(
            lambda lg: _cross_entropy(lg[:k_sample], out_targets))(inst_logits)

        if subtyping:
            per_class = jnp.where(one_hot > 0.5, in_loss, out_loss)
            total_inst_loss = jnp.sum(per_class) / n_classes
            # TODO(synk): original returns a flat, variable-length
            # concatenation of per-class preds/targets; returned here stacked
            # with per-class valid counts to keep shapes static / jittable.
            preds = jnp.argmax(inst_logits, axis=-1)                   # (C, 2k)
            pad_out = jnp.concatenate(
                [out_targets, jnp.full((k_sample,), -1, jnp.int32)])
            targets = jnp.where(one_hot[:, None] > 0.5,
                                in_targets[None, :], pad_out[None, :])
            counts = jnp.where(one_hot > 0.5, 2 * k_sample, k_sample)
            results["inst_preds"] = preds
            results["inst_labels"] = targets
            results["inst_valid_counts"] = counts
        else:
            total_inst_loss = jnp.sum(one_hot * in_loss)
            sel_logits = jnp.einsum("c,cnk->nk", one_hot, inst_logits)
            results["inst_preds"] = jnp.argmax(sel_logits, axis=-1)    # (2k,)
            results["inst_labels"] = in_targets
        results["instance_loss"] = total_inst_loss
    return logits, y_prob, results, label


# ----------------------------------------------------------------------------
if __name__ == "__main__":
    # Bag size spans several tiles (with padding) to exercise the online-
    # softmax accumulator path; D is not a lane multiple to exercise the
    # packed-weight padding.
    N, L, D, N_CLASSES, K_SAMPLE, TILE = 2600, 64, 48, 2, 8, 1024

    key = jax.random.PRNGKey(0)
    kx, kp = jax.random.split(key)
    x = jax.random.normal(kx, (N, L), jnp.float32)
    params = init_params(kp, L, D, N_CLASSES)
    label = jnp.array(1, jnp.int32)

    # --- f32 storage: tight check against a pure-JAX reference. ---
    logits, y_prob, results, _ = gated_attention_forward(
        params, x, label, n_classes=N_CLASSES, k_sample=K_SAMPLE,
        tile_n=TILE, storage_dtype=jnp.float32)
    jax.block_until_ready((logits, y_prob, results["instance_loss"]))

    v_ref = jnp.tanh(x @ params["wv"] + params["bv"])
    u_ref = jax.nn.sigmoid(x @ params["wu"] + params["bu"])
    a_raw_ref = (v_ref * u_ref) @ params["wa"].T + params["ba"]   # (N, 1)
    A_ref = jax.nn.softmax(a_raw_ref.T, axis=1)                   # (1, N)
    M_ref = A_ref @ x
    logits_ref = M_ref @ params["wc"] + params["bc"]
    assert jnp.allclose(results["M"], M_ref, atol=1e-3, rtol=1e-3), "M mismatch"
    assert jnp.allclose(logits, logits_ref, atol=1e-3, rtol=1e-3), "logits mismatch"
    assert jnp.allclose(y_prob, jax.nn.softmax(logits_ref, axis=1),
                        atol=1e-3, rtol=1e-3), "Y_prob mismatch"

    # Instance-loss reference (labeled class, non-subtyping path).
    a_vec = A_ref[-1]
    top_p = x[jax.lax.top_k(a_vec, K_SAMPLE)[1]]
    top_n = x[jax.lax.top_k(-a_vec, K_SAMPLE)[1]]
    inst = jnp.concatenate([top_p, top_n], axis=0)
    lg = inst @ params["inst_w"][1] + params["inst_b"][1]
    tg = jnp.concatenate([jnp.ones((K_SAMPLE,), jnp.int32),
                          jnp.zeros((K_SAMPLE,), jnp.int32)])
    loss_ref = jnp.mean(jax.nn.logsumexp(lg, axis=1)
                        - jnp.take_along_axis(lg, tg[:, None], axis=1)[:, 0])
    assert jnp.allclose(results["instance_loss"], loss_ref,
                        atol=1e-3, rtol=1e-3), "instance_loss mismatch"

    # --- bf16 storage (the new default): loose accuracy check vs f32 ref. ---
    lb, pb, rb, _ = gated_attention_forward(
        params, x, label, n_classes=N_CLASSES, k_sample=K_SAMPLE, tile_n=TILE)
    jax.block_until_ready(lb)
    assert bool(jnp.all(jnp.isfinite(lb))), "bf16 logits non-finite"
    assert jnp.allclose(lb, logits_ref, atol=5e-2, rtol=5e-2), "bf16 logits drift"
    assert jnp.allclose(rb["M"], M_ref, atol=5e-2, rtol=5e-2), "bf16 M drift"

    # --- instance_eval=False path: no raw-score slab allocated/written. ---
    l2, p2, r2, _ = gated_attention_forward(
        params, x, label, n_classes=N_CLASSES, k_sample=K_SAMPLE,
        tile_n=TILE, instance_eval=False)
    jax.block_until_ready(l2)
    assert jnp.allclose(l2, lb, atol=1e-5, rtol=1e-5), "no-scores path mismatch"

    print("KERNEL_OK")
</pallas_src>

<mosaic_0001>
module attributes {stable_mosaic.version = 11 : i64} {
  func.func @_fused_attention_kernel(%arg0: i32, %arg1: memref<1024x64xf32, #tpu.memory_space<vmem>>, %arg2: memref<64x256xf32, #tpu.memory_space<vmem>>, %arg3: memref<1x256xf32, #tpu.memory_space<vmem>>, %arg4: memref<1x128xf32, #tpu.memory_space<vmem>>, %arg5: memref<1xf32, #tpu.memory_space<smem>>, %arg6: memref<64x2xf32, #tpu.memory_space<vmem>>, %arg7: memref<1x2xf32, #tpu.memory_space<vmem>>, %arg8: memref<1x1024xf32, #tpu.memory_space<vmem>>, %arg9: memref<1x64xf32, #tpu.memory_space<vmem>>, %arg10: memref<1x2xf32, #tpu.memory_space<vmem>>, %arg11: memref<1x1xf32, #tpu.memory_space<vmem>>, %arg12: memref<1x1xf32, #tpu.memory_space<vmem>>, %arg13: memref<1x64xf32, #tpu.memory_space<vmem>>) attributes {dimension_semantics = [#tpu.dimension_semantics<arbitrary>], iteration_bounds = array<i64: 3>, scalar_prefetch = 0 : i64, scratch_operands = 3 : i64, tpu.core_type = #tpu.core_type<tc>, window_params = [{transform_indices = @transform_0, window_bounds = array<i64: 1024, 64>}, {pipeline_mode = #tpu.pipeline_mode<synchronous>, transform_indices = @transform_1, window_bounds = array<i64: 64, 256>}, {pipeline_mode = #tpu.pipeline_mode<synchronous>, transform_indices = @transform_2, window_bounds = array<i64: 1, 256>}, {pipeline_mode = #tpu.pipeline_mode<synchronous>, transform_indices = @transform_3, window_bounds = array<i64: 1, 128>}, {transform_indices = @transform_4, window_bounds = array<i64: 1>}, {pipeline_mode = #tpu.pipeline_mode<synchronous>, transform_indices = @transform_5, window_bounds = array<i64: 64, 2>}, {pipeline_mode = #tpu.pipeline_mode<synchronous>, transform_indices = @transform_6, window_bounds = array<i64: 1, 2>}, {transform_indices = @transform_7, window_bounds = array<i64: 1, 1024>}, {pipeline_mode = #tpu.pipeline_mode<synchronous>, transform_indices = @transform_8, window_bounds = array<i64: 1, 64>}, {pipeline_mode = #tpu.pipeline_mode<synchronous>, transform_indices = @transform_9, window_bounds = array<i64: 1, 2>}]} {
    %c0_i32 = arith.constant 0 : i32
    %0 = arith.cmpi eq, %arg0, %c0_i32 : i32
    %1 = arith.extui %0 : i1 to i32
    %c0_i32_0 = arith.constant 0 : i32
    %2 = arith.cmpi ne, %1, %c0_i32_0 : i32
    scf.if %2 {
      %cst_30 = arith.constant 0xFF800000 : f32
      %57 = vector.broadcast %cst_30 : f32 to vector<1x1xf32>
      %c0_31 = arith.constant 0 : index
      %c0_32 = arith.constant 0 : index
      %58 = vector.load %arg11[%c0_31, %c0_32] : memref<1x1xf32, #tpu.memory_space<vmem>>, vector<1x1xf32>
      tpu.vector_store %arg11[%c0_31, %c0_32], %57 {strides = array<i32>} : memref<1x1xf32, #tpu.memory_space<vmem>>, vector<1x1xf32>,
      %cst_33 = arith.constant 0.000000e+00 : f32
      %59 = vector.broadcast %cst_33 : f32 to vector<1x1xf32>
      %c0_34 = arith.constant 0 : index
      %c0_35 = arith.constant 0 : index
      %60 = vector.load %arg12[%c0_34, %c0_35] : memref<1x1xf32, #tpu.memory_space<vmem>>, vector<1x1xf32>
      tpu.vector_store %arg12[%c0_34, %c0_35], %59 {strides = array<i32>} : memref<1x1xf32, #tpu.memory_space<vmem>>, vector<1x1xf32>,
      %cst_36 = arith.constant 0.000000e+00 : f32
      %61 = vector.broadcast %cst_36 : f32 to vector<1x64xf32>
      %c0_37 = arith.constant 0 : index
      %c0_38 = arith.constant 0 : index
      %62 = vector.load %arg13[%c0_37, %c0_38] : memref<1x64xf32, #tpu.memory_space<vmem>>, vector<1x64xf32>
      tpu.vector_store %arg13[%c0_37, %c0_38], %61 {strides = array<i32>} : memref<1x64xf32, #tpu.memory_space<vmem>>, vector<1x64xf32>,
    } else {
    }
    %c0 = arith.constant 0 : index
    %c0_1 = arith.constant 0 : index
    %3 = vector.load %arg1[%c0, %c0_1] : memref<1024x64xf32, #tpu.memory_space<vmem>>, vector<1024x64xf32>
    %c0_2 = arith.constant 0 : index
    %c0_3 = arith.constant 0 : index
    %4 = vector.load %arg2[%c0_2, %c0_3] : memref<64x256xf32, #tpu.memory_space<vmem>>, vector<64x256xf32>
    %cst = arith.constant dense<0.000000e+00> : vector<1024x256xf32>
    %5 = tpu.matmul %3, %4, %cst {dimension_numbers = #tpu.dot_dimension_numbers<[1], [0], [0], [1], [0, 0, 1, 1], [], []>} : vector<1024x64xf32>, vector<64x256xf32>, vector<1024x256xf32> -> vector<1024x256xf32>
    %c0_4 = arith.constant 0 : index
    %c0_5 = arith.constant 0 : index
    %6 = vector.load %arg3[%c0_4, %c0_5] : memref<1x256xf32, #tpu.memory_space<vmem>>, vector<1x256xf32>
    %7 = vector.broadcast %6 : vector<1x256xf32> to vector<1024x256xf32>
    %8 = arith.addf %5, %7 : vector<1024x256xf32>
    %9 = vector.extract_strided_slice %8 {offsets = [0, 0], sizes = [1024, 128], strides = [1, 1]} : vector<1024x256xf32> to vector<1024x128xf32>
    %10 = math.tanh %9 : vector<1024x128xf32>
    %11 = vector.extract_strided_slice %8 {offsets = [0, 128], sizes = [1024, 128], strides = [1, 1]} : vector<1024x256xf32> to vector<1024x128xf32>
    %12 = arith.negf %11 : vector<1024x128xf32>
    %13 = math.exp %12 : vector<1024x128xf32>
    %cst_6 = arith.constant 1.000000e+00 : f32
    %14 = vector.broadcast %cst_6 : f32 to vector<1024x128xf32>
    %15 = arith.addf %14, %13 : vector<1024x128xf32>
    %16 = arith.divf %14, %15 : vector<1024x128xf32>
    %17 = arith.mulf %10, %16 : vector<1024x128xf32>
    %c0_7 = arith.constant 0 : index
    %c0_8 = arith.constant 0 : index
    %18 = vector.load %arg4[%c0_7, %c0_8] : memref<1x128xf32, #tpu.memory_space<vmem>>, vector<1x128xf32>
    %cst_9 = arith.constant dense<0.000000e+00> : vector<1x1024xf32>
    %19 = tpu.matmul %18, %17, %cst_9 {dimension_numbers = #tpu.dot_dimension_numbers<[1], [1], [0], [0], [0, 0, 1, 0], [], []>} : vector<1x128xf32>, vector<1024x128xf32>, vector<1x1024xf32> -> vector<1x1024xf32>
    %c0_10 = arith.constant 0 : index
    %20 = memref.load %arg5[%c0_10] : memref<1xf32, #tpu.memory_space<smem>>
    %21 = vector.broadcast %20 : f32 to vector<1x1024xf32>
    %22 = arith.addf %19, %21 : vector<1x1024xf32>
    %c1024_i32 = arith.constant 1024 : i32
    %23 = arith.muli %arg0, %c1024_i32 : i32
    %24 = tpu.iota {dimensions = array<i32: 1>} : vector<1x1024xi32>
    %25 = vector.broadcast %23 : i32 to vector<1x1024xi32>
    %26 = arith.addi %25, %24 : vector<1x1024xi32>
    %c2600_i32 = arith.constant 2600 : i32
    %27 = vector.broadcast %c2600_i32 : i32 to vector<1x1024xi32>
    %28 = arith.cmpi slt, %26, %27 : vector<1x1024xi32>
    %cst_11 = arith.constant -1.000000e+30 : f32
    %29 = vector.broadcast %cst_11 : f32 to vector<1x1024xf32>
    %30 = arith.select %28, %22, %29 : vector<1x1024xi1>, vector<1x1024xf32>
    %c0_12 = arith.constant 0 : index
    %c0_13 = arith.constant 0 : index
    %31 = vector.load %arg8[%c0_12, %c0_13] : memref<1x1024xf32, #tpu.memory_space<vmem>>, vector<1x1024xf32>
    tpu.vector_store %arg8[%c0_12, %c0_13], %30 {strides = array<i32>} : memref<1x1024xf32, #tpu.memory_space<vmem>>, vector<1x1024xf32>,
    %c0_14 = arith.constant 0 : index
    %c0_15 = arith.constant 0 : index
    %32 = vector.load %arg11[%c0_14, %c0_15] : memref<1x1xf32, #tpu.memory_space<vmem>>, vector<1x1xf32>
    %cst_16 = arith.constant dense<0xFF800000> : vector<1xf32>
    %33 = vector.multi_reduction <maximumf>, %30, %cst_16 [1] : vector<1x1024xf32> to vector<1xf32>
    %34 = vector.shape_cast %33 : vector<1xf32> to vector<1x1xf32>
    %35 = arith.maximumf %32, %34 : vector<1x1xf32>
    %36 = arith.subf %32, %35 : vector<1x1xf32>
    %37 = math.exp %36 : vector<1x1xf32>
    %38 = vector.broadcast %35 : vector<1x1xf32> to vector<1x1024xf32>
    %39 = arith.subf %30, %38 : vector<1x1024xf32>
    %40 = math.exp %39 : vector<1x1024xf32>
    %c0_17 = arith.constant 0 : index
    %c0_18 = arith.constant 0 : index
    %41 = vector.load %arg12[%c0_17, %c0_18] : memref<1x1xf32, #tpu.memory_space<vmem>>, vector<1x1xf32>
    %42 = arith.mulf %37, %41 : vector<1x1xf32>
    %cst_19 = arith.constant dense<0.000000e+00> : vector<1xf32>
    %43 = vector.multi_reduction <add>, %40, %cst_19 [1] : vector<1x1024xf32> to vector<1xf32>
    %44 = vector.shape_cast %43 : vector<1xf32> to vector<1x1xf32>
    %45 = arith.addf %42, %44 : vector<1x1xf32>
    %c0_20 = arith.constant 0 : index
    %c0_21 = arith.constant 0 : index
    %46 = vector.load %arg12[%c0_20, %c0_21] : memref<1x1xf32, #tpu.memory_space<vmem>>, vector<1x1xf32>
    tpu.vector_store %arg12[%c0_20, %c0_21], %45 {strides = array<i32>} : memref<1x1xf32, #tpu.memory_space<vmem>>, vector<1x1xf32>,
    %c0_22 = arith.constant 0 : index
    %c0_23 = arith.constant 0 : index
    %47 = vector.load %arg13[%c0_22, %c0_23] : memref<1x64xf32, #tpu.memory_space<vmem>>, vector<1x64xf32>
    %48 = vector.broadcast %37 : vector<1x1xf32> to vector<1x64xf32>
    %49 = arith.mulf %48, %47 : vector<1x64xf32>
    %cst_24 = arith.constant dense<0.000000e+00> : vector<1x64xf32>
    %50 = tpu.matmul %40, %3, %cst_24 {dimension_numbers = #tpu.dot_dimension_numbers<[1], [0], [0], [1], [0, 0, 1, 1], [], []>} : vector<1x1024xf32>, vector<1024x64xf32>, vector<1x64xf32> -> vector<1x64xf32>
    %51 = arith.addf %49, %50 : vector<1x64xf32>
    %c0_25 = arith.constant 0 : index
    %c0_26 = arith.constant 0 : index
    %52 = vector.load %arg13[%c0_25, %c0_26] : memref<1x64xf32, #tpu.memory_space<vmem>>, vector<1x64xf32>
    tpu.vector_store %arg13[%c0_25, %c0_26], %51 {strides = array<i32>} : memref<1x64xf32, #tpu.memory_space<vmem>>, vector<1x64xf32>,
    %c0_27 = arith.constant 0 : index
    %c0_28 = arith.constant 0 : index
    %53 = vector.load %arg11[%c0_27, %c0_28] : memref<1x1xf32, #tpu.memory_space<vmem>>, vector<1x1xf32>
    tpu.vector_store %arg11[%c0_27, %c0_28], %35 {strides = array<i32>} : memref<1x1xf32, #tpu.memory_space<vmem>>, vector<1x1xf32>,
    %c2_i32 = arith.constant 2 : i32
    %54 = arith.cmpi eq, %arg0, %c2_i32 : i32
    %55 = arith.extui %54 : i1 to i32
    %c0_i32_29 = arith.constant 0 : i32
    %56 = arith.cmpi ne, %55, %c0_i32_29 : i32
    scf.if %56 {
      %c0_30 = arith.constant 0 : index
      %c0_31 = arith.constant 0 : index
      %57 = vector.load %arg12[%c0_30, %c0_31] : memref<1x1xf32, #tpu.memory_space<vmem>>, vector<1x1xf32>
      %58 = tpu.reciprocal %57 : vector<1x1xf32> -> vector<1x1xf32>
      %c0_32 = arith.constant 0 : index
      %c0_33 = arith.constant 0 : index
      %59 = vector.load %arg13[%c0_32, %c0_33] : memref<1x64xf32, #tpu.memory_space<vmem>>, vector<1x64xf32>
      %60 = vector.broadcast %58 : vector<1x1xf32> to vector<1x64xf32>
      %61 = arith.mulf %59, %60 : vector<1x64xf32>
      %c0_34 = arith.constant 0 : index
      %c0_35 = arith.constant 0 : index
      %62 = vector.load %arg9[%c0_34, %c0_35] : memref<1x64xf32, #tpu.memory_space<vmem>>, vector<1x64xf32>
      tpu.vector_store %arg9[%c0_34, %c0_35], %61 {strides = array<i32>} : memref<1x64xf32, #tpu.memory_space<vmem>>, vector<1x64xf32>,
      %c0_36 = arith.constant 0 : index
      %c0_37 = arith.constant 0 : index
      %63 = vector.load %arg6[%c0_36, %c0_37] : memref<64x2xf32, #tpu.memory_space<vmem>>, vector<64x2xf32>
      %cst_38 = arith.constant dense<0.000000e+00> : vector<1x2xf32>
      %64 = tpu.matmul %61, %63, %cst_38 {dimension_numbers = #tpu.dot_dimension_numbers<[1], [0], [0], [1], [0, 0, 1, 1], [], []>} : vector<1x64xf32>, vector<64x2xf32>, vector<1x2xf32> -> vector<1x2xf32>
      %c0_39 = arith.constant 0 : index
      %c0_40 = arith.constant 0 : index
      %65 = vector.load %arg7[%c0_39, %c0_40] : memref<1x2xf32, #tpu.memory_space<vmem>>, vector<1x2xf32>
      %66 = arith.addf %64, %65 : vector<1x2xf32>
      %c0_41 = arith.constant 0 : index
      %c0_42 = arith.constant 0 : index
      %67 = vector.load %arg10[%c0_41, %c0_42] : memref<1x2xf32, #tpu.memory_space<vmem>>, vector<1x2xf32>
      tpu.vector_store %arg10[%c0_41, %c0_42], %66 {strides = array<i32>} : memref<1x2xf32, #tpu.memory_space<vmem>>, vector<1x2xf32>,
    } else {
    }
    return
  }
  func.func @transform_0(%arg0: i32) -> (i32, i32) {
    %c0_i32 = arith.constant 0 : i32
    %c0_i32_0 = arith.constant 0 : i32
    return %arg0, %c0_i32 : i32, i32
  }
  func.func @transform_1(%arg0: i32) -> (i32, i32) {
    %c0_i32 = arith.constant 0 : i32
    %c0_i32_0 = arith.constant 0 : i32
    %c0_i32_1 = arith.constant 0 : i32
    return %c0_i32, %c0_i32_0 : i32, i32
  }
  func.func @transform_2(%arg0: i32) -> (i32, i32) {
    %c0_i32 = arith.constant 0 : i32
    %c0_i32_0 = arith.constant 0 : i32
    %c0_i32_1 = arith.constant 0 : i32
    return %c0_i32, %c0_i32_0 : i32, i32
  }
  func.func @transform_3(%arg0: i32) -> (i32, i32) {
    %c0_i32 = arith.constant 0 : i32
    %c0_i32_0 = arith.constant 0 : i32
    %c0_i32_1 = arith.constant 0 : i32
    return %c0_i32, %c0_i32_0 : i32, i32
  }
  func.func @transform_4(%arg0: i32) -> i32 {
    %c0_i32 = arith.constant 0 : i32
    %c0_i32_0 = arith.constant 0 : i32
    return %c0_i32 : i32
  }
  func.func @transform_5(%arg0: i32) -> (i32, i32) {
    %c0_i32 = arith.constant 0 : i32
    %c0_i32_0 = arith.constant 0 : i32
    %c0_i32_1 = arith.constant 0 : i32
    return %c0_i32, %c0_i32_0 : i32, i32
  }
  func.func @transform_6(%arg0: i32) -> (i32, i32) {
    %c0_i32 = arith.constant 0 : i32
    %c0_i32_0 = arith.constant 0 : i32
    %c0_i32_1 = arith.constant 0 : i32
    return %c0_i32, %c0_i32_0 : i32, i32
  }
  func.func @transform_7(%arg0: i32) -> (i32, i32) {
    %c0_i32 = arith.constant 0 : i32
    %c0_i32_0 = arith.constant 0 : i32
    return %c0_i32, %arg0 : i32, i32
  }
  func.func @transform_8(%arg0: i32) -> (i32, i32) {
    %c0_i32 = arith.constant 0 : i32
    %c0_i32_0 = arith.constant 0 : i32
    %c0_i32_1 = arith.constant 0 : i32
    return %c0_i32, %c0_i32_0 : i32, i32
  }
  func.func @transform_9(%arg0: i32) -> (i32, i32) {
    %c0_i32 = arith.constant 0 : i32
    %c0_i32_0 = arith.constant 0 : i32
    %c0_i32_1 = arith.constant 0 : i32
    return %c0_i32, %c0_i32_0 : i32, i32
  }
}

</mosaic_0001>

<bundles_post_ra>
// kernel: neg.1
= control target key start
LH: loop header
LB: loop body
LE: loop exit
PB: predicated region body
PF: predicated region fallthrough
CT: control target
= control target key end

     0   :  { %s56_s0 = inlined_call_operand.vmem [shape: f32[2600], index: 0, kind: input, shape index: {}]   ;;  %s57_s1 = inlined_call_operand.vmem [shape: f32[2600], index: 1, kind: output, shape index: {}]  }
   0x1   :  { %v2_v0 = vld [vmem:[%s56_s0] sm:$0xff]  ;;  %v24_v1 = vld [vmem:[%s56_s0 + $0x8] sm:$0xff]  ;;  %v26_v2 = vld [vmem:[%s56_s0 + $0x10] sm:$0xff] }
   0x2   :  { %v5_v3 = vxor.u32 2147483648, %v2_v0  ;;  %v12_v4 = vxor.u32 2147483648, %v24_v1  ;;  %v20_v5 = vxor.u32 2147483648, %v26_v2 }
   0x4   :  { %7 = vst [vmem:[%s57_s1] sm:$0xff] %v5_v3  ;;  %25 = vst [vmem:[%s57_s1 + $0x8] sm:$0xff] %v12_v4 }
   0x5   :  { %27 = vst [vmem:[%s57_s1 + $0x10] sm:$0xff] %v20_v5 }

// kernel: gated_attention_forward.1
= control target key start
LH: loop header
LB: loop body
LE: loop exit
PB: predicated region body
PF: predicated region fallthrough
CT: control target
= control target key end

     0   :  { %s7178_s0 = inlined_call_operand.vmem [shape: f32[3072,64], index: 0, kind: input, shape index: {}]   ;;  %s7179_s1 = inlined_call_operand.vmem [shape: f32[64,256], index: 1, kind: input, shape index: {}]   ;;  %s7180_s2 = inlined_call_operand.vmem [shape: f32[1,256], index: 2, kind: input, shape index: {}]   ;;  %s7181_s3 = inlined_call_operand.vmem [shape: f32[1,128], index: 3, kind: input, shape index: {}]   ;;  %s7182_s4 = inlined_call_operand.<no memory space> [shape: f32[1], index: 4, kind: input, shape index: {}]   ;;  %s7183_s5 = inlined_call_operand.vmem [shape: f32[64,2], index: 5, kind: input, shape index: {}]   ;;  %s7184_s6 = inlined_call_operand.vmem [shape: f32[1,2], index: 6, kind: input, shape index: {}]   ;;  %s7185_s7 = inlined_call_operand.vmem [shape: f32[1,3072], index: 7, kind: output, shape index: {0}]   ;;  %s7186_s8 = inlined_call_operand.hbm [shape: f32[1,64], index: 8, kind: output, shape index: {1}]   ;;  %s7187_s9 = inlined_call_operand.vmem [shape: f32[1,2], index: 9, kind: output, shape index: {2}]  }
   0x1   :  { %15 = sst [smem:[#allocation5]] %s7182_s4 }
   0x2   :  { %16 = vsyncpa [#allocation7], 0  ;;  %s5568_s11 = smov 0  }
   0x3 LB: > { %s5574_s12 = sadd.s32 4294967295, %s5503_s11   ;;  %p3678_p0 = scmp.ge.s32.totalorder %s5503_s11, 1  ;;  %s5503_s11 = sphi %s5568_s11, %s22_s11  }
   0x4   : > { %p285_p1 = scmp.lt.s32.totalorder %s5503_s11, 4 }
   0x6   : > { %p286_p2 = pnand %p3678_p0, %p285_p1 }
   0x8   : > { %289 = sbr.rel (%p286_p2) target bundleno = 1827 (0x723), region = 48 }
   0xf   : > { %s3679_s4 = sshll.u32 %s5574_s12, 7  ;;  %s3681_s13 = sshll.u32 %s5574_s12, 3 }
  0x10   : > { %p321_p3 = scmp.lt.s32.totalorder %s3679_s4, 383  ;;  %p327_p4 = scmp.lt.s32.totalorder %s3681_s13, 23 }
  0x11   : > { %p3682_p5 = scmp.ne.s32.totalorder %s5574_s12, 0 }
  0x12   : > { %s7324_s4 = smov (!%p321_p3, %s3679_s4), 383  ;;  %s7326_s13 = smov (!%p327_p4, %s3681_s13), 23 }
  0x13   : > { %s3680_s14 = sshll.u32 %s7324_s4, 3  ;;  %s329_s20 = scalar_lea.vmem %s7185_s7, %s7326_s13  ;;  %vm335_vm0 = vcmask (!%p3682_p5), 0   ;;  %vm338_vm1 = vcmask (!%p3682_p5), 516096   ;;  %v5505_v0 = vmov (!%p3682_p5), -inf   ;;  %v5506_v1 = vmov (!%p3682_p5), 0.0  }
  0x14   : > { %s5585_s17 = scalar_lea.vmem %s7178_s0, %s3680_s14  ;;  %334 = sbr.rel (%p3682_p5) target bundleno = 27 (0x1b), region = 52  ;;  %336 = vst.msk [vmem:[#allocation2] sm:$0x1] (!%p3682_p5), %vm335_vm0, %v5505_v0  ;;  %337 = vst.msk [vmem:[#allocation3] sm:$0x1] (!%p3682_p5), %vm335_vm0, %v5506_v1 }
  0x15   : > { %339 = vst.msk [vmem:[#allocation4] sm:$0x1] (!%p3682_p5), %vm338_vm1, %v5506_v1 }
  0x1b PF: > { %v469_v2 = vld [vmem:[%s7179_s1 + $0x8] sm:$0xff]  ;;  %v471_v3 = vld [vmem:[%s7179_s1 + $0x18] sm:$0xff]  ;;  %v468_v4 = vld [vmem:[%s7179_s1] sm:$0xff]  ;;  %v5507_v9 = vmov 0.0   ;;  %vm496_vm2 = vcmask 523264   ;;  %s2739_s27 = sld [smem:[#allocation5]] }
  0x1c   : > { %v4250_v5 = vpack.c.bf16 %v471_v3, %v469_v2  ;;  %v470_v6 = vld [vmem:[%s7179_s1 + $0x10] sm:$0xff]  ;;  %v473_v7 = vld [vmem:[%s7179_s1 + $0x28] sm:$0xff]  ;;  %v475_v8 = vld [vmem:[%s7179_s1 + $0x38] sm:$0xff]  ;;  %945 = vmatprep.mubr.f32.mxu0 %v5507_v9  ;;  %1575 = vmatprep.mubr.f32.mxu1 %v5507_v9  ;;  %s3939_s28 = sshll.u32 %s5574_s12, 10  ;;  %vm3120_vm9 = vcmask 1040384   ;;  %vm3195_vm12 = vcmask 0  }
  0x1d   : > { %v4252_v10 = vpack.c.bf16 %v470_v6, %v468_v4  ;;  %v4254_v11 = vpack.c.bf16 %v475_v8, %v473_v7  ;;  %v472_v12 = vld [vmem:[%s7179_s1 + $0x20] sm:$0xff]  ;;  %v474_v13 = vld [vmem:[%s7179_s1 + $0x30] sm:$0xff]  ;;  %v477_v14 = vld [vmem:[%s7179_s1 + $0x48] sm:$0xff]  ;;  %vm3489_vm13 = vcmask 516096   ;;  %p3940_p6 = scmp.ne.s32.totalorder %s5574_s12, 2 }
  0x1e   : > { %4251 = vmatprep.subr.bf16.mxu0 %v4250_v5  ;;  %v479_v15 = vld [vmem:[%s7179_s1 + $0x58] sm:$0xff]  ;;  %4534 = vmatprep.subr.bf16.mxu1 %v4250_v5  ;;  %v4256_v16 = vpack.c.bf16 %v474_v13, %v472_v12  ;;  %v476_v17 = vld [vmem:[%s7179_s1 + $0x40] sm:$0xff]  ;;  %v478_v18 = vld [vmem:[%s7179_s1 + $0x50] sm:$0xff]  ;;  %vm5512_vm14 = vmmov (!%p3940_p6), 0   ;;  %vm3592_vm15 = vcmask (!%p3940_p6), 8192  }
  0x1f   : > { %4253 = vmatpush1.bf16.msra.mxu0 %v4252_v10  ;;  %v481_v19 = vld [vmem:[%s7179_s1 + $0x68] sm:$0xff]  ;;  %4538 = vmatpush1.bf16.msra.mxu1 %v4252_v10  ;;  %v4258_v20 = vpack.c.bf16 %v479_v15, %v477_v14  ;;  %v483_v21 = vld [vmem:[%s7179_s1 + $0x78] sm:$0xff]  ;;  %v5637_v22 = vld [vmem:[%s5585_s17] sm:$0xff]  ;;  %v4260_v34 = vpack.c.bf16 %v478_v18, %v476_v17 }
  0x20   : > { %4255 = vmatprep.subr.bf16.mxu0 %v4254_v11  ;;  %7218 = vst [vmem:[#allocation9_spill] sm:$0xff] %v5637_v22  ;;  %v5640_v23 = vld [vmem:[%s5585_s17 + $0x8] sm:$0xff]  ;;  %4535 = vmatprep.subr.bf16.mxu1 %v4254_v11  ;;  %v5645_v25 = vld [vmem:[%s5585_s17 + $0x10] sm:$0xff]  ;;  %v5648_v26 = vld [vmem:[%s5585_s17 + $0x18] sm:$0xff]  ;;  %v4262_v40 = vpack.c.bf16 %v483_v21, %v481_v19 }
  0x21   : > { %7219 = vst [vmem:[#allocation10_spill] sm:$0xff] %v5640_v23  ;;  %7220 = vst [vmem:[#allocation11_spill] sm:$0xff] %v5645_v25  ;;  %v5651_v27 = vld [vmem:[%s5585_s17 + $0x20] sm:$0xff]  ;;  %v482_v29 = vld [vmem:[%s7179_s1 + $0x70] sm:$0xff] }
  0x22   : > { %7221 = vst [vmem:[#allocation12_spill] sm:$0xff] %v5648_v26  ;;  %7222 = vst [vmem:[#allocation13_spill] sm:$0xff] %v5651_v27  ;;  %v480_v28 = vld [vmem:[%s7179_s1 + $0x60] sm:$0xff]  ;;  %v5662_v31 = vld [vmem:[%s5585_s17 + $0x28] sm:$0xff] }
  0x23   : > { %7223 = vst [vmem:[#allocation14_spill] sm:$0xff] %v5662_v31  ;;  %v5665_v32 = vld [vmem:[%s5585_s17 + $0x30] sm:$0xff]  ;;  %v5668_v33 = vld [vmem:[%s5585_s17 + $0x38] sm:$0xff]  ;;  %4257 = vmatpush1.bf16.msra.mxu0 %v4256_v16  ;;  %v5675_v37 = vld [vmem:[%s5585_s17 + $0x40] sm:$0xff]  ;;  %4539 = vmatpush1.bf16.msra.mxu1 %v4256_v16  ;;  %v4264_v47 = vpack.c.bf16 %v482_v29, %v480_v28  ;;  %v7188_v29 = vlaneseq }
  0x24   : > { %7224 = vst [vmem:[#allocation15_spill] sm:$0xff] %v5665_v32  ;;  %7225 = vst [vmem:[#allocation16_spill] sm:$0xff] %v5668_v33  ;;  %v5678_v38 = vld [vmem:[%s5585_s17 + $0x48] sm:$0xff]  ;;  %v5681_v39 = vld [vmem:[%s5585_s17 + $0x50] sm:$0xff]  ;;  %4259 = vmatprep.subr.bf16.mxu0 %v4258_v20  ;;  %4536 = vmatprep.subr.bf16.mxu1 %v4258_v20 }
  0x25   : > { %7226 = vst [vmem:[#allocation17_spill] sm:$0xff] %v5675_v37  ;;  %7227 = vst [vmem:[#allocation18_spill] sm:$0xff] %v5678_v38  ;;  %v5686_v42 = vld [vmem:[%s5585_s17 + $0x58] sm:$0xff]  ;;  %v5689_v43 = vld [vmem:[%s5585_s17 + $0x60] sm:$0xff] }
  0x26   : > { %7228 = vst [vmem:[#allocation19_spill] sm:$0xff] %v5681_v39  ;;  %7229 = vst [vmem:[#allocation20_spill] sm:$0xff] %v5686_v42  ;;  %v5692_v44 = vld [vmem:[%s5585_s17 + $0x68] sm:$0xff]  ;;  %v354_v48 = vld [vmem:[%s5585_s17 + $0x70] sm:$0xff] }
  0x27   : > { %7230 = vst [vmem:[#allocation21_spill] sm:$0xff] %v5689_v43  ;;  %7231 = vst [vmem:[#allocation22_spill] sm:$0xff] %v5692_v44  ;;  %4261 = vmatpush1.bf16.msra.mxu0 %v4260_v34  ;;  %4540 = vmatpush1.bf16.msra.mxu1 %v4260_v34  ;;  %v355_v49 = vld [vmem:[%s5585_s17 + $0x78] sm:$0xff]  ;;  %v356_v50 = vld [vmem:[%s5585_s17 + $0x80] sm:$0xff] }
  0x28   : > { %4263 = vmatprep.subr.bf16.mxu0 %v4262_v40  ;;  %4537 = vmatprep.subr.bf16.mxu1 %v4262_v40  ;;  %v357_v51 = vld [vmem:[%s5585_s17 + $0x88] sm:$0xff]  ;;  %v358_v52 = vld [vmem:[%s5585_s17 + $0x90] sm:$0xff]  ;;  %v359_v53 = vld [vmem:[%s5585_s17 + $0x98] sm:$0xff]  ;;  %v5856_v40 = vshrl.u32 %v7188_v29, 7 }
  0x29   : > { %v360_v54 = vld [vmem:[%s5585_s17 + $0xa0] sm:$0xff]  ;;  %v361_v55 = vld [vmem:[%s5585_s17 + $0xa8] sm:$0xff]  ;;  %v362_v56 = vld [vmem:[%s5585_s17 + $0xb0] sm:$0xff] }
  0x2a   : > { %v363_v57 = vld [vmem:[%s5585_s17 + $0xb8] sm:$0xff]  ;;  %v364_v58 = vld [vmem:[%s5585_s17 + $0xc0] sm:$0xff]  ;;  %v365_v59 = vld [vmem:[%s5585_s17 + $0xc8] sm:$0xff]  ;;  %7232 = vst [vmem:[#allocation23_spill] sm:$0xff] %v5856_v40 }
  0x2b   : > { %4265 = vmatpush1.bf16.msra.mxu0 %v4264_v47  ;;  %4541 = vmatpush1.bf16.msra.mxu1 %v4264_v47  ;;  %v366_v60 = vld [vmem:[%s5585_s17 + $0xd0] sm:$0xff]  ;;  %v367_v61 = vld [vmem:[%s5585_s17 + $0xd8] sm:$0xff]  ;;  %v368_v62 = vld [vmem:[%s5585_s17 + $0xe0] sm:$0xff] }
  0x2c   : > { %v369_v63 = vld [vmem:[%s5585_s17 + $0xe8] sm:$0xff]  ;;  %v370_v0 = vld [vmem:[%s5585_s17 + $0xf0] sm:$0xff]  ;;  %v371_v1 = vld [vmem:[%s5585_s17 + $0xf8] sm:$0xff] }
  0x2d   : > { %v372_v2 = vld [vmem:[%s5585_s17 + $0x100] sm:$0xff]  ;;  %v373_v3 = vld [vmem:[%s5585_s17 + $0x108] sm:$0xff]  ;;  %v374_v4 = vld [vmem:[%s5585_s17 + $0x110] sm:$0xff] }
  0x2e   : > { %3683 = vmatmul.mubr.msk.f32.vlgmr.msra.gmra.mrb[0].mxu0 %vm496_vm2, %v5637_v22  ;;  %v375_v5 = vld [vmem:[%s5585_s17 + $0x118] sm:$0xff]  ;;  %v376_v6 = vld [vmem:[%s5585_s17 + $0x120] sm:$0xff]  ;;  %v377_v7 = vld [vmem:[%s5585_s17 + $0x128] sm:$0xff] }
  0x2f   : > { %951 = vmatprep.mubr.f32.mxu0 %v5507_v9  ;;  %v378_v8 = vld [vmem:[%s5585_s17 + $0x130] sm:$0xff]  ;;  %v379_v10 = vld [vmem:[%s5585_s17 + $0x138] sm:$0xff]  ;;  %v380_v11 = vld [vmem:[%s5585_s17 + $0x140] sm:$0xff] }
  0x30   : > { %v381_v12 = vld [vmem:[%s5585_s17 + $0x148] sm:$0xff]  ;;  %v382_v13 = vld [vmem:[%s5585_s17 + $0x150] sm:$0xff]  ;;  %v383_v14 = vld [vmem:[%s5585_s17 + $0x158] sm:$0xff] }
  0x31   : > { %v384_v15 = vld [vmem:[%s5585_s17 + $0x160] sm:$0xff]  ;;  %v385_v16 = vld [vmem:[%s5585_s17 + $0x168] sm:$0xff]  ;;  %v386_v17 = vld [vmem:[%s5585_s17 + $0x170] sm:$0xff] }
  0x32   : > { %3684 = vmatmul.mubr.msk.f32.gmra.mrb[2].mxu0 %vm496_vm2, %v5640_v23  ;;  %v387_v18 = vld [vmem:[%s5585_s17 + $0x178] sm:$0xff]  ;;  %v445_v19 = vld [vmem:[%s5585_s17 + $0x348] sm:$0xff]  ;;  %v388_v20 = vld [vmem:[%s5585_s17 + $0x180] sm:$0xff] }
  0x33   : > { %957 = vmatprep.mubr.f32.mxu0 %v5507_v9  ;;  %3788 = vmatmul.mubr.msk.f32.vlgmr.msra.gmra.mrb[0].mxu1 %vm496_vm2, %v445_v19  ;;  %v389_v21 = vld [vmem:[%s5585_s17 + $0x188] sm:$0xff]  ;;  %v390_v28 = vld [vmem:[%s5585_s17 + $0x190] sm:$0xff]  ;;  %v391_v34 = vld [vmem:[%s5585_s17 + $0x198] sm:$0xff] }
  0x34   : > { %1581 = vmatprep.mubr.f32.mxu1 %v5507_v9  ;;  %v392_v47 = vld [vmem:[%s5585_s17 + $0x1a0] sm:$0xff] }
  0x36   : > { %3685 = vmatmul.mubr.msk.f32.gmra.mrb[4].mxu0 %vm496_vm2, %v5645_v25 }
  0x37   : > { %963 = vmatprep.mubr.f32.mxu0 %v5507_v9 }
  0x3a   : > { %3686 = vmatmul.mubr.msk.f32.gmra.mrb[6].mxu0 %vm496_vm2, %v5648_v26 }
  0x3b   : > { %969 = vmatprep.mubr.f32.mxu0 %v5507_v9 }
  0x3e   : > { %3687 = vmatmul.mubr.msk.f32.gmra.mrb[8].mxu0 %vm496_vm2, %v5651_v27 }
  0x3f   : > { %975 = vmatprep.mubr.f32.mxu0 %v5507_v9 }
  0x42   : > { %3688 = vmatmul.mubr.msk.f32.gmra.mrb[10].mxu0 %vm496_vm2, %v5662_v31 }
  0x43   : > { %981 = vmatprep.mubr.f32.mxu0 %v5507_v9 }
  0x46   : > { %3689 = vmatmul.mubr.msk.f32.gmra.mrb[12].mxu0 %vm496_vm2, %v5665_v32 }
  0x47   : > { %987 = vmatprep.mubr.f32.mxu0 %v5507_v9 }
  0x4a   : > { %3690 = vmatmul.mubr.msk.f32.gmra.mrb[14].mxu0 %vm496_vm2, %v5668_v33 }
  0x4b   : > { %993 = vmatprep.mubr.f32.mxu0 %v5507_v9 }
  0x4e   : > { %3691 = vmatmul.mubr.msk.f32.gmra.mrb[16].mxu0 %vm496_vm2, %v5675_v37 }
  0x4f   : > { %999 = vmatprep.mubr.f32.mxu0 %v5507_v9 }
  0x52   : > { %3692 = vmatmul.mubr.msk.f32.gmra.mrb[18].mxu0 %vm496_vm2, %v5678_v38 }
  0x53   : > { %1005 = vmatprep.mubr.f32.mxu0 %v5507_v9 }
  0x56   : > { %3693 = vmatmul.mubr.msk.f32.gmra.mrb[20].mxu0 %vm496_vm2, %v5681_v39 }
  0x57   : > { %1011 = vmatprep.mubr.f32.mxu0 %v5507_v9 }
  0x5a   : > { %3694 = vmatmul.mubr.msk.f32.gmra.mrb[22].mxu0 %vm496_vm2, %v5686_v42 }
  0x5b   : > { %1017 = vmatprep.mubr.f32.mxu0 %v5507_v9 }
  0x5e   : > { %3695 = vmatmul.mubr.msk.f32.gmra.mrb[24].mxu0 %vm496_vm2, %v5689_v43 }
  0x5f   : > { %1023 = vmatprep.mubr.f32.mxu0 %v5507_v9 }
  0x62   : > { %3696 = vmatmul.mubr.msk.f32.gmra.mrb[26].mxu0 %vm496_vm2, %v5692_v44 }
  0x63   : > { %1029 = vmatprep.mubr.f32.mxu0 %v5507_v9 }
  0x66   : > { %3697 = vmatmul.mubr.msk.f32.gmra.mrb[28].mxu0 %vm496_vm2, %v354_v48  ;;  %v492_v48 = vsub.s32 1, %v5856_v40 }
  0x67   : > { %1035 = vmatprep.mubr.f32.mxu0 %v5507_v9 }
  0x6a   : > { %3698 = vmatmul.mubr.msk.f32.gmra.mrb[30].mxu0 %vm496_vm2, %v355_v49  ;;  %v484_v49 = vld [vmem:[%s7180_s2] sm:$0x3] }
  0x6b   : > { %1041 = vmatprep.mubr.f32.mxu0 %v5507_v9 }
  0x6e   : > { %3699 = vmatmul.mubr.msk.f32.gmra.mrb[32].mxu0 %vm496_vm2, %v356_v50  ;;  %v5867_v50 = vrot.slane %v484_v49, %v492_v48 }
  0x6f   : > { %1047 = vmatprep.mubr.f32.mxu0 %v5507_v9 }
  0x72   : > { %3700 = vmatmul.mubr.msk.f32.gmra.mrb[34].mxu0 %vm496_vm2, %v357_v51  ;;  %v393_v51 = vld [vmem:[%s5585_s17 + $0x1a8] sm:$0xff] }
  0x73   : > { %1053 = vmatprep.mubr.f32.mxu0 %v5507_v9 }
  0x76   : > { %3701 = vmatmul.mubr.msk.f32.gmra.mrb[36].mxu0 %vm496_vm2, %v358_v52 }
  0x77   : > { %1059 = vmatprep.mubr.f32.mxu0 %v5507_v9 }
  0x7a   : > { %3702 = vmatmul.mubr.msk.f32.gmra.mrb[38].mxu0 %vm496_vm2, %v359_v53 }
  0x7b   : > { %1065 = vmatprep.mubr.f32.mxu0 %v5507_v9 }
  0x7e   : > { %3703 = vmatmul.mubr.msk.f32.gmra.mrb[40].mxu0 %vm496_vm2, %v360_v54  ;;  %v5872_v54 = vld [vmem:[%s5585_s17 + $0x350] sm:$0xff] }
  0x7f   : > { %1071 = vmatprep.mubr.f32.mxu0 %v5507_v9  ;;  %7233 = vst [vmem:[#allocation24_spill] sm:$0xff] %v5872_v54  ;;  %3789 = vmatmul.mubr.msk.f32.gmra.mrb[2].mxu1 %vm496_vm2, %v5872_v54 }
  0x80   : > { %1587 = vmatprep.mubr.f32.mxu1 %v5507_v9 }
  0x82   : > { %3704 = vmatmul.mubr.msk.f32.gmra.mrb[42].mxu0 %vm496_vm2, %v361_v55 }
  0x83   : > { %1077 = vmatprep.mubr.f32.mxu0 %v5507_v9 }
  0x86   : > { %3705 = vmatmul.mubr.msk.f32.gmra.mrb[44].mxu0 %vm496_vm2, %v362_v56  ;;  %v394_v56 = vld [vmem:[%s5585_s17 + $0x1b0] sm:$0xff] }
  0x87   : > { %1083 = vmatprep.mubr.f32.mxu0 %v5507_v9 }
  0x8a   : > { %3706 = vmatmul.mubr.msk.f32.gmra.mrb[46].mxu0 %vm496_vm2, %v363_v57 }
  0x8b   : > { %1089 = vmatprep.mubr.f32.mxu0 %v5507_v9 }
  0x8e   : > { %3707 = vmatmul.mubr.msk.f32.gmra.mrb[48].mxu0 %vm496_vm2, %v364_v58 }
  0x8f   : > { %1095 = vmatprep.mubr.f32.mxu0 %v5507_v9 }
  0x92   : > { %3708 = vmatmul.mubr.msk.f32.gmra.mrb[50].mxu0 %vm496_vm2, %v365_v59  ;;  %v5881_v59 = vsub.s32 0, %v5856_v40 }
  0x93   : > { %1101 = vmatprep.mubr.f32.mxu0 %v5507_v9 }
  0x94   : > { %7234 = vst [vmem:[#allocation25_spill] sm:$0xff] %v5881_v59 }
  0x96   : > { %3709 = vmatmul.mubr.msk.f32.gmra.mrb[52].mxu0 %vm496_vm2, %v366_v60 }
  0x97   : > { %1107 = vmatprep.mubr.f32.mxu0 %v5507_v9 }
  0x9a   : > { %3710 = vmatmul.mubr.msk.f32.gmra.mrb[54].mxu0 %vm496_vm2, %v367_v61  ;;  %v5885_v61 = vld [vmem:[%s5585_s17 + $0x358] sm:$0xff] }
  0x9b   : > { %1113 = vmatprep.mubr.f32.mxu0 %v5507_v9  ;;  %7235 = vst [vmem:[#allocation26_spill] sm:$0xff] %v5885_v61  ;;  %3790 = vmatmul.mubr.msk.f32.gmra.mrb[4].mxu1 %vm496_vm2, %v5885_v61 }
  0x9c   : > { %1593 = vmatprep.mubr.f32.mxu1 %v5507_v9 }
  0x9e   : > { %3711 = vmatmul.mubr.msk.f32.gmra.mrb[56].mxu0 %vm496_vm2, %v368_v62 }
  0x9f   : > { %1119 = vmatprep.mubr.f32.mxu0 %v5507_v9 }
  0xa2   : > { %3712 = vmatmul.mubr.msk.f32.gmra.mrb[58].mxu0 %vm496_vm2, %v369_v63  ;;  %v395_v63 = vld [vmem:[%s5585_s17 + $0x1b8] sm:$0xff] }
  0xa3   : > { %1125 = vmatprep.mubr.f32.mxu0 %v5507_v9 }
  0xa6   : > { %3713 = vmatmul.mubr.msk.f32.gmra.mrb[60].mxu0 %vm496_vm2, %v370_v0 }
  0xa7   : > { %1131 = vmatprep.mubr.f32.mxu0 %v5507_v9 }
  0xaa   : > { %3714 = vmatmul.mubr.msk.f32.gmra.mrb[62].mxu0 %vm496_vm2, %v371_v1 }
  0xab   : > { %1137 = vmatprep.mubr.f32.mxu0 %v5507_v9 }
  0xae   : > { %3715 = vmatmul.mubr.msk.f32.gmra.mrb[64].mxu0 %vm496_vm2, %v372_v2  ;;  %v5894_v2 = vrot.slane %v484_v49, %v5881_v59 }
  0xaf   : > { %1143 = vmatprep.mubr.f32.mxu0 %v5507_v9 }
  0xb2   : > { %3716 = vmatmul.mubr.msk.f32.gmra.mrb[66].mxu0 %vm496_vm2, %v373_v3 }
  0xb3   : > { %1149 = vmatprep.mubr.f32.mxu0 %v5507_v9 }
  0xb6   : > { %3717 = vmatmul.mubr.msk.f32.gmra.mrb[68].mxu0 %vm496_vm2, %v374_v4  ;;  %v5898_v4 = vld [vmem:[%s5585_s17 + $0x360] sm:$0xff] }
  0xb7   : > { %1155 = vmatprep.mubr.f32.mxu0 %v5507_v9  ;;  %7236 = vst [vmem:[#allocation27_spill] sm:$0xff] %v5898_v4  ;;  %3791 = vmatmul.mubr.msk.f32.gmra.mrb[6].mxu1 %vm496_vm2, %v5898_v4 }
  0xb8   : > { %1599 = vmatprep.mubr.f32.mxu1 %v5507_v9 }
  0xba   : > { %3718 = vmatmul.mubr.msk.f32.gmra.mrb[70].mxu0 %vm496_vm2, %v375_v5 }
  0xbb   : > { %1161 = vmatprep.mubr.f32.mxu0 %v5507_v9 }
  0xbe   : > { %3719 = vmatmul.mubr.msk.f32.gmra.mrb[72].mxu0 %vm496_vm2, %v376_v6  ;;  %v396_v6 = vld [vmem:[%s5585_s17 + $0x1c0] sm:$0xff] }
  0xbf   : > { %1167 = vmatprep.mubr.f32.mxu0 %v5507_v9 }
  0xc2   : > { %3720 = vmatmul.mubr.msk.f32.gmra.mrb[74].mxu0 %vm496_vm2, %v377_v7 }
  0xc3   : > { %1173 = vmatprep.mubr.f32.mxu0 %v5507_v9 }
  0xc6   : > { %3721 = vmatmul.mubr.msk.f32.gmra.mrb[76].mxu0 %vm496_vm2, %v378_v8 }
  0xc7   : > { %1179 = vmatprep.mubr.f32.mxu0 %v5507_v9 }
  0xca   : > { %3722 = vmatmul.mubr.msk.f32.gmra.mrb[78].mxu0 %vm496_vm2, %v379_v10 }
  0xcb   : > { %1185 = vmatprep.mubr.f32.mxu0 %v5507_v9 }
  0xce   : > { %3723 = vmatmul.mubr.msk.f32.gmra.mrb[80].mxu0 %vm496_vm2, %v380_v11 }
  0xcf   : > { %1191 = vmatprep.mubr.f32.mxu0 %v5507_v9 }
  0xd2   : > { %3724 = vmatmul.mubr.msk.f32.gmra.mrb[82].mxu0 %vm496_vm2, %v381_v12  ;;  %v5909_v12 = vld [vmem:[%s5585_s17 + $0x368] sm:$0xff] }
  0xd3   : > { %1197 = vmatprep.mubr.f32.mxu0 %v5507_v9  ;;  %7237 = vst [vmem:[#allocation28_spill] sm:$0xff] %v5909_v12  ;;  %3792 = vmatmul.mubr.msk.f32.gmra.mrb[8].mxu1 %vm496_vm2, %v5909_v12 }
  0xd4   : > { %1605 = vmatprep.mubr.f32.mxu1 %v5507_v9 }
  0xd6   : > { %3725 = vmatmul.mubr.msk.f32.gmra.mrb[84].mxu0 %vm496_vm2, %v382_v13 }
  0xd7   : > { %1203 = vmatprep.mubr.f32.mxu0 %v5507_v9 }
  0xda   : > { %3726 = vmatmul.mubr.msk.f32.gmra.mrb[86].mxu0 %vm496_vm2, %v383_v14  ;;  %v397_v14 = vld [vmem:[%s5585_s17 + $0x1c8] sm:$0xff] }
  0xdb   : > { %1209 = vmatprep.mubr.f32.mxu0 %v5507_v9 }
  0xde   : > { %3727 = vmatmul.mubr.msk.f32.gmra.mrb[88].mxu0 %vm496_vm2, %v384_v15 }
  0xdf   : > { %1215 = vmatprep.mubr.f32.mxu0 %v5507_v9 }
  0xe2   : > { %3728 = vmatmul.mubr.msk.f32.gmra.mrb[90].mxu0 %vm496_vm2, %v385_v16 }
  0xe3   : > { %1221 = vmatprep.mubr.f32.mxu0 %v5507_v9 }
  0xe6   : > { %3729 = vmatmul.mubr.msk.f32.gmra.mrb[92].mxu0 %vm496_vm2, %v386_v17 }
  0xe7   : > { %1227 = vmatprep.mubr.f32.mxu0 %v5507_v9 }
  0xea   : > { %3730 = vmatmul.mubr.msk.f32.gmra.mrb[94].mxu0 %vm496_vm2, %v387_v18 }
  0xeb   : > { %1233 = vmatprep.mubr.f32.mxu0 %v5507_v9 }
  0xee   : > { %3731 = vmatmul.mubr.msk.f32.gmra.mrb[96].mxu0 %vm496_vm2, %v388_v20 }
  0xef   : > { %1239 = vmatprep.mubr.f32.mxu0 %v5507_v9 }
  0xf2   : > { %3732 = vmatmul.mubr.msk.f32.gmra.mrb[98].mxu0 %vm496_vm2, %v389_v21  ;;  %v5920_v21 = vld [vmem:[%s5585_s17 + $0x370] sm:$0xff] }
  0xf3   : > { %1245 = vmatprep.mubr.f32.mxu0 %v5507_v9  ;;  %7238 = vst [vmem:[#allocation29_spill] sm:$0xff] %v5920_v21  ;;  %3793 = vmatmul.mubr.msk.f32.gmra.mrb[10].mxu1 %vm496_vm2, %v5920_v21 }
  0xf4   : > { %1611 = vmatprep.mubr.f32.mxu1 %v5507_v9 }
  0xf6   : > { %3733 = vmatmul.mubr.msk.f32.gmra.mrb[100].mxu0 %vm496_vm2, %v390_v28 }
  0xf7   : > { %1251 = vmatprep.mubr.f32.mxu0 %v5507_v9 }
  0xfa   : > { %3734 = vmatmul.mubr.msk.f32.gmra.mrb[102].mxu0 %vm496_vm2, %v391_v34  ;;  %v398_v34 = vld [vmem:[%s5585_s17 + $0x1d0] sm:$0xff] }
  0xfb   : > { %1257 = vmatprep.mubr.f32.mxu0 %v5507_v9 }
  0xfe   : > { %3735 = vmatmul.mubr.msk.f32.gmra.mrb[104].mxu0 %vm496_vm2, %v392_v47 }
  0xff   : > { %1263 = vmatprep.mubr.f32.mxu0 %v5507_v9 }
 0x101   : > { %v947_v52 = vpop.f32.mrb[0].mxu0 }
 0x102   : > { %v949_v53 = vpop.f32.mrb[1].mxu0  ;;  %3736 = vmatmul.mubr.msk.f32.gmra.mrb[106].mxu0 %vm496_vm2, %v393_v51  ;;  %v948_v10 = vadd.f32 %v947_v52, %v5894_v2 }
 0x103   : > { %v950_v55 = vadd.f32 %v949_v53, %v5867_v50  ;;  %1269 = vmatprep.mubr.f32.mxu0 %v5507_v9 }
 0x105   : > { %v3811_v57 = vmul.f32 -1.442695, %v950_v55  ;;  %v953_v58 = vpop.f32.mrb[2].mxu0  ;;  %v5931_v55 = vld [vmem:[%s5585_s17 + $0x378] sm:$0xff] }
 0x106   : > { %v955_v60 = vpop.f32.mrb[3].mxu0  ;;  %3737 = vmatmul.mubr.msk.f32.gmra.mrb[108].mxu0 %vm496_vm2, %v394_v56  ;;  %v954_v19 = vadd.f32 %v953_v58, %v5894_v2  ;;  %7239 = vst [vmem:[#allocation30_spill] sm:$0xff] %v5931_v55  ;;  %3794 = vmatmul.mubr.msk.f32.gmra.mrb[12].mxu1 %vm496_vm2, %v5931_v55 }
 0x107   : > { %4568 = vpow2.f32 %v3811_v57  ;;  %v956_v62 = vadd.f32 %v955_v60, %v5867_v50  ;;  %1275 = vmatprep.mubr.f32.mxu0 %v5507_v9  ;;  %v399_v57 = vld [vmem:[%s5585_s17 + $0x1d8] sm:$0xff]  ;;  %1617 = vmatprep.mubr.f32.mxu1 %v5507_v9 }
 0x109   : > { %v3812_v0 = vmul.f32 -1.442695, %v956_v62  ;;  %v959_v1 = vpop.f32.mrb[4].mxu0 }
 0x10a   : > { %v961_v3 = vpop.f32.mrb[5].mxu0  ;;  %3738 = vmatmul.mubr.msk.f32.gmra.mrb[110].mxu0 %vm496_vm2, %v395_v63  ;;  %v960_v52 = vadd.f32 %v959_v1, %v5894_v2 }
 0x10b   : > { %4570 = vpow2.f32 %v3812_v0  ;;  %v962_v5 = vadd.f32 %v961_v3, %v5867_v50  ;;  %1281 = vmatprep.mubr.f32.mxu0 %v5507_v9 }
 0x10d   : > { %v3813_v7 = vmul.f32 -1.442695, %v962_v5  ;;  %v965_v8 = vpop.f32.mrb[6].mxu0  ;;  %v452_v5 = vld [vmem:[%s5585_s17 + $0x380] sm:$0xff] }
 0x10e   : > { %v967_v11 = vpop.f32.mrb[7].mxu0  ;;  %3739 = vmatmul.mubr.msk.f32.gmra.mrb[112].mxu0 %vm496_vm2, %v396_v6  ;;  %v966_v1 = vadd.f32 %v965_v8, %v5894_v2  ;;  %3795 = vmatmul.mubr.msk.f32.gmra.mrb[14].mxu1 %vm496_vm2, %v452_v5 }
 0x10f   : > { %4572 = vpow2.f32 %v3813_v7  ;;  %v968_v13 = vadd.f32 %v967_v11, %v5867_v50  ;;  %1287 = vmatprep.mubr.f32.mxu0 %v5507_v9  ;;  %v400_v7 = vld [vmem:[%s5585_s17 + $0x1e0] sm:$0xff]  ;;  %1623 = vmatprep.mubr.f32.mxu1 %v5507_v9 }
 0x110   : > { %4574 = vtanh.f32 %v948_v10 }
 0x111   : > { %v4569_v15 = vpop.eup %4568  ;;  %v3814_v16 = vmul.f32 -1.442695, %v968_v13  ;;  %v971_v17 = vpop.f32.mrb[8].mxu0 }
 0x112   : > { %v2226_v18 = vadd.f32 1.0, %v4569_v15  ;;  %v973_v20 = vpop.f32.mrb[9].mxu0  ;;  %3740 = vmatmul.mubr.msk.f32.gmra.mrb[114].mxu0 %vm496_vm2, %v397_v14 }
 0x113   : > { %4576 = vpow2.f32 %v3814_v16  ;;  %v974_v28 = vadd.f32 %v973_v20, %v5867_v50  ;;  %1293 = vmatprep.mubr.f32.mxu0 %v5507_v9  ;;  %v972_v16 = vadd.f32 %v971_v17, %v5894_v2 }
 0x114   : > { %4578 = vrcp.f32 %v2226_v18 }
 0x115   : > { %v4571_v47 = vpop.eup %4570  ;;  %v3815_v48 = vmul.f32 -1.442695, %v974_v28  ;;  %v977_v49 = vpop.f32.mrb[10].mxu0  ;;  %4580 = vtanh.f32 %v954_v19  ;;  %v453_v19 = vld [vmem:[%s5585_s17 + $0x388] sm:$0xff] }
 0x116   : > { %v2227_v51 = vadd.f32 1.0, %v4571_v47  ;;  %v979_v53 = vpop.f32.mrb[11].mxu0  ;;  %3741 = vmatmul.mubr.msk.f32.gmra.mrb[116].mxu0 %vm496_vm2, %v398_v34  ;;  %v401_v28 = vld [vmem:[%s5585_s17 + $0x1e8] sm:$0xff]  ;;  %3796 = vmatmul.mubr.msk.f32.gmra.mrb[16].mxu1 %vm496_vm2, %v453_v19  ;;  %v403_v19 = vld [vmem:[%s5585_s17 + $0x1f8] sm:$0xff] }
 0x117   : > { %4582 = vpow2.f32 %v3815_v48  ;;  %v980_v56 = vadd.f32 %v979_v53, %v5867_v50  ;;  %1299 = vmatprep.mubr.f32.mxu0 %v5507_v9  ;;  %1629 = vmatprep.mubr.f32.mxu1 %v5507_v9 }
 0x118   : > { %4584 = vrcp.f32 %v2227_v51 }
 0x119   : > { %v4573_v60 = vpop.eup %4572  ;;  %v3816_v62 = vmul.f32 -1.442695, %v980_v56  ;;  %v983_v63 = vpop.f32.mrb[12].mxu0  ;;  %4586 = vtanh.f32 %v960_v52 }
 0x11a   : > { %v2228_v0 = vadd.f32 1.0, %v4573_v60  ;;  %v985_v3 = vpop.f32.mrb[13].mxu0  ;;  %3742 = vmatmul.mubr.msk.f32.gmra.mrb[118].mxu0 %vm496_vm2, %v399_v57  ;;  %v4575_v10 = vpop.eup %4574  ;;  %v978_v57 = vadd.f32 %v977_v49, %v5894_v2 }
 0x11b   : > { %4588 = vpow2.f32 %v3816_v62  ;;  %v986_v6 = vadd.f32 %v985_v3, %v5867_v50  ;;  %1305 = vmatprep.mubr.f32.mxu0 %v5507_v9  ;;  %v454_v62 = vld [vmem:[%s5585_s17 + $0x390] sm:$0xff] }
 0x11c   : > { %4590 = vrcp.f32 %v2228_v0  ;;  %3797 = vmatmul.mubr.msk.f32.gmra.mrb[18].mxu1 %vm496_vm2, %v454_v62  ;;  %v456_v62 = vld [vmem:[%s5585_s17 + $0x3a0] sm:$0xff] }
 0x11d   : > { %v4577_v11 = vpop.eup %4576  ;;  %v3817_v8 = vmul.f32 -1.442695, %v986_v6  ;;  %v5949_v13 = vpop.f32.mrb[14].mxu0  ;;  %4592 = vtanh.f32 %v966_v1  ;;  %v402_v1 = vld [vmem:[%s5585_s17 + $0x1f0] sm:$0xff]  ;;  %1635 = vmatprep.mubr.f32.mxu1 %v5507_v9 }
 0x11e   : > { %v4579_v14 = vpop.eup %4578  ;;  %v2229_v15 = vadd.f32 1.0, %v4577_v11  ;;  %v991_v18 = vpop.f32.mrb[15].mxu0  ;;  %3743 = vmatmul.mubr.msk.f32.gmra.mrb[120].mxu0 %vm496_vm2, %v400_v7 }
 0x11f   : > { %4594 = vpow2.f32 %v3817_v8  ;;  %v992_v20 = vadd.f32 %v991_v18, %v5867_v50  ;;  %1311 = vmatprep.mubr.f32.mxu0 %v5507_v9  ;;  %v5957_v34 = vmul.f32 %v4579_v14, %v4575_v10  ;;  %v4581_v47 = vpop.eup %4580  ;;  %v984_v14 = vadd.f32 %v983_v63, %v5894_v2 }
 0x120   : > { %4596 = vrcp.f32 %v2229_v15 }
 0x121   : > { %v4583_v48 = vpop.eup %4582  ;;  %v3818_v51 = vmul.f32 -1.442695, %v992_v20  ;;  %v5963_v52 = vpop.f32.mrb[16].mxu0  ;;  %4598 = vtanh.f32 %v972_v16  ;;  %v455_v16 = vld [vmem:[%s5585_s17 + $0x398] sm:$0xff] }
 0x122   : > { %v4585_v53 = vpop.eup %4584  ;;  %v2230_v56 = vadd.f32 1.0, %v4583_v48  ;;  %v997_v60 = vpop.f32.mrb[17].mxu0  ;;  %3744 = vmatmul.mubr.msk.f32.gmra.mrb[122].mxu0 %vm496_vm2, %v401_v28  ;;  %3798 = vmatmul.mubr.msk.f32.gmra.mrb[20].mxu1 %vm496_vm2, %v455_v16  ;;  %v996_v16 = vadd.f32 %v5963_v52, %v5894_v2 }
 0x123   : > { %4600 = vpow2.f32 %v3818_v51  ;;  %v998_v0 = vadd.f32 %v997_v60, %v5867_v50  ;;  %1317 = vmatprep.mubr.f32.mxu0 %v5507_v9  ;;  %v5971_v3 = vmul.f32 %v4585_v53, %v4581_v47  ;;  %v4587_v5 = vpop.eup %4586  ;;  %1641 = vmatprep.mubr.f32.mxu1 %v5507_v9 }
 0x124   : > { %4602 = vrcp.f32 %v2230_v56 }
 0x125   : > { %v4589_v49 = vpop.eup %4588  ;;  %v3819_v6 = vmul.f32 -1.442695, %v998_v0  ;;  %v5975_v7 = vpop.f32.mrb[18].mxu0  ;;  %v4268_v10 = vpack.c.bf16 %v5971_v3, %v5957_v34  ;;  %4604 = vtanh.f32 %v978_v57  ;;  %v990_v57 = vadd.f32 %v5949_v13, %v5894_v2  ;;  %v420_v34 = vld [vmem:[%s5585_s17 + $0x280] sm:$0xff] }
 0x126   : > { %v4591_v11 = vpop.eup %4590  ;;  %v2231_v8 = vadd.f32 1.0, %v4589_v49  ;;  %v1003_v15 = vpop.f32.mrb[19].mxu0  ;;  %3745 = vmatmul.mubr.msk.f32.gmra.mrb[124].mxu0 %vm496_vm2, %v402_v1  ;;  %v404_v1 = vld [vmem:[%s5585_s17 + $0x200] sm:$0xff]  ;;  %3799 = vmatmul.mubr.msk.f32.gmra.mrb[22].mxu1 %vm496_vm2, %v456_v62 }
 0x127   : > { %4606 = vpow2.f32 %v3819_v6  ;;  %v1004_v18 = vadd.f32 %v1003_v15, %v5867_v50  ;;  %1323 = vmatprep.mubr.f32.mxu0 %v5507_v9  ;;  %v5985_v20 = vmul.f32 %v4591_v11, %v4587_v5  ;;  %v4593_v28 = vpop.eup %4592  ;;  %1647 = vmatprep.mubr.f32.mxu1 %v5507_v9 }
 0x128   : > { %4608 = vrcp.f32 %v2231_v8 }
 0x129   : > { %v4595_v47 = vpop.eup %4594  ;;  %v3820_v48 = vmul.f32 -1.442695, %v1004_v18  ;;  %v5991_v51 = vpop.f32.mrb[20].mxu0  ;;  %4610 = vtanh.f32 %v984_v14 }
 0x12a   : > { %v4597_v53 = vpop.eup %4596  ;;  %v2232_v56 = vadd.f32 1.0, %v4595_v47  ;;  %v1009_v60 = vpop.f32.mrb[21].mxu0  ;;  %3746 = vmatmul.mubr.msk.f32.gmra.mrb[126].mxu0 %vm496_vm2, %v403_v19  ;;  %v457_v19 = vld [vmem:[%s5585_s17 + $0x3a8] sm:$0xff] }
 0x12b   : > { %4612 = vpow2.f32 %v3820_v48  ;;  %v1010_v0 = vadd.f32 %v1009_v60, %v5867_v50  ;;  %1329 = vmatprep.mubr.f32.mxu0 %v5507_v9  ;;  %v6000_v5 = vmul.f32 %v4597_v53, %v4593_v28  ;;  %v4599_v49 = vpop.eup %4598  ;;  %v405_v47 = vld [vmem:[%s5585_s17 + $0x208] sm:$0xff]  ;;  %3800 = vmatmul.mubr.msk.f32.gmra.mrb[24].mxu1 %vm496_vm2, %v457_v19 }
 0x12c   : > { %4614 = vrcp.f32 %v2232_v56  ;;  %1653 = vmatprep.mubr.f32.mxu1 %v5507_v9 }
 0x12d   : > { %v4601_v13 = vpop.eup %4600  ;;  %v3821_v6 = vmul.f32 -1.442695, %v1010_v0  ;;  %v6004_v11 = vpop.f32.mrb[22].mxu0  ;;  %4616 = vtanh.f32 %v990_v57  ;;  %v1002_v0 = vadd.f32 %v5975_v7, %v5894_v2 }
 0x12e   : > { %v4603_v14 = vpop.eup %4602  ;;  %v2233_v15 = vadd.f32 1.0, %v4601_v13  ;;  %v1015_v18 = vpop.f32.mrb[23].mxu0  ;;  %3747 = vmatmul.mubr.msk.f32.gmra.mrb[128].mxu0 %vm496_vm2, %v404_v1 }
 0x12f   : > { %4618 = vpow2.f32 %v3821_v6  ;;  %v1016_v28 = vadd.f32 %v1015_v18, %v5867_v50  ;;  %1335 = vmatprep.mubr.f32.mxu0 %v5507_v9  ;;  %v6015_v48 = vmul.f32 %v4603_v14, %v4599_v49  ;;  %v4605_v53 = vpop.eup %4604  ;;  %v458_v49 = vld [vmem:[%s5585_s17 + $0x3b0] sm:$0xff] }
 0x130   : > { %4620 = vrcp.f32 %v2233_v15  ;;  %v406_v6 = vld [vmem:[%s5585_s17 + $0x210] sm:$0xff]  ;;  %3801 = vmatmul.mubr.msk.f32.gmra.mrb[26].mxu1 %vm496_vm2, %v458_v49 }
 0x131   : > { %v4607_v52 = vpop.eup %4606  ;;  %v3822_v56 = vmul.f32 -1.442695, %v1016_v28  ;;  %v6019_v57 = vpop.f32.mrb[24].mxu0  ;;  %4622 = vtanh.f32 %v996_v16  ;;  %1659 = vmatprep.mubr.f32.mxu1 %v5507_v9 }
 0x132   : > { %v4609_v60 = vpop.eup %4608  ;;  %v2234_v62 = vadd.f32 1.0, %v4607_v52  ;;  %v1021_v1 = vpop.f32.mrb[25].mxu0  ;;  %3748 = vmatmul.mubr.msk.f32.gmra.mrb[130].mxu0 %vm496_vm2, %v405_v47 }
 0x133   : > { %4624 = vpow2.f32 %v3822_v56  ;;  %v1022_v13 = vadd.f32 %v1021_v1, %v5867_v50  ;;  %1341 = vmatprep.mubr.f32.mxu0 %v5507_v9  ;;  %v6028_v14 = vmul.f32 %v4609_v60, %v4605_v53  ;;  %v4611_v15 = vpop.eup %4610  ;;  %v1008_v53 = vadd.f32 %v5991_v51, %v5894_v2  ;;  %v459_v56 = vld [vmem:[%s5585_s17 + $0x3b8] sm:$0xff] }
 0x134   : > { %4626 = vrcp.f32 %v2234_v62  ;;  %v407_v62 = vld [vmem:[%s5585_s17 + $0x218] sm:$0xff]  ;;  %3802 = vmatmul.mubr.msk.f32.gmra.mrb[28].mxu1 %vm496_vm2, %v459_v56 }
 0x135   : > { %v4613_v7 = vpop.eup %4612  ;;  %v3823_v16 = vmul.f32 -1.442695, %v1022_v13  ;;  %v6032_v18 = vpop.f32.mrb[26].mxu0  ;;  %4628 = vtanh.f32 %v1002_v0  ;;  %1665 = vmatprep.mubr.f32.mxu1 %v5507_v9 }
 0x136   : > { %v4615_v28 = vpop.eup %4614  ;;  %v2235_v47 = vadd.f32 1.0, %v4613_v7  ;;  %v1027_v52 = vpop.f32.mrb[27].mxu0  ;;  %3749 = vmatmul.mubr.msk.f32.gmra.mrb[132].mxu0 %vm496_vm2, %v406_v6  ;;  %v1026_v17 = vadd.f32 %v6032_v18, %v5894_v2 }
 0x137   : > { %4630 = vpow2.f32 %v3823_v16  ;;  %v1028_v60 = vadd.f32 %v1027_v52, %v5867_v50  ;;  %1347 = vmatprep.mubr.f32.mxu0 %v5507_v9  ;;  %v6043_v1 = vmul.f32 %v4615_v28, %v4611_v15  ;;  %v4617_v0 = vpop.eup %4616  ;;  %v1014_v16 = vadd.f32 %v6004_v11, %v5894_v2  ;;  %v460_v15 = vld [vmem:[%s5585_s17 + $0x3c0] sm:$0xff] }
 0x138   : > { %4632 = vrcp.f32 %v2235_v47  ;;  %v408_v47 = vld [vmem:[%s5585_s17 + $0x220] sm:$0xff]  ;;  %3803 = vmatmul.mubr.msk.f32.gmra.mrb[30].mxu1 %vm496_vm2, %v460_v15 }
 0x139   : > { %v4619_v51 = vpop.eup %4618  ;;  %v3824_v49 = vmul.f32 -1.442695, %v1028_v60  ;;  %v6047_v13 = vpop.f32.mrb[28].mxu0  ;;  %4634 = vtanh.f32 %v1008_v53  ;;  %1671 = vmatprep.mubr.f32.mxu1 %v5507_v9 }
 0x13a   : > { %v4621_v6 = vpop.eup %4620  ;;  %v2236_v7 = vadd.f32 1.0, %v4619_v51  ;;  %v1033_v52 = vpop.f32.mrb[29].mxu0  ;;  %3750 = vmatmul.mubr.msk.f32.gmra.mrb[134].mxu0 %vm496_vm2, %v407_v62 }
 0x13b   : > { %4636 = vpow2.f32 %v3824_v49  ;;  %v1034_v28 = vadd.f32 %v1033_v52, %v5867_v50  ;;  %1353 = vmatprep.mubr.f32.mxu0 %v5507_v9  ;;  %v6056_v56 = vmul.f32 %v4621_v6, %v4617_v0  ;;  %v4623_v53 = vpop.eup %4622  ;;  %v1020_v0 = vadd.f32 %v6019_v57, %v5894_v2 }
 0x13c   : > { %4638 = vrcp.f32 %v2236_v7  ;;  %v461_v7 = vld [vmem:[%s5585_s17 + $0x3c8] sm:$0xff] }
 0x13d   : > { %v4625_v11 = vpop.eup %4624  ;;  %v3825_v60 = vmul.f32 -1.442695, %v1034_v28  ;;  %v6060_v62 = vpop.f32.mrb[30].mxu0  ;;  %4640 = vtanh.f32 %v1014_v16  ;;  %v409_v28 = vld [vmem:[%s5585_s17 + $0x228] sm:$0xff]  ;;  %3804 = vmatmul.mubr.msk.f32.gmra.mrb[32].mxu1 %vm496_vm2, %v461_v7 }
 0x13e   : > { %v4627_v49 = vpop.eup %4626  ;;  %v2237_v52 = vadd.f32 1.0, %v4625_v11  ;;  %v1039_v6 = vpop.f32.mrb[31].mxu0  ;;  %3751 = vmatmul.mubr.msk.f32.gmra.mrb[136].mxu0 %vm496_vm2, %v408_v47  ;;  %1677 = vmatprep.mubr.f32.mxu1 %v5507_v9  ;;  %v1038_v45 = vadd.f32 %v6060_v62, %v5894_v2 }
 0x13f   : > { %4642 = vpow2.f32 %v3825_v60  ;;  %v1040_v15 = vadd.f32 %v1039_v6, %v5867_v50  ;;  %1359 = vmatprep.mubr.f32.mxu0 %v5507_v9  ;;  %v6071_v63 = vmul.f32 %v4627_v49, %v4623_v53  ;;  %v4629_v16 = vpop.eup %4628  ;;  %v462_v53 = vld [vmem:[%s5585_s17 + $0x3d0] sm:$0xff] }
 0x140   : > { %4644 = vrcp.f32 %v2237_v52  ;;  %v410_v52 = vld [vmem:[%s5585_s17 + $0x230] sm:$0xff] }
 0x141   : > { %v4631_v57 = vpop.eup %4630  ;;  %v3826_v11 = vmul.f32 -1.442695, %v1040_v15  ;;  %v6075_v47 = vpop.f32.mrb[32].mxu0  ;;  %4646 = vtanh.f32 %v1020_v0  ;;  %3805 = vmatmul.mubr.msk.f32.gmra.mrb[34].mxu1 %vm496_vm2, %v462_v53 }
 0x142   : > { %v4633_v60 = vpop.eup %4632  ;;  %v2238_v6 = vadd.f32 1.0, %v4631_v57  ;;  %v1045_v58 = vpop.f32.mrb[33].mxu0  ;;  %3752 = vmatmul.mubr.msk.f32.gmra.mrb[138].mxu0 %vm496_vm2, %v409_v28  ;;  %1683 = vmatprep.mubr.f32.mxu1 %v5507_v9 }
 0x143   : > { %4648 = vpow2.f32 %v3826_v11  ;;  %v1046_v49 = vadd.f32 %v1045_v58, %v5867_v50  ;;  %1365 = vmatprep.mubr.f32.mxu0 %v5507_v9  ;;  %v6084_v7 = vmul.f32 %v4633_v60, %v4629_v16  ;;  %v4635_v0 = vpop.eup %4634  ;;  %v1032_v16 = vadd.f32 %v6047_v13, %v5894_v2 }
 0x144   : > { %4650 = vrcp.f32 %v2238_v6  ;;  %v463_v6 = vld [vmem:[%s5585_s17 + $0x3d8] sm:$0xff] }
 0x145   : > { %v4637_v18 = vpop.eup %4636  ;;  %v3827_v15 = vmul.f32 -1.442695, %v1046_v49  ;;  %v6088_v28 = vpop.f32.mrb[34].mxu0  ;;  %4652 = vtanh.f32 %v1026_v17  ;;  %v411_v49 = vld [vmem:[%s5585_s17 + $0x238] sm:$0xff]  ;;  %3806 = vmatmul.mubr.msk.f32.gmra.mrb[36].mxu1 %vm496_vm2, %v463_v6 }
 0x146   : > { %v4639_v57 = vpop.eup %4638  ;;  %v2239_v11 = vadd.f32 1.0, %v4637_v18  ;;  %v1051_v60 = vpop.f32.mrb[35].mxu0  ;;  %3753 = vmatmul.mubr.msk.f32.gmra.mrb[140].mxu0 %vm496_vm2, %v410_v52  ;;  %1689 = vmatprep.mubr.f32.mxu1 %v5507_v9 }
 0x147   : > { %4654 = vpow2.f32 %v3827_v15  ;;  %v1052_v53 = vadd.f32 %v1051_v60, %v5867_v50  ;;  %1371 = vmatprep.mubr.f32.mxu0 %v5507_v9  ;;  %v6099_v46 = vmul.f32 %v4639_v57, %v4635_v0  ;;  %v4641_v17 = vpop.eup %4640  ;;  %v464_v0 = vld [vmem:[%s5585_s17 + $0x3e0] sm:$0xff] }
 0x148   : > { %4656 = vrcp.f32 %v2239_v11  ;;  %v412_v11 = vld [vmem:[%s5585_s17 + $0x240] sm:$0xff] }
 0x149   : > { %v4643_v13 = vpop.eup %4642  ;;  %v3828_v18 = vmul.f32 -1.442695, %v1052_v53  ;;  %v6103_v52 = vpop.f32.mrb[36].mxu0  ;;  %4658 = vtanh.f32 %v1032_v16  ;;  %3807 = vmatmul.mubr.msk.f32.gmra.mrb[38].mxu1 %vm496_vm2, %v464_v0  ;;  %v465_v0 = vld [vmem:[%s5585_s17 + $0x3e8] sm:$0xff] }
 0x14a   : > { %v4645_v15 = vpop.eup %4644  ;;  %v2240_v60 = vadd.f32 1.0, %v4643_v13  ;;  %v1057_v41 = vpop.f32.mrb[37].mxu0  ;;  %3754 = vmatmul.mubr.msk.f32.gmra.mrb[142].mxu0 %vm496_vm2, %v411_v49  ;;  %1695 = vmatprep.mubr.f32.mxu1 %v5507_v9 }
 0x14b   : > { %4660 = vpow2.f32 %v3828_v18  ;;  %v1058_v57 = vadd.f32 %v1057_v41, %v5867_v50  ;;  %1377 = vmatprep.mubr.f32.mxu0 %v5507_v9  ;;  %v6112_v6 = vmul.f32 %v4645_v15, %v4641_v17  ;;  %v4647_v16 = vpop.eup %4646  ;;  %v1044_v17 = vadd.f32 %v6075_v47, %v5894_v2 }
 0x14c   : > { %4662 = vrcp.f32 %v2240_v60 }
 0x14d   : > { %v4649_v62 = vpop.eup %4648  ;;  %v3829_v53 = vmul.f32 -1.442695, %v1058_v57  ;;  %v1061_v49 = vpop.f32.mrb[38].mxu0  ;;  %4664 = vtanh.f32 %v1038_v45  ;;  %v413_v57 = vld [vmem:[%s5585_s17 + $0x248] sm:$0xff]  ;;  %3808 = vmatmul.mubr.msk.f32.gmra.mrb[40].mxu1 %vm496_vm2, %v465_v0 }
 0x14e   : > { %v4651_v41 = vpop.eup %4650  ;;  %v2241_v18 = vadd.f32 1.0, %v4649_v62  ;;  %v1063_v15 = vpop.f32.mrb[39].mxu0  ;;  %3755 = vmatmul.mubr.msk.f32.gmra.mrb[144].mxu0 %vm496_vm2, %v412_v11  ;;  %1701 = vmatprep.mubr.f32.mxu1 %v5507_v9 }
 0x14f   : > { %4666 = vpow2.f32 %v3829_v53  ;;  %v1064_v60 = vadd.f32 %v1063_v15, %v5867_v50  ;;  %1383 = vmatprep.mubr.f32.mxu0 %v5507_v9  ;;  %v6125_v36 = vmul.f32 %v4651_v41, %v4647_v16  ;;  %v4653_v45 = vpop.eup %4652  ;;  %v1050_v15 = vadd.f32 %v6088_v28, %v5894_v2  ;;  %v466_v16 = vld [vmem:[%s5585_s17 + $0x3f0] sm:$0xff] }
 0x150   : > { %4668 = vrcp.f32 %v2241_v18  ;;  %v414_v18 = vld [vmem:[%s5585_s17 + $0x250] sm:$0xff] }
 0x151   : > { %v4655_v47 = vpop.eup %4654  ;;  %v3830_v62 = vmul.f32 -1.442695, %v1064_v60  ;;  %v1067_v11 = vpop.f32.mrb[40].mxu0  ;;  %4670 = vtanh.f32 %v1044_v17  ;;  %3809 = vmatmul.mubr.msk.f32.gmra.mrb[42].mxu1 %vm496_vm2, %v466_v16  ;;  %v467_v16 = vld [vmem:[%s5585_s17 + $0x3f8] sm:$0xff] }
 0x152   : > { %v4657_v35 = vpop.eup %4656  ;;  %v2242_v53 = vadd.f32 1.0, %v4655_v47  ;;  %v1069_v30 = vpop.f32.mrb[41].mxu0  ;;  %3756 = vmatmul.mubr.msk.f32.gmra.mrb[146].mxu0 %vm496_vm2, %v413_v57  ;;  %1707 = vmatprep.mubr.f32.mxu1 %v5507_v9 }
 0x153   : > { %4672 = vpow2.f32 %v3830_v62  ;;  %v1070_v41 = vadd.f32 %v1069_v30, %v5867_v50  ;;  %1389 = vmatprep.mubr.f32.mxu0 %v5507_v9  ;;  %v6136_v0 = vmul.f32 %v4657_v35, %v4653_v45  ;;  %v4659_v17 = vpop.eup %4658  ;;  %v1056_v35 = vadd.f32 %v6103_v52, %v5894_v2 }
 0x154   : > { %4674 = vrcp.f32 %v2242_v53 }
 0x155   : > { %v4661_v28 = vpop.eup %4660  ;;  %v3831_v60 = vmul.f32 -1.442695, %v1070_v41  ;;  %v1073_v57 = vpop.f32.mrb[42].mxu0  ;;  %4676 = vtanh.f32 %v1050_v15  ;;  %v415_v41 = vld [vmem:[%s5585_s17 + $0x258] sm:$0xff]  ;;  %3810 = vmatmul.mubr.msk.f32.gmra.mrb[44].mxu1 %vm496_vm2, %v467_v16 }
 0x156   : > { %v4663_v30 = vpop.eup %4662  ;;  %v2243_v62 = vadd.f32 1.0, %v4661_v28  ;;  %v1075_v45 = vpop.f32.mrb[43].mxu0  ;;  %3757 = vmatmul.mubr.msk.f32.gmra.mrb[148].mxu0 %vm496_vm2, %v414_v18 }
 0x157   : > { %4678 = vpow2.f32 %v3831_v60  ;;  %v1076_v53 = vadd.f32 %v1075_v45, %v5867_v50  ;;  %1395 = vmatprep.mubr.f32.mxu0 %v5507_v9  ;;  %v6149_v24 = vmul.f32 %v4663_v30, %v4659_v17  ;;  %v4665_v15 = vpop.eup %4664  ;;  %v1062_v60 = vadd.f32 %v1061_v49, %v5894_v2  ;;  %v416_v30 = vld [vmem:[%s5585_s17 + $0x260] sm:$0xff] }
 0x158   : > { %4680 = vrcp.f32 %v2243_v62 }
 0x159   : > { %v4667_v28 = vpop.eup %4666  ;;  %v3832_v29 = vmul.f32 -1.442695, %v1076_v53  ;;  %v1079_v52 = vpop.f32.mrb[44].mxu0  ;;  %4682 = vtanh.f32 %v1056_v35 }
 0x15a   : > { %v4669_v47 = vpop.eup %4668  ;;  %v2244_v18 = vadd.f32 1.0, %v4667_v28  ;;  %v1081_v13 = vpop.f32.mrb[45].mxu0  ;;  %3758 = vmatmul.mubr.msk.f32.gmra.mrb[150].mxu0 %vm496_vm2, %v415_v41  ;;  %v1080_v8 = vadd.f32 %v1079_v52, %v5894_v2 }
 0x15b   : > { %4684 = vpow2.f32 %v3832_v29  ;;  %v1082_v17 = vadd.f32 %v1081_v13, %v5867_v50  ;;  %1401 = vmatprep.mubr.f32.mxu0 %v5507_v9  ;;  %v6157_v45 = vmul.f32 %v4669_v47, %v4665_v15  ;;  %v4671_v62 = vpop.eup %4670  ;;  %v1068_v29 = vadd.f32 %v1067_v11, %v5894_v2  ;;  %v417_v15 = vld [vmem:[%s5585_s17 + $0x268] sm:$0xff] }
 0x15c   : > { %4686 = vrcp.f32 %v2244_v18  ;;  %v1074_v11 = vadd.f32 %v1073_v57, %v5894_v2 }
 0x15d   : > { %v4673_v16 = vpop.eup %4672  ;;  %v3833_v53 = vmul.f32 -1.442695, %v1082_v17  ;;  %v1085_v35 = vpop.f32.mrb[46].mxu0  ;;  %4688 = vtanh.f32 %v1062_v60 }
 0x15e   : > { %v4675_v28 = vpop.eup %4674  ;;  %v2245_v41 = vadd.f32 1.0, %v4673_v16  ;;  %v1087_v13 = vpop.f32.mrb[47].mxu0  ;;  %3759 = vmatmul.mubr.msk.f32.gmra.mrb[152].mxu0 %vm496_vm2, %v416_v30 }
 0x15f   : > { %4690 = vpow2.f32 %v3833_v53  ;;  %v1088_v47 = vadd.f32 %v1087_v13, %v5867_v50  ;;  %1407 = vmatprep.mubr.f32.mxu0 %v5507_v9  ;;  %v2626_v18 = vmul.f32 %v4675_v28, %v4671_v62  ;;  %v4677_v17 = vpop.eup %4676  ;;  %v418_v53 = vld [vmem:[%s5585_s17 + $0x270] sm:$0xff] }
 0x160   : > { %4692 = vrcp.f32 %v2245_v41 }
 0x161   : > { %v4679_v58 = vpop.eup %4678  ;;  %v3834_v49 = vmul.f32 -1.442695, %v1088_v47  ;;  %v1091_v51 = vpop.f32.mrb[48].mxu0  ;;  %4694 = vtanh.f32 %v1068_v29 }
 0x162   : > { %v4681_v60 = vpop.eup %4680  ;;  %v2246_v16 = vadd.f32 1.0, %v4679_v58  ;;  %v1093_v19 = vpop.f32.mrb[49].mxu0  ;;  %3760 = vmatmul.mubr.msk.f32.gmra.mrb[154].mxu0 %vm496_vm2, %v417_v15 }
 0x163   : > { %4696 = vpow2.f32 %v3834_v49  ;;  %v1094_v30 = vadd.f32 %v1093_v19, %v5867_v50  ;;  %1413 = vmatprep.mubr.f32.mxu0 %v5507_v9  ;;  %v2627_v62 = vmul.f32 %v4681_v60, %v4677_v17  ;;  %v4683_v28 = vpop.eup %4682  ;;  %v419_v49 = vld [vmem:[%s5585_s17 + $0x278] sm:$0xff] }
 0x164   : > { %4698 = vrcp.f32 %v2246_v16 }
 0x165   : > { %v4685_v41 = vpop.eup %4684  ;;  %v3835_v13 = vmul.f32 -1.442695, %v1094_v30  ;;  %v1097_v47 = vpop.f32.mrb[50].mxu0  ;;  %v4266_v29 = vpack.c.bf16 %v2627_v62, %v2626_v18  ;;  %4700 = vtanh.f32 %v1074_v11  ;;  %v6179_v18 = vld [vmem:[%s7181_s3] sm:$0x1]  ;;  %v1086_v62 = vadd.f32 %v1085_v35, %v5894_v2 }
 0x166   : > { %v4687_v58 = vpop.eup %4686  ;;  %v2247_v57 = vadd.f32 1.0, %v4685_v41  ;;  %v1099_v15 = vpop.f32.mrb[51].mxu0  ;;  %3761 = vmatmul.mubr.msk.f32.gmra.mrb[156].mxu0 %vm496_vm2, %v418_v53  ;;  %3978 = vmatprep.mubr.f32.mxu1 %v6179_v18 }
 0x167   : > { %4702 = vpow2.f32 %v3835_v13  ;;  %v1100_v19 = vadd.f32 %v1099_v15, %v5867_v50  ;;  %4267 = vmatprep.subr.bf16.mxu1 %v4266_v29  ;;  %1419 = vmatprep.mubr.f32.mxu0 %v5507_v9  ;;  %v2628_v17 = vmul.f32 %v4687_v58, %v4683_v28  ;;  %v4689_v60 = vpop.eup %4688  ;;  %v1092_v15 = vadd.f32 %v1091_v51, %v5894_v2 }
 0x168   : > { %4704 = vrcp.f32 %v2247_v57  ;;  %4269 = vmatpush3.bf16.xpose.msra.mxu1 %v4268_v10 }
 0x169   : > { %v4691_v52 = vpop.eup %4690  ;;  %v3836_v16 = vmul.f32 -1.442695, %v1100_v19  ;;  %v1103_v11 = vpop.f32.mrb[52].mxu0  ;;  %4706 = vtanh.f32 %v1080_v8 }
 0x16a   : > { %v4693_v30 = vpop.eup %4692  ;;  %v2248_v53 = vadd.f32 1.0, %v4691_v52  ;;  %v1105_v28 = vpop.f32.mrb[53].mxu0  ;;  %3762 = vmatmul.mubr.msk.f32.gmra.mrb[158].mxu0 %vm496_vm2, %v419_v49 }
 0x16b   : > { %4708 = vpow2.f32 %v3836_v16  ;;  %v1106_v41 = vadd.f32 %v1105_v28, %v5867_v50  ;;  %1425 = vmatprep.mubr.f32.mxu0 %v5507_v9  ;;  %v2629_v3 = vmul.f32 %v4693_v30, %v4689_v60  ;;  %v4695_v10 = vpop.eup %4694  ;;  %v421_v60 = vld [vmem:[%s5585_s17 + $0x288] sm:$0xff] }
 0x16c   : > { %4710 = vrcp.f32 %v2248_v53 }
 0x16d   : > { %v4697_v13 = vpop.eup %4696  ;;  %v3837_v29 = vmul.f32 -1.442695, %v1106_v41  ;;  %v1109_v58 = vpop.f32.mrb[54].mxu0  ;;  %v4270_v8 = vpack.c.bf16 %v2629_v3, %v2628_v17  ;;  %4712 = vtanh.f32 %v1086_v62  ;;  %v7240_v17 = vpack.c.bf16 %v6000_v5, %v5985_v20 }
 0x16e   : > { %v4699_v57 = vpop.eup %4698  ;;  %v2249_v35 = vadd.f32 1.0, %v4697_v13  ;;  %v1111_v19 = vpop.f32.mrb[55].mxu0  ;;  %3763 = vmatmul.mubr.msk.f32.gmra.mrb[160].mxu0 %vm496_vm2, %v420_v34  ;;  %v1098_v41 = vadd.f32 %v1097_v47, %v5894_v2 }
 0x16f   : > { %4714 = vpow2.f32 %v3837_v29  ;;  %v1112_v49 = vadd.f32 %v1111_v19, %v5867_v50  ;;  %4271 = vmatprep.subr.bf16.mxu1 %v4270_v8  ;;  %1431 = vmatprep.mubr.f32.mxu0 %v5507_v9  ;;  %v2630_v52 = vmul.f32 %v4699_v57, %v4695_v10  ;;  %v4701_v16 = vpop.eup %4700  ;;  %v422_v10 = vld [vmem:[%s5585_s17 + $0x290] sm:$0xff] }
 0x170   : > { %4716 = vrcp.f32 %v2249_v35  ;;  %4273 = vmatpush3.bf16.xpose.msra.mxu1 %v7240_v17 }
 0x171   : > { %v4703_v30 = vpop.eup %4702  ;;  %v3838_v51 = vmul.f32 -1.442695, %v1112_v49  ;;  %v1115_v53 = vpop.f32.mrb[56].mxu0  ;;  %4718 = vtanh.f32 %v1092_v15  ;;  %v1104_v15 = vadd.f32 %v1103_v11, %v5894_v2 }
 0x172   : > { %v4705_v62 = vpop.eup %4704  ;;  %v2250_v28 = vadd.f32 1.0, %v4703_v30  ;;  %v1117_v34 = vpop.f32.mrb[57].mxu0  ;;  %3764 = vmatmul.mubr.msk.f32.gmra.mrb[162].mxu0 %vm496_vm2, %v421_v60  ;;  %v423_v60 = vld [vmem:[%s5585_s17 + $0x298] sm:$0xff] }
 0x173   : > { %4720 = vpow2.f32 %v3838_v51  ;;  %v1118_v3 = vadd.f32 %v1117_v34, %v5867_v50  ;;  %1437 = vmatprep.mubr.f32.mxu0 %v5507_v9  ;;  %v2631_v13 = vmul.f32 %v4705_v62, %v4701_v16  ;;  %v4707_v20 = vpop.eup %4706 }
 0x174   : > { %4722 = vrcp.f32 %v2250_v28 }
 0x175   : > { %v4709_v5 = vpop.eup %4708  ;;  %v3839_v29 = vmul.f32 -1.442695, %v1118_v3  ;;  %v1121_v8 = vpop.f32.mrb[58].mxu0  ;;  %v4274_v57 = vpack.c.bf16 %v2631_v13, %v2630_v52  ;;  %4724 = vtanh.f32 %v1098_v41  ;;  %v7241_v52 = vpack.c.bf16 %v6028_v14, %v6015_v48 }
 0x176   : > { %v4711_v35 = vpop.eup %4710  ;;  %v2251_v47 = vadd.f32 1.0, %v4709_v5  ;;  %v1123_v19 = vpop.f32.mrb[59].mxu0  ;;  %3765 = vmatmul.mubr.msk.f32.gmra.mrb[164].mxu0 %vm496_vm2, %v422_v10  ;;  %v1110_v41 = vadd.f32 %v1109_v58, %v5894_v2  ;;  %v424_v10 = vld [vmem:[%s5585_s17 + $0x2a0] sm:$0xff] }
 0x177   : > { %4726 = vpow2.f32 %v3839_v29  ;;  %v1124_v49 = vadd.f32 %v1123_v19, %v5867_v50  ;;  %4275 = vmatprep.subr.bf16.mxu1 %v4274_v57  ;;  %1443 = vmatprep.mubr.f32.mxu0 %v5507_v9  ;;  %v2632_v16 = vmul.f32 %v4711_v35, %v4707_v20  ;;  %v4713_v17 = vpop.eup %4712  ;;  %v1116_v35 = vadd.f32 %v1115_v53, %v5894_v2  ;;  %v425_v19 = vld [vmem:[%s5585_s17 + $0x2a8] sm:$0xff] }
 0x178   : > { %4728 = vrcp.f32 %v2251_v47  ;;  %4277 = vmatpush3.bf16.xpose.msra.mxu1 %v7241_v52 }
 0x179   : > { %v4715_v30 = vpop.eup %4714  ;;  %v3840_v11 = vmul.f32 -1.442695, %v1124_v49  ;;  %v1127_v51 = vpop.f32.mrb[60].mxu0  ;;  %4730 = vtanh.f32 %v1104_v15 }
 0x17a   : > { %v4717_v62 = vpop.eup %4716  ;;  %v2252_v28 = vadd.f32 1.0, %v4715_v30  ;;  %v1129_v34 = vpop.f32.mrb[61].mxu0  ;;  %3766 = vmatmul.mubr.msk.f32.gmra.mrb[166].mxu0 %vm496_vm2, %v423_v60 }
 0x17b   : > { %4732 = vpow2.f32 %v3840_v11  ;;  %v1130_v3 = vadd.f32 %v1129_v34, %v5867_v50  ;;  %1449 = vmatprep.mubr.f32.mxu0 %v5507_v9  ;;  %v2633_v13 = vmul.f32 %v4717_v62, %v4713_v17  ;;  %v4719_v48 = vpop.eup %4718  ;;  %v1122_v62 = vadd.f32 %v1121_v8, %v5894_v2  ;;  %v426_v34 = vld [vmem:[%s5585_s17 + $0x2b0] sm:$0xff] }
 0x17c   : > { %4734 = vrcp.f32 %v2252_v28 }
 0x17d   : > { %v4721_v14 = vpop.eup %4720  ;;  %v3841_v20 = vmul.f32 -1.442695, %v1130_v3  ;;  %v1133_v5 = vpop.f32.mrb[62].mxu0  ;;  %v4278_v29 = vpack.c.bf16 %v2633_v13, %v2632_v16  ;;  %4736 = vtanh.f32 %v1110_v41  ;;  %v7242_v16 = vpack.c.bf16 %v6056_v56, %v6043_v1 }
 0x17e   : > { %v4723_v57 = vpop.eup %4722  ;;  %v2253_v58 = vadd.f32 1.0, %v4721_v14  ;;  %v1135_v47 = vpop.f32.mrb[63].mxu0  ;;  %3767 = vmatmul.mubr.msk.f32.gmra.mrb[168].mxu0 %vm496_vm2, %v424_v10 }
 0x17f   : > { %4738 = vpow2.f32 %v3841_v20  ;;  %v1136_v15 = vadd.f32 %v1135_v47, %v5867_v50  ;;  %4279 = vmatprep.subr.bf16.mxu1 %v4278_v29  ;;  %1455 = vmatprep.mubr.f32.mxu0 %v5507_v9  ;;  %v2634_v49 = vmul.f32 %v4723_v57, %v4719_v48  ;;  %v4725_v60 = vpop.eup %4724  ;;  %v1128_v20 = vadd.f32 %v1127_v51, %v5894_v2 }
 0x180   : > { %4740 = vrcp.f32 %v2253_v58  ;;  %4281 = vmatpush3.bf16.xpose.msra.mxu1 %v7242_v16  ;;  %v427_v58 = vld [vmem:[%s5585_s17 + $0x2b8] sm:$0xff] }
 0x181   : > { %v4727_v17 = vpop.eup %4726  ;;  %v3842_v53 = vmul.f32 -1.442695, %v1136_v15  ;;  %v1139_v52 = vpop.f32.mrb[64].mxu0  ;;  %4742 = vtanh.f32 %v1116_v35  ;;  %v7243_v15 = vpack.c.bf16 %v6084_v7, %v6071_v63 }
 0x182   : > { %v4729_v30 = vpop.eup %4728  ;;  %v2254_v11 = vadd.f32 1.0, %v4727_v17  ;;  %v1141_v28 = vpop.f32.mrb[65].mxu0  ;;  %3768 = vmatmul.mubr.msk.f32.gmra.mrb[170].mxu0 %vm496_vm2, %v425_v19  ;;  %v1134_v17 = vadd.f32 %v1133_v5, %v5894_v2 }
 0x183   : > { %4744 = vpow2.f32 %v3842_v53  ;;  %v1142_v41 = vadd.f32 %v1141_v28, %v5867_v50  ;;  %1461 = vmatprep.mubr.f32.mxu0 %v5507_v9  ;;  %v2635_v3 = vmul.f32 %v4729_v30, %v4725_v60  ;;  %v4731_v1 = vpop.eup %4730 }
 0x184   : > { %4746 = vrcp.f32 %v2254_v11  ;;  %v428_v11 = vld [vmem:[%s5585_s17 + $0x2c0] sm:$0xff] }
 0x185   : > { %v4733_v56 = vpop.eup %4732  ;;  %v3843_v10 = vmul.f32 -1.442695, %v1142_v41  ;;  %v1145_v13 = vpop.f32.mrb[66].mxu0  ;;  %v4282_v48 = vpack.c.bf16 %v2635_v3, %v2634_v49  ;;  %4748 = vtanh.f32 %v1122_v62 }
 0x186   : > { %v4735_v14 = vpop.eup %4734  ;;  %v2255_v8 = vadd.f32 1.0, %v4733_v56  ;;  %v1147_v29 = vpop.f32.mrb[67].mxu0  ;;  %3769 = vmatmul.mubr.msk.f32.gmra.mrb[172].mxu0 %vm496_vm2, %v426_v34 }
 0x187   : > { %4750 = vpow2.f32 %v3843_v10  ;;  %v1148_v57 = vadd.f32 %v1147_v29, %v5867_v50  ;;  %4283 = vmatprep.subr.bf16.mxu1 %v4282_v48  ;;  %1467 = vmatprep.mubr.f32.mxu0 %v5507_v9  ;;  %v2636_v35 = vmul.f32 %v4735_v14, %v4731_v1  ;;  %v4737_v47 = vpop.eup %4736  ;;  %v1140_v1 = vadd.f32 %v1139_v52, %v5894_v2  ;;  %v429_v48 = vld [vmem:[%s5585_s17 + $0x2c8] sm:$0xff] }
 0x188   : > { %4752 = vrcp.f32 %v2255_v8  ;;  %4285 = vmatpush3.bf16.xpose.msra.mxu1 %v7243_v15 }
 0x189   : > { %v4739_v19 = vpop.eup %4738  ;;  %v3844_v51 = vmul.f32 -1.442695, %v1148_v57  ;;  %v1151_v49 = vpop.f32.mrb[68].mxu0  ;;  %4754 = vtanh.f32 %v1128_v20  ;;  %v7244_v20 = vpack.c.bf16 %v6112_v6, %v6099_v46 }
 0x18a   : > { %v4741_v60 = vpop.eup %4740  ;;  %v2256_v16 = vadd.f32 1.0, %v4739_v19  ;;  %v1153_v53 = vpop.f32.mrb[69].mxu0  ;;  %3770 = vmatmul.mubr.msk.f32.gmra.mrb[174].mxu0 %vm496_vm2, %v427_v58 }
 0x18b   : > { %4756 = vpow2.f32 %v3844_v51  ;;  %v1154_v30 = vadd.f32 %v1153_v53, %v5867_v50  ;;  %1473 = vmatprep.mubr.f32.mxu0 %v5507_v9  ;;  %v2637_v62 = vmul.f32 %v4741_v60, %v4737_v47  ;;  %v4743_v63 = vpop.eup %4742  ;;  %v1146_v47 = vadd.f32 %v1145_v13, %v5894_v2  ;;  %v430_v51 = vld [vmem:[%s5585_s17 + $0x2d0] sm:$0xff] }
 0x18c   : > { %4758 = vrcp.f32 %v2256_v16 }
 0x18d   : > { %v4745_v7 = vpop.eup %4744  ;;  %v3845_v28 = vmul.f32 -1.442695, %v1154_v30  ;;  %v1157_v41 = vpop.f32.mrb[70].mxu0  ;;  %v4286_v34 = vpack.c.bf16 %v2637_v62, %v2636_v35  ;;  %4760 = vtanh.f32 %v1134_v17 }
 0x18e   : > { %v4747_v3 = vpop.eup %4746  ;;  %v2257_v5 = vadd.f32 1.0, %v4745_v7  ;;  %v1159_v56 = vpop.f32.mrb[71].mxu0  ;;  %3771 = vmatmul.mubr.msk.f32.gmra.mrb[176].mxu0 %vm496_vm2, %v428_v11  ;;  %v1152_v11 = vadd.f32 %v1151_v49, %v5894_v2  ;;  %v431_v7 = vld [vmem:[%s5585_s17 + $0x2d8] sm:$0xff] }
 0x18f   : > { %4762 = vpow2.f32 %v3845_v28  ;;  %v1160_v10 = vadd.f32 %v1159_v56, %v5867_v50  ;;  %4287 = vmatprep.subr.bf16.mxu1 %v4286_v34  ;;  %1479 = vmatprep.mubr.f32.mxu0 %v5507_v9  ;;  %v2638_v14 = vmul.f32 %v4747_v3, %v4743_v63  ;;  %v4749_v8 = vpop.eup %4748  ;;  %v7245_v3 = vpack.c.bf16 %v6136_v0, %v6125_v36 }
 0x190   : > { %4764 = vrcp.f32 %v2257_v5  ;;  %4289 = vmatpush3.bf16.xpose.msra.mxu1 %v7244_v20  ;;  %v432_v20 = vld [vmem:[%s5585_s17 + $0x2e0] sm:$0xff] }
 0x191   : > { %v4751_v29 = vpop.eup %4750  ;;  %v3846_v52 = vmul.f32 -1.442695, %v1160_v10  ;;  %v1163_v57 = vpop.f32.mrb[72].mxu0  ;;  %4766 = vtanh.f32 %v1140_v1 }
 0x192   : > { %v4753_v58 = vpop.eup %4752  ;;  %v2258_v35 = vadd.f32 1.0, %v4751_v29  ;;  %v1165_v15 = vpop.f32.mrb[73].mxu0  ;;  %3772 = vmatmul.mubr.msk.f32.gmra.mrb[178].mxu0 %vm496_vm2, %v429_v48  ;;  %v1158_v48 = vadd.f32 %v1157_v41, %v5894_v2 }
 0x193   : > { %4768 = vpow2.f32 %v3846_v52  ;;  %v1166_v19 = vadd.f32 %v1165_v15, %v5867_v50  ;;  %1485 = vmatprep.mubr.f32.mxu0 %v5507_v9  ;;  %v2639_v60 = vmul.f32 %v4753_v58, %v4749_v8  ;;  %v4755_v46 = vpop.eup %4754  ;;  %v1164_v15 = vadd.f32 %v1163_v57, %v5894_v2 }
 0x194   : > { %4770 = vrcp.f32 %v2258_v35 }
 0x195   : > { %v4757_v6 = vpop.eup %4756  ;;  %v3847_v16 = vmul.f32 -1.442695, %v1166_v19  ;;  %v1169_v17 = vpop.f32.mrb[74].mxu0  ;;  %v4290_v53 = vpack.c.bf16 %v2639_v60, %v2638_v14  ;;  %4772 = vtanh.f32 %v1146_v47  ;;  %v433_v60 = vld [vmem:[%s5585_s17 + $0x2e8] sm:$0xff] }
 0x196   : > { %v4759_v30 = vpop.eup %4758  ;;  %v2259_v13 = vadd.f32 1.0, %v4757_v6  ;;  %v1171_v62 = vpop.f32.mrb[75].mxu0  ;;  %3773 = vmatmul.mubr.msk.f32.gmra.mrb[180].mxu0 %vm496_vm2, %v430_v51 }
 0x197   : > { %4774 = vpow2.f32 %v3847_v16  ;;  %v1172_v63 = vadd.f32 %v1171_v62, %v5867_v50  ;;  %4291 = vmatprep.subr.bf16.mxu1 %v4290_v53  ;;  %1491 = vmatprep.mubr.f32.mxu0 %v5507_v9  ;;  %v2640_v28 = vmul.f32 %v4759_v30, %v4755_v46  ;;  %v4761_v34 = vpop.eup %4760  ;;  %v7246_v16 = vpack.c.bf16 %v6157_v45, %v6149_v24 }
 0x198   : > { %4776 = vrcp.f32 %v2259_v13  ;;  %4293 = vmatpush3.bf16.xpose.msra.mxu1 %v7245_v3  ;;  %v1170_v62 = vadd.f32 %v1169_v17, %v5894_v2 }
 0x199   : > { %v4763_v5 = vpop.eup %4762  ;;  %v3848_v49 = vmul.f32 -1.442695, %v1172_v63  ;;  %v1175_v1 = vpop.f32.mrb[76].mxu0  ;;  %4778 = vtanh.f32 %v1152_v11 }
 0x19a   : > { %v4765_v56 = vpop.eup %4764  ;;  %v2260_v10 = vadd.f32 1.0, %v4763_v5  ;;  %v1177_v14 = vpop.f32.mrb[77].mxu0  ;;  %3774 = vmatmul.mubr.msk.f32.gmra.mrb[182].mxu0 %vm496_vm2, %v431_v7 }
 0x19b   : > { %4780 = vpow2.f32 %v3848_v49  ;;  %v1178_v8 = vadd.f32 %v1177_v14, %v5867_v50  ;;  %1497 = vmatprep.mubr.f32.mxu0 %v5507_v9  ;;  %v2641_v29 = vmul.f32 %v4765_v56, %v4761_v34  ;;  %v4767_v36 = vpop.eup %4766 }
 0x19c   : > { %4782 = vrcp.f32 %v2260_v10  ;;  %v1176_v10 = vadd.f32 %v1175_v1, %v5894_v2 }
 0x19d   : > { %v4769_v0 = vpop.eup %4768  ;;  %v3849_v52 = vmul.f32 -1.442695, %v1178_v8  ;;  %v1181_v58 = vpop.f32.mrb[78].mxu0  ;;  %v4294_v35 = vpack.c.bf16 %v2641_v29, %v2640_v28  ;;  %4784 = vtanh.f32 %v1158_v48  ;;  %v434_v28 = vld [vmem:[%s5585_s17 + $0x2f0] sm:$0xff]  ;;  %v435_v8 = vld [vmem:[%s5585_s17 + $0x2f8] sm:$0xff] }
 0x19e   : > { %v4771_v47 = vpop.eup %4770  ;;  %v2261_v41 = vadd.f32 1.0, %v4769_v0  ;;  %v1183_v19 = vpop.f32.mrb[79].mxu0  ;;  %3775 = vmatmul.mubr.msk.f32.gmra.mrb[184].mxu0 %vm496_vm2, %v432_v20 }
 0x19f   : > { %4786 = vpow2.f32 %v3849_v52  ;;  %v1184_v51 = vadd.f32 %v1183_v19, %v5867_v50  ;;  %4295 = vmatprep.subr.bf16.mxu1 %v4294_v35  ;;  %1503 = vmatprep.mubr.f32.mxu0 %v5507_v9  ;;  %v6273_v46 = vmul.f32 %v4771_v47, %v4767_v36  ;;  %v4773_v6 = vpop.eup %4772  ;;  %v1182_v47 = vadd.f32 %v1181_v58, %v5894_v2  ;;  %v436_v19 = vld [vmem:[%s5585_s17 + $0x300] sm:$0xff] }
 0x1a0   : > { %4788 = vrcp.f32 %v2261_v41  ;;  %4297 = vmatpush3.bf16.xpose.msra.mxu1 %v7246_v16 }
 0x1a1   : > { %v4775_v57 = vpop.eup %4774  ;;  %v3850_v53 = vmul.f32 -1.442695, %v1184_v51  ;;  %v1187_v30 = vpop.f32.mrb[80].mxu0  ;;  %4790 = vtanh.f32 %v1164_v15 }
 0x1a2   : > { %v4777_v13 = vpop.eup %4776  ;;  %v2262_v11 = vadd.f32 1.0, %v4775_v57  ;;  %v1189_v63 = vpop.f32.mrb[81].mxu0  ;;  %3776 = vmatmul.mubr.msk.f32.gmra.mrb[186].mxu0 %vm496_vm2, %v433_v60 }
 0x1a3   : > { %4792 = vpow2.f32 %v3850_v53  ;;  %v1190_v7 = vadd.f32 %v1189_v63, %v5867_v50  ;;  %1509 = vmatprep.mubr.f32.mxu0 %v5507_v9  ;;  %v6283_v34 = vmul.f32 %v4777_v13, %v4773_v6  ;;  %v4779_v24 = vpop.eup %4778  ;;  %v1188_v13 = vadd.f32 %v1187_v30, %v5894_v2  ;;  %v437_v63 = vld [vmem:[%s5585_s17 + $0x308] sm:$0xff] }
 0x1a4   : > { %4794 = vrcp.f32 %v2262_v11 }
 0x1a5   : > { %v4781_v45 = vpop.eup %4780  ;;  %v3851_v3 = vmul.f32 -1.442695, %v1190_v7  ;;  %v1193_v5 = vpop.f32.mrb[82].mxu0  ;;  %4796 = vtanh.f32 %v1170_v62 }
 0x1a6   : > { %v4783_v49 = vpop.eup %4782  ;;  %v2263_v56 = vadd.f32 1.0, %v4781_v45  ;;  %v1195_v48 = vpop.f32.mrb[83].mxu0  ;;  %3777 = vmatmul.mubr.msk.f32.gmra.mrb[188].mxu0 %vm496_vm2, %v434_v28 }
 0x1a7   : > { %4798 = vpow2.f32 %v3851_v3  ;;  %v1196_v14 = vadd.f32 %v1195_v48, %v5867_v50  ;;  %1515 = vmatprep.mubr.f32.mxu0 %v5507_v9  ;;  %3979 = vmatmul.mubr.f32.vlgmr.msra.gmra.mrb[46].mxu1 %v6179_v18  ;;  %v6293_v20 = vmul.f32 %v4783_v49, %v4779_v24  ;;  %v4785_v29 = vpop.eup %4784 }
 0x1a8   : > { %4800 = vrcp.f32 %v2263_v56  ;;  %4012 = vmatprep.mubr.f32.mxu1 %v6179_v18  ;;  %v1194_v56 = vadd.f32 %v1193_v5, %v5894_v2 }
 0x1a9   : > { %v4787_v36 = vpop.eup %4786  ;;  %v3852_v1 = vmul.f32 -1.442695, %v1196_v14  ;;  %v1199_v0 = vpop.f32.mrb[84].mxu0  ;;  %4802 = vtanh.f32 %v1176_v10  ;;  %v438_v14 = vld [vmem:[%s5585_s17 + $0x310] sm:$0xff] }
 0x1aa   : > { %v4789_v52 = vpop.eup %4788  ;;  %v2264_v35 = vadd.f32 1.0, %v4787_v36  ;;  %v1201_v41 = vpop.f32.mrb[85].mxu0  ;;  %3778 = vmatmul.mubr.msk.f32.gmra.mrb[190].mxu0 %vm496_vm2, %v435_v8 }
 0x1ab   : > { %4804 = vpow2.f32 %v3852_v1  ;;  %v1202_v15 = vadd.f32 %v1201_v41, %v5867_v50  ;;  %1521 = vmatprep.mubr.f32.mxu0 %v5507_v9  ;;  %v6301_v51 = vmul.f32 %v4789_v52, %v4785_v29  ;;  %v4791_v18 = vpop.eup %4790  ;;  %v1200_v41 = vadd.f32 %v1199_v0, %v5894_v2 }
 0x1ac   : > { %4806 = vrcp.f32 %v2264_v35 }
 0x1ad   : > { %v4793_v60 = vpop.eup %4792  ;;  %v3853_v6 = vmul.f32 -1.442695, %v1202_v15  ;;  %v1205_v16 = vpop.f32.mrb[86].mxu0  ;;  %4808 = vtanh.f32 %v1182_v47 }
 0x1ae   : > { %v4795_v57 = vpop.eup %4794  ;;  %v2265_v53 = vadd.f32 1.0, %v4793_v60  ;;  %v1207_v11 = vpop.f32.mrb[87].mxu0  ;;  %3779 = vmatmul.mubr.msk.f32.gmra.mrb[192].mxu0 %vm496_vm2, %v436_v19 }
 0x1af   : > { %4810 = vpow2.f32 %v3853_v6  ;;  %v1208_v62 = vadd.f32 %v1207_v11, %v5867_v50  ;;  %1527 = vmatprep.mubr.f32.mxu0 %v5507_v9  ;;  %v6310_v7 = vmul.f32 %v4795_v57, %v4791_v18  ;;  %v4797_v28 = vpop.eup %4796  ;;  %v439_v18 = vld [vmem:[%s5585_s17 + $0x318] sm:$0xff] }
 0x1b0   : > { %4812 = vrcp.f32 %v2265_v53 }
 0x1b1   : > { %v4799_v24 = vpop.eup %4798  ;;  %v3854_v45 = vmul.f32 -1.442695, %v1208_v62  ;;  %v1211_v3 = vpop.f32.mrb[88].mxu0  ;;  %4814 = vtanh.f32 %v1188_v13  ;;  %v1206_v62 = vadd.f32 %v1205_v16, %v5894_v2 }
 0x1b2   : > { %v4801_v49 = vpop.eup %4800  ;;  %v2266_v30 = vadd.f32 1.0, %v4799_v24  ;;  %v1213_v10 = vpop.f32.mrb[89].mxu0  ;;  %3780 = vmatmul.mubr.msk.f32.gmra.mrb[194].mxu0 %vm496_vm2, %v437_v63  ;;  %v440_v24 = vld [vmem:[%s5585_s17 + $0x320] sm:$0xff] }
 0x1b3   : > { %4816 = vpow2.f32 %v3854_v45  ;;  %v1214_v48 = vadd.f32 %v1213_v10, %v5867_v50  ;;  %1533 = vmatprep.mubr.f32.mxu0 %v5507_v9  ;;  %v6317_v8 = vmul.f32 %v4801_v49, %v4797_v28  ;;  %v4803_v29 = vpop.eup %4802 }
 0x1b4   : > { %4818 = vrcp.f32 %v2266_v30 }
 0x1b5   : > { %v4805_v36 = vpop.eup %4804  ;;  %v3855_v1 = vmul.f32 -1.442695, %v1214_v48  ;;  %v1217_v52 = vpop.f32.mrb[90].mxu0  ;;  %4820 = vtanh.f32 %v1194_v56 }
 0x1b6   : > { %v4807_v35 = vpop.eup %4806  ;;  %v2267_v47 = vadd.f32 1.0, %v4805_v36  ;;  %v1219_v15 = vpop.f32.mrb[91].mxu0  ;;  %3781 = vmatmul.mubr.msk.f32.gmra.mrb[196].mxu0 %vm496_vm2, %v438_v14 }
 0x1b7   : > { %4822 = vpow2.f32 %v3855_v1  ;;  %v1220_v19 = vadd.f32 %v1219_v15, %v5867_v50  ;;  %1539 = vmatprep.mubr.f32.mxu0 %v5507_v9  ;;  %v6326_v60 = vmul.f32 %v4807_v35, %v4803_v29  ;;  %v4809_v6 = vpop.eup %4808  ;;  %v1212_v29 = vadd.f32 %v1211_v3, %v5894_v2  ;;  %v441_v35 = vld [vmem:[%s5585_s17 + $0x328] sm:$0xff] }
 0x1b8   : > { %4824 = vrcp.f32 %v2267_v47 }
 0x1b9   : > { %v4811_v57 = vpop.eup %4810  ;;  %v3856_v53 = vmul.f32 -1.442695, %v1220_v19  ;;  %v1223_v13 = vpop.f32.mrb[92].mxu0  ;;  %4826 = vtanh.f32 %v1200_v41 }
 0x1ba   : > { %v4813_v11 = vpop.eup %4812  ;;  %v2268_v0 = vadd.f32 1.0, %v4811_v57  ;;  %v1225_v63 = vpop.f32.mrb[93].mxu0  ;;  %3782 = vmatmul.mubr.msk.f32.gmra.mrb[198].mxu0 %vm496_vm2, %v439_v18  ;;  %v1218_v57 = vadd.f32 %v1217_v52, %v5894_v2 }
 0x1bb   : > { %4828 = vpow2.f32 %v3856_v53  ;;  %v1226_v28 = vadd.f32 %v1225_v63, %v5867_v50  ;;  %1545 = vmatprep.mubr.f32.mxu0 %v5507_v9  ;;  %v6333_v45 = vmul.f32 %v4813_v11, %v4809_v6  ;;  %v4815_v49 = vpop.eup %4814 }
 0x1bc   : > { %4830 = vrcp.f32 %v2268_v0  ;;  %v442_v0 = vld [vmem:[%s5585_s17 + $0x330] sm:$0xff] }
 0x1bd   : > { %v4817_v30 = vpop.eup %4816  ;;  %v3857_v56 = vmul.f32 -1.442695, %v1226_v28  ;;  %v1229_v10 = vpop.f32.mrb[94].mxu0  ;;  %4832 = vtanh.f32 %v1206_v62 }
 0x1be   : > { %v4819_v48 = vpop.eup %4818  ;;  %v2269_v14 = vadd.f32 1.0, %v4817_v30  ;;  %v1231_v36 = vpop.f32.mrb[95].mxu0  ;;  %3783 = vmatmul.mubr.msk.f32.gmra.mrb[200].mxu0 %vm496_vm2, %v440_v24 }
 0x1bf   : > { %4834 = vpow2.f32 %v3857_v56  ;;  %v1232_v1 = vadd.f32 %v1231_v36, %v5867_v50  ;;  %1551 = vmatprep.mubr.f32.mxu0 %v5507_v9  ;;  %v6342_v47 = vmul.f32 %v4819_v48, %v4815_v49  ;;  %v4821_v41 = vpop.eup %4820  ;;  %v1224_v48 = vadd.f32 %v1223_v13, %v5894_v2  ;;  %v443_v36 = vld [vmem:[%s5585_s17 + $0x338] sm:$0xff] }
 0x1c0   : > { %4836 = vrcp.f32 %v2269_v14 }
 0x1c1   : > { %v4823_v15 = vpop.eup %4822  ;;  %v3858_v19 = vmul.f32 -1.442695, %v1232_v1  ;;  %v1235_v18 = vpop.f32.mrb[96].mxu0  ;;  %4838 = vtanh.f32 %v1212_v29 }
 0x1c2   : > { %v4825_v6 = vpop.eup %4824  ;;  %v2270_v3 = vadd.f32 1.0, %v4823_v15  ;;  %v1237_v53 = vpop.f32.mrb[97].mxu0  ;;  %3784 = vmatmul.mubr.msk.f32.gmra.mrb[202].mxu0 %vm496_vm2, %v441_v35 }
 0x1c3   : > { %4840 = vpow2.f32 %v3858_v19  ;;  %v1238_v11 = vadd.f32 %v1237_v53, %v5867_v50  ;;  %1557 = vmatprep.mubr.f32.mxu0 %v5507_v9  ;;  %v6349_v62 = vmul.f32 %v4825_v6, %v4821_v41  ;;  %v4827_v63 = vpop.eup %4826 }
 0x1c4   : > { %4842 = vrcp.f32 %v2270_v3  ;;  %v1230_v3 = vadd.f32 %v1229_v10, %v5894_v2 }
 0x1c5   : > { %v4829_v28 = vpop.eup %4828  ;;  %v3859_v24 = vmul.f32 -1.442695, %v1238_v11  ;;  %v1241_v49 = vpop.f32.mrb[98].mxu0  ;;  %4844 = vtanh.f32 %v1218_v57  ;;  %v444_v11 = vld [vmem:[%s5585_s17 + $0x340] sm:$0xff] }
 0x1c6   : > { %v4831_v30 = vpop.eup %4830  ;;  %v2271_v56 = vadd.f32 1.0, %v4829_v28  ;;  %v1243_v14 = vpop.f32.mrb[99].mxu0  ;;  %3785 = vmatmul.mubr.msk.f32.gmra.mrb[204].mxu0 %vm496_vm2, %v442_v0 }
 0x1c7   : > { %4846 = vpow2.f32 %v3859_v24  ;;  %v1244_v29 = vadd.f32 %v1243_v14, %v5867_v50  ;;  %1563 = vmatprep.mubr.f32.mxu0 %v5507_v9  ;;  %v6358_v1 = vmul.f32 %v4831_v30, %v4827_v63  ;;  %v4833_v35 = vpop.eup %4832  ;;  %v1236_v14 = vadd.f32 %v1235_v18, %v5894_v2 }
 0x1c8   : > { %4848 = vrcp.f32 %v2271_v56 }
 0x1c9   : > { %v4835_v41 = vpop.eup %4834  ;;  %v3860_v15 = vmul.f32 -1.442695, %v1244_v29  ;;  %v1247_v19 = vpop.f32.mrb[100].mxu0  ;;  %4850 = vtanh.f32 %v1224_v48 }
 0x1ca   : > { %v4837_v6 = vpop.eup %4836  ;;  %v2272_v13 = vadd.f32 1.0, %v4835_v41  ;;  %v1249_v57 = vpop.f32.mrb[101].mxu0  ;;  %3786 = vmatmul.mubr.msk.f32.gmra.mrb[206].mxu0 %vm496_vm2, %v443_v36 }
 0x1cb   : > { %4852 = vpow2.f32 %v3860_v15  ;;  %v1250_v53 = vadd.f32 %v1249_v57, %v5867_v50  ;;  %1569 = vmatprep.mubr.f32.mxu0 %v5507_v9  ;;  %v6365_v0 = vmul.f32 %v4837_v6, %v4833_v35  ;;  %v4839_v63 = vpop.eup %4838 }
 0x1cc   : > { %4854 = vrcp.f32 %v2272_v13 }
 0x1cd   : > { %v4841_v28 = vpop.eup %4840  ;;  %v3861_v24 = vmul.f32 -1.442695, %v1250_v53  ;;  %v1253_v30 = vpop.f32.mrb[102].mxu0  ;;  %4856 = vtanh.f32 %v1230_v3  ;;  %v1242_v3 = vadd.f32 %v1241_v49, %v5894_v2 }
 0x1ce   : > { %v4843_v10 = vpop.eup %4842  ;;  %v2273_v48 = vadd.f32 1.0, %v4841_v28  ;;  %v1255_v29 = vpop.f32.mrb[103].mxu0  ;;  %3787 = vmatmul.mubr.msk.f32.gmra.mrb[208].mxu0 %vm496_vm2, %v444_v11  ;;  %v1254_v49 = vadd.f32 %v1253_v30, %v5894_v2 }
 0x1cf   : > { %4858 = vpow2.f32 %v3861_v24  ;;  %v1256_v9 = vadd.f32 %v1255_v29, %v5867_v50  ;;  %v6372_v36 = vmul.f32 %v4843_v10, %v4839_v63  ;;  %v4845_v35 = vpop.eup %4844  ;;  %v1248_v24 = vadd.f32 %v1247_v19, %v5894_v2 }
 0x1d0   : > { %4860 = vrcp.f32 %v2273_v48 }
 0x1d1   : > { %v4847_v41 = vpop.eup %4846  ;;  %v3862_v15 = vmul.f32 -1.442695, %v1256_v9  ;;  %v1259_v6 = vpop.f32.mrb[104].mxu0  ;;  %4862 = vtanh.f32 %v1236_v14 }
 0x1d2   : > { %v4849_v13 = vpop.eup %4848  ;;  %v2274_v57 = vadd.f32 1.0, %v4847_v41  ;;  %v1261_v53 = vpop.f32.mrb[105].mxu0 }
 0x1d3   : > { %4864 = vpow2.f32 %v3862_v15  ;;  %v1262_v18 = vadd.f32 %v1261_v53, %v5867_v50  ;;  %v6376_v11 = vmul.f32 %v4849_v13, %v4845_v35  ;;  %v4851_v28 = vpop.eup %4850  ;;  %v6382_v15 = vpop.f32.mrb[0].mxu1 }
 0x1d4   : > { %4866 = vrcp.f32 %v2274_v57  ;;  %v1579_v57 = vpop.f32.mrb[1].mxu1 }
 0x1d5   : > { %v4853_v63 = vpop.eup %4852  ;;  %v3863_v10 = vmul.f32 -1.442695, %v1262_v18  ;;  %v1265_v48 = vpop.f32.mrb[106].mxu0  ;;  %4868 = vtanh.f32 %v1242_v3 }
 0x1d6   : > { %v4855_v14 = vpop.eup %4854  ;;  %v2275_v9 = vadd.f32 1.0, %v4853_v63  ;;  %v1267_v41 = vpop.f32.mrb[107].mxu0  ;;  %v1580_v63 = vadd.f32 %v1579_v57, %v5867_v50 }
 0x1d7   : > { %4870 = vpow2.f32 %v3863_v10  ;;  %v1268_v35 = vadd.f32 %v1267_v41, %v5867_v50  ;;  %v6385_v13 = vmul.f32 %v4855_v14, %v4851_v28  ;;  %v4857_v19 = vpop.eup %4856  ;;  %v6387_v53 = vpop.f32.mrb[2].mxu1  ;;  %v1260_v10 = vadd.f32 %v1259_v6, %v5894_v2 }
 0x1d8   : > { %4872 = vrcp.f32 %v2275_v9  ;;  %v1585_v30 = vpop.f32.mrb[3].mxu1 }
 0x1d9   : > { %v4859_v18 = vpop.eup %4858  ;;  %4874 = vtanh.f32 %v1248_v24  ;;  %v3864_v29 = vmul.f32 -1.442695, %v1268_v35  ;;  %v1271_v3 = vpop.f32.mrb[108].mxu0  ;;  %v1586_v6 = vadd.f32 %v1585_v30, %v5867_v50 }
 0x1da   : > { %v4861_v56 = vpop.eup %4860  ;;  %v2276_v52 = vadd.f32 1.0, %v4859_v18  ;;  %4876 = vtanh.f32 %v1254_v49  ;;  %v1273_v41 = vpop.f32.mrb[109].mxu0  ;;  %v3916_v18 = vmul.f32 -1.442695, %v1580_v63 }
 0x1db   : > { %v6391_v28 = vpop.f32.mrb[4].mxu1  ;;  %4878 = vpow2.f32 %v3864_v29  ;;  %v1274_v14 = vadd.f32 %v1273_v41, %v5867_v50  ;;  %v6394_v9 = vmul.f32 %v4861_v56, %v4857_v19  ;;  %v4863_v24 = vpop.eup %4862  ;;  %v1266_v29 = vadd.f32 %v1265_v48, %v5894_v2 }
 0x1dc   : > { %v6396_v16 = vpop.f32.mrb[5].mxu1  ;;  %4880 = vrcp.f32 %v2276_v52  ;;  %v3917_v63 = vmul.f32 -1.442695, %v1586_v6  ;;  %v1272_v48 = vadd.f32 %v1271_v3, %v5894_v2 }
 0x1dd   : > { %v4865_v35 = vpop.eup %4864  ;;  %v3865_v57 = vmul.f32 -1.442695, %v1274_v14  ;;  %v1277_v5 = vpop.f32.mrb[110].mxu0  ;;  %4882 = vtanh.f32 %v1260_v10 }
 0x1de   : > { %v4867_v58 = vpop.eup %4866  ;;  %v2277_v17 = vadd.f32 1.0, %v4865_v35  ;;  %v1279_v56 = vpop.f32.mrb[111].mxu0  ;;  %v1278_v6 = vadd.f32 %v1277_v5, %v5894_v2  ;;  %v7247_v5 = vpack.c.bf16 %v6283_v34, %v6273_v46 }
 0x1df   : > { %4884 = vpow2.f32 %v3865_v57  ;;  %v1280_v19 = vadd.f32 %v1279_v56, %v5867_v50  ;;  %v2658_v41 = vmul.f32 %v4867_v58, %v4863_v24  ;;  %v4869_v52 = vpop.eup %4868  ;;  %v6403_v14 = vpop.f32.mrb[6].mxu1 }
 0x1e0   : > { %4886 = vrcp.f32 %v2277_v17  ;;  %v6405_v30 = vpop.f32.mrb[7].mxu1 }
 0x1e1   : > { %v4871_v21 = vpop.eup %4870  ;;  %v3866_v55 = vmul.f32 -1.442695, %v1280_v19  ;;  %v1283_v49 = vpop.f32.mrb[112].mxu0  ;;  %4888 = vpow2.f32 %v3916_v18 }
 0x1e2   : > { %v4873_v35 = vpop.eup %4872  ;;  %v2278_v10 = vadd.f32 1.0, %v4871_v21  ;;  %4890 = vtanh.f32 %v1266_v29  ;;  %v1285_v57 = vpop.f32.mrb[113].mxu0  ;;  %v1284_v61 = vadd.f32 %v1283_v49, %v5894_v2  ;;  %v1578_v49 = vadd.f32 %v6382_v15, %v5894_v2 }
 0x1e3   : > { %v6408_v4 = vpop.f32.mrb[8].mxu1  ;;  %v4875_v58 = vpop.eup %4874  ;;  %4892 = vpow2.f32 %v3866_v55  ;;  %v1286_v17 = vadd.f32 %v1285_v57, %v5867_v50  ;;  %v2659_v24 = vmul.f32 %v4873_v35, %v4869_v52 }
 0x1e4   : > { %v6411_v56 = vpop.f32.mrb[9].mxu1  ;;  %v4877_v19 = vpop.eup %4876  ;;  %4894 = vrcp.f32 %v2278_v10 }
 0x1e5   : > { %v4879_v18 = vpop.eup %4878  ;;  %v3867_v12 = vmul.f32 -1.442695, %v1286_v17  ;;  %v1289_v21 = vpop.f32.mrb[114].mxu0  ;;  %v4298_v29 = vpack.c.bf16 %v2659_v24, %v2658_v41  ;;  %4896 = vpow2.f32 %v3917_v63 }
 0x1e6   : > { %v4881_v3 = vpop.eup %4880  ;;  %v2279_v54 = vadd.f32 1.0, %v4879_v18  ;;  %4898 = vtanh.f32 %v1272_v48  ;;  %v1291_v55 = vpop.f32.mrb[115].mxu0 }
 0x1e7   : > { %4900 = vpow2.f32 %v3867_v12  ;;  %v1292_v52 = vadd.f32 %v1291_v55, %v5867_v50  ;;  %4299 = vmatprep.subr.bf16.mxu1 %v4298_v29  ;;  %v2660_v35 = vmul.f32 %v4881_v3, %v4875_v58  ;;  %v4883_v57 = vpop.eup %4882  ;;  %v6419_v10 = vpop.f32.mrb[10].mxu1 }
 0x1e8   : > { %4902 = vrcp.f32 %v2279_v54  ;;  %4301 = vmatpush3.bf16.xpose.msra.mxu1 %v7247_v5  ;;  %v6423_v12 = vpop.f32.mrb[11].mxu1  ;;  %v1290_v54 = vadd.f32 %v1289_v21, %v5894_v2 }
 0x1e9   : > { %v4885_v41 = vpop.eup %4884  ;;  %4904 = vtanh.f32 %v1278_v6  ;;  %v3868_v63 = vmul.f32 -1.442695, %v1292_v52  ;;  %v1295_v48 = vpop.f32.mrb[116].mxu0 }
 0x1ea   : > { %v4887_v17 = vpop.eup %4886  ;;  %v2280_v24 = vadd.f32 1.0, %v4885_v41  ;;  %4906 = vtanh.f32 %v1284_v61  ;;  %v1297_v58 = vpop.f32.mrb[117].mxu0  ;;  %v1584_v61 = vadd.f32 %v6387_v53, %v5894_v2 }
 0x1eb   : > { %v6426_v18 = vpop.f32.mrb[12].mxu1  ;;  %v4889_v46 = vpop.eup %4888  ;;  %4908 = vpow2.f32 %v3868_v63  ;;  %v1298_v34 = vadd.f32 %v1297_v58, %v5867_v50  ;;  %v2661_v6 = vmul.f32 %v4887_v17, %v4877_v19  ;;  %v1296_v58 = vadd.f32 %v1295_v48, %v5894_v2 }
 0x1ec   : > { %v6429_v29 = vpop.f32.mrb[13].mxu1  ;;  %v4891_v3 = vpop.eup %4890  ;;  %4910 = vrcp.f32 %v2280_v24  ;;  %v2331_v63 = vadd.f32 1.0, %v4889_v46 }
 0x1ed   : > { %v4893_v15 = vpop.eup %4892  ;;  %v3869_v55 = vmul.f32 -1.442695, %v1298_v34  ;;  %v1301_v52 = vpop.f32.mrb[118].mxu0  ;;  %v4302_v5 = vpack.c.bf16 %v2661_v6, %v2660_v35  ;;  %4912 = vtanh.f32 %v1578_v49  ;;  %v7248_v35 = vpack.c.bf16 %v6301_v51, %v6293_v20 }
 0x1ee   : > { %v4895_v21 = vpop.eup %4894  ;;  %v2281_v41 = vadd.f32 1.0, %v4893_v15  ;;  %4914 = vtanh.f32 %v1290_v54  ;;  %v1303_v59 = vpop.f32.mrb[119].mxu0 }
 0x1ef   : > { %v4897_v43 = vpop.eup %4896  ;;  %4916 = vpow2.f32 %v3869_v55  ;;  %v1304_v19 = vadd.f32 %v1303_v59, %v5867_v50  ;;  %4303 = vmatprep.subr.bf16.mxu1 %v4302_v5  ;;  %v2662_v17 = vmul.f32 %v4895_v21, %v4883_v57  ;;  %v6437_v49 = vpop.f32.mrb[14].mxu1  ;;  %v1592_v55 = vadd.f32 %v6396_v16, %v5867_v50 }
 0x1f0   : > { %v4899_v24 = vpop.eup %4898  ;;  %4918 = vrcp.f32 %v2281_v41  ;;  %4305 = vmatpush3.bf16.xpose.msra.mxu1 %v7248_v35  ;;  %v6440_v46 = vpop.f32.mrb[15].mxu1  ;;  %v2332_v57 = vadd.f32 1.0, %v4897_v43 }
 0x1f1   : > { %v4901_v53 = vpop.eup %4900  ;;  %v3870_v54 = vmul.f32 -1.442695, %v1304_v19  ;;  %v1307_v34 = vpop.f32.mrb[120].mxu0  ;;  %4920 = vtanh.f32 %v1584_v61  ;;  %v1302_v19 = vadd.f32 %v1301_v52, %v5894_v2  ;;  %v3918_v39 = vmul.f32 -1.442695, %v1592_v55 }
 0x1f2   : > { %v4903_v6 = vpop.eup %4902  ;;  %v2282_v59 = vadd.f32 1.0, %v4901_v53  ;;  %v1309_v15 = vpop.f32.mrb[121].mxu0  ;;  %4922 = vrcp.f32 %v2331_v63 }
 0x1f3   : > { %v6444_v20 = vpop.f32.mrb[16].mxu1  ;;  %v4905_v51 = vpop.eup %4904  ;;  %4924 = vpow2.f32 %v3870_v54  ;;  %v1310_v5 = vadd.f32 %v1309_v15, %v5867_v50  ;;  %v2663_v48 = vmul.f32 %v4903_v6, %v4891_v3 }
 0x1f4   : > { %v6447_v21 = vpop.f32.mrb[17].mxu1  ;;  %v4907_v61 = vpop.eup %4906  ;;  %4926 = vrcp.f32 %v2282_v59  ;;  %v1308_v59 = vadd.f32 %v1307_v34, %v5894_v2 }
 0x1f5   : > { %v4909_v41 = vpop.eup %4908  ;;  %4928 = vtanh.f32 %v1296_v58  ;;  %v3871_v63 = vmul.f32 -1.442695, %v1310_v5  ;;  %v1313_v43 = vpop.f32.mrb[122].mxu0  ;;  %v4306_v35 = vpack.c.bf16 %v2663_v48, %v2662_v17  ;;  %v7249_v58 = vpack.c.bf16 %v6317_v8, %v6310_v7 }
 0x1f6   : > { %v4911_v53 = vpop.eup %4910  ;;  %v2283_v16 = vadd.f32 1.0, %v4909_v41  ;;  %v1315_v44 = vpop.f32.mrb[123].mxu0  ;;  %4930 = vrcp.f32 %v2332_v57  ;;  %v1598_v7 = vadd.f32 %v6405_v30, %v5867_v50 }
 0x1f7   : > { %v4913_v54 = vpop.eup %4912  ;;  %4932 = vpow2.f32 %v3871_v63  ;;  %v1316_v3 = vadd.f32 %v1315_v44, %v5867_v50  ;;  %4307 = vmatprep.subr.bf16.mxu1 %v4306_v35  ;;  %v2664_v6 = vmul.f32 %v4911_v53, %v4899_v24  ;;  %v6454_v52 = vpop.f32.mrb[18].mxu1  ;;  %v1590_v24 = vadd.f32 %v6391_v28, %v5894_v2 }
 0x1f8   : > { %v4915_v15 = vpop.eup %4914  ;;  %4934 = vrcp.f32 %v2283_v16  ;;  %4309 = vmatpush3.bf16.xpose.msra.mxu1 %v7249_v58  ;;  %v6457_v5 = vpop.f32.mrb[19].mxu1  ;;  %v3919_v37 = vmul.f32 -1.442695, %v1598_v7 }
 0x1f9   : > { %v4917_v17 = vpop.eup %4916  ;;  %4936 = vtanh.f32 %v1302_v19  ;;  %v3872_v57 = vmul.f32 -1.442695, %v1316_v3  ;;  %v1319_v55 = vpop.f32.mrb[124].mxu0  ;;  %v1314_v3 = vadd.f32 %v1313_v43, %v5894_v2 }
 0x1fa   : > { %v4919_v48 = vpop.eup %4918  ;;  %v2284_v44 = vadd.f32 1.0, %v4917_v17  ;;  %v1321_v41 = vpop.f32.mrb[125].mxu0  ;;  %4938 = vpow2.f32 %v3918_v39 }
 0x1fb   : > { %v6463_v8 = vpop.f32.mrb[20].mxu1  ;;  %v4921_v63 = vpop.eup %4920  ;;  %4940 = vpow2.f32 %v3872_v57  ;;  %v1322_v34 = vadd.f32 %v1321_v41, %v5867_v50  ;;  %v2665_v19 = vmul.f32 %v4919_v48, %v4905_v51 }
 0x1fc   : > { %v6466_v35 = vpop.f32.mrb[21].mxu1  ;;  %v4923_v53 = vpop.eup %4922  ;;  %4942 = vrcp.f32 %v2284_v44 }
 0x1fd   : > { %v4925_v16 = vpop.eup %4924  ;;  %4944 = vtanh.f32 %v1308_v59  ;;  %v3873_v28 = vmul.f32 -1.442695, %v1322_v34  ;;  %v1325_v39 = vpop.f32.mrb[126].mxu0  ;;  %v4310_v58 = vpack.c.bf16 %v2665_v19, %v2664_v6  ;;  %v7250_v59 = vpack.c.bf16 %v6333_v45, %v6326_v60 }
 0x1fe   : > { %v4927_v17 = vpop.eup %4926  ;;  %v2285_v30 = vadd.f32 1.0, %v4925_v16  ;;  %v1327_v42 = vpop.f32.mrb[127].mxu0  ;;  %4946 = vtanh.f32 %v1590_v24  ;;  %v6475_v6 = vmul.f32 %v4923_v53, %v4913_v54  ;;  %v1320_v24 = vadd.f32 %v1319_v55, %v5894_v2 }
 0x1ff   : > { %v4929_v57 = vpop.eup %4928  ;;  %4948 = vpow2.f32 %v3873_v28  ;;  %v1328_v51 = vadd.f32 %v1327_v42, %v5867_v50  ;;  %4311 = vmatprep.subr.bf16.mxu1 %v4310_v58  ;;  %v2666_v48 = vmul.f32 %v4927_v17, %v4907_v61  ;;  %v6473_v43 = vpop.f32.mrb[22].mxu1  ;;  %v1596_v28 = vadd.f32 %v6403_v14, %v5894_v2 }
 0x200   : > { %v4931_v41 = vpop.eup %4930  ;;  %4950 = vrcp.f32 %v2285_v30  ;;  %4313 = vmatpush3.bf16.xpose.msra.mxu1 %v7250_v59  ;;  %7251 = vst [vmem:[#allocation31_spill] sm:$0xff] %v6475_v6  ;;  %v6478_v19 = vpop.f32.mrb[23].mxu1  ;;  %v1326_v30 = vadd.f32 %v1325_v39, %v5894_v2  ;;  %v7253_v39 = vpack.c.bf16 %v6349_v62, %v6342_v47 }
 0x201   : > { %v4933_v44 = vpop.eup %4932  ;;  %4952 = vtanh.f32 %v1314_v3  ;;  %v3874_v7 = vmul.f32 -1.442695, %v1328_v51  ;;  %v1331_v34 = vpop.f32.mrb[128].mxu0  ;;  %v6487_v55 = vmul.f32 %v4931_v41, %v4921_v63 }
 0x202   : > { %v4935_v42 = vpop.eup %4934  ;;  %v2286_v61 = vadd.f32 1.0, %v4933_v44  ;;  %v1333_v16 = vpop.f32.mrb[129].mxu0  ;;  %4954 = vpow2.f32 %v3919_v37 }
 0x203   : > { %v6482_v60 = vpop.f32.mrb[24].mxu1  ;;  %v4937_v45 = vpop.eup %4936  ;;  %4956 = vpow2.f32 %v3874_v7  ;;  %v1334_v54 = vadd.f32 %v1333_v16, %v5867_v50  ;;  %v2667_v53 = vmul.f32 %v4935_v42, %v4915_v15  ;;  %7252 = vst [vmem:[#allocation32_spill] sm:$0xff] %v6487_v55  ;;  %v1604_v15 = vadd.f32 %v6411_v56, %v5867_v50 }
 0x204   : > { %v6485_v3 = vpop.f32.mrb[25].mxu1  ;;  %v4939_v58 = vpop.eup %4938  ;;  %4958 = vrcp.f32 %v2286_v61  ;;  %v1332_v16 = vadd.f32 %v1331_v34, %v5894_v2 }
 0x205   : > { %v4941_v17 = vpop.eup %4940  ;;  %4960 = vtanh.f32 %v1320_v24  ;;  %v3875_v51 = vmul.f32 -1.442695, %v1334_v54  ;;  %v1337_v14 = vpop.f32.mrb[130].mxu0  ;;  %v4314_v37 = vpack.c.bf16 %v2667_v53, %v2666_v48  ;;  %v2333_v7 = vadd.f32 1.0, %v4939_v58 }
 0x206   : > { %v4943_v59 = vpop.eup %4942  ;;  %v2287_v44 = vadd.f32 1.0, %v4941_v17  ;;  %v1339_v38 = vpop.f32.mrb[131].mxu0  ;;  %4962 = vtanh.f32 %v1596_v28  ;;  %v3920_v58 = vmul.f32 -1.442695, %v1604_v15 }
 0x207   : > { %v4945_v42 = vpop.eup %4944  ;;  %4964 = vpow2.f32 %v3875_v51  ;;  %v1340_v63 = vadd.f32 %v1339_v38, %v5867_v50  ;;  %4315 = vmatprep.subr.bf16.mxu1 %v4314_v37  ;;  %v2668_v41 = vmul.f32 %v4943_v59, %v4929_v57  ;;  %v6498_v48 = vpop.f32.mrb[26].mxu1 }
 0x208   : > { %v6493_v24 = vpop.eup %4946  ;;  %4966 = vrcp.f32 %v2287_v44  ;;  %4317 = vmatpush3.bf16.xpose.msra.mxu1 %v7253_v39  ;;  %v6501_v54 = vpop.f32.mrb[27].mxu1 }
 0x209   : > { %v4949_v61 = vpop.eup %4948  ;;  %4968 = vtanh.f32 %v1326_v30  ;;  %v3876_v56 = vmul.f32 -1.442695, %v1340_v63  ;;  %v1343_v28 = vpop.f32.mrb[132].mxu0 }
 0x20a   : > { %v4951_v38 = vpop.eup %4950  ;;  %v2288_v53 = vadd.f32 1.0, %v4949_v61  ;;  %v1345_v57 = vpop.f32.mrb[133].mxu0  ;;  %4970 = vrcp.f32 %v2333_v7  ;;  %v1602_v7 = vadd.f32 %v6408_v4, %v5894_v2  ;;  %v1338_v4 = vadd.f32 %v1337_v14, %v5894_v2 }
 0x20b   : > { %v6503_v17 = vpop.f32.mrb[28].mxu1  ;;  %v4953_v51 = vpop.eup %4952  ;;  %4972 = vpow2.f32 %v3876_v56  ;;  %v1346_v47 = vadd.f32 %v1345_v57, %v5867_v50  ;;  %v2669_v62 = vmul.f32 %v4951_v38, %v4937_v45 }
 0x20c   : > { %v6506_v37 = vpop.f32.mrb[29].mxu1  ;;  %v4955_v30 = vpop.eup %4954  ;;  %4974 = vrcp.f32 %v2288_v53 }
 0x20d   : > { %v4957_v34 = vpop.eup %4956  ;;  %4976 = vtanh.f32 %v1332_v16  ;;  %v3877_v59 = vmul.f32 -1.442695, %v1346_v47  ;;  %v1349_v44 = vpop.f32.mrb[134].mxu0  ;;  %v4318_v63 = vpack.c.bf16 %v2669_v62, %v2668_v41  ;;  %v2334_v32 = vadd.f32 1.0, %v4955_v30 }
 0x20e   : > { %v4959_v15 = vpop.eup %4958  ;;  %v2289_v39 = vadd.f32 1.0, %v4957_v34  ;;  %v1351_v61 = vpop.f32.mrb[135].mxu0  ;;  %4978 = vpow2.f32 %v3920_v58  ;;  %v7254_v41 = vpack.c.bf16 %v6365_v0, %v6358_v1  ;;  %v1344_v34 = vadd.f32 %v1343_v28, %v5894_v2 }
 0x20f   : > { %v4961_v56 = vpop.eup %4960  ;;  %4980 = vpow2.f32 %v3877_v59  ;;  %v1352_v45 = vadd.f32 %v1351_v61, %v5867_v50  ;;  %4319 = vmatprep.subr.bf16.mxu1 %v4318_v63  ;;  %v2670_v38 = vmul.f32 %v4959_v15, %v4945_v42  ;;  %v6517_v58 = vpop.f32.mrb[30].mxu1  ;;  %v1610_v59 = vadd.f32 %v6423_v12, %v5867_v50 }
 0x210   : > { %v6511_v53 = vpop.eup %4962  ;;  %4982 = vrcp.f32 %v2289_v39  ;;  %4321 = vmatpush3.bf16.xpose.msra.mxu1 %v7254_v41  ;;  %v6522_v63 = vpop.f32.mrb[31].mxu1 }
 0x211   : > { %v4965_v16 = vpop.eup %4964  ;;  %v3878_v57 = vmul.f32 -1.442695, %v1352_v45  ;;  %v1355_v47 = vpop.f32.mrb[136].mxu0  ;;  %4984 = vtanh.f32 %v1602_v7  ;;  %v3921_v33 = vmul.f32 -1.442695, %v1610_v59 }
 0x212   : > { %v4967_v62 = vpop.eup %4966  ;;  %v2290_v30 = vadd.f32 1.0, %v4965_v16  ;;  %v1357_v42 = vpop.f32.mrb[137].mxu0  ;;  %4986 = vrcp.f32 %v2334_v32  ;;  %v1350_v32 = vadd.f32 %v1349_v44, %v5894_v2 }
 0x213   : > { %v4969_v1 = vpop.eup %4968  ;;  %4988 = vpow2.f32 %v3878_v57  ;;  %v1358_v0 = vadd.f32 %v1357_v42, %v5867_v50  ;;  %v2671_v14 = vmul.f32 %v4967_v62, %v4953_v51  ;;  %v6525_v15 = vpop.f32.mrb[32].mxu1 }
 0x214   : > { %v4971_v7 = vpop.eup %4970  ;;  %4990 = vrcp.f32 %v2290_v30  ;;  %v6527_v39 = vpop.f32.mrb[33].mxu1 }
 0x215   : > { %v4973_v61 = vpop.eup %4972  ;;  %4992 = vtanh.f32 %v1338_v4  ;;  %v3879_v28 = vmul.f32 -1.442695, %v1358_v0  ;;  %v1361_v45 = vpop.f32.mrb[138].mxu0  ;;  %v4322_v12 = vpack.c.bf16 %v2671_v14, %v2670_v38  ;;  %v7255_v4 = vpack.c.bf16 %v6376_v11, %v6372_v36 }
 0x216   : > { %v4975_v41 = vpop.eup %4974  ;;  %v2291_v16 = vadd.f32 1.0, %v4973_v61  ;;  %4994 = vtanh.f32 %v1344_v34  ;;  %v1363_v57 = vpop.f32.mrb[139].mxu0  ;;  %v1356_v38 = vadd.f32 %v1355_v47, %v5894_v2  ;;  %v6536_v59 = vmul.f32 %v4971_v7, %v6493_v24 }
 0x217   : > { %v4977_v42 = vpop.eup %4976  ;;  %4996 = vpow2.f32 %v3879_v28  ;;  %v1364_v51 = vadd.f32 %v1363_v57, %v5867_v50  ;;  %4323 = vmatprep.subr.bf16.mxu1 %v4322_v12  ;;  %v2672_v62 = vmul.f32 %v4975_v41, %v4961_v56  ;;  %v6538_v56 = vpop.f32.mrb[34].mxu1  ;;  %v1608_v7 = vadd.f32 %v6419_v10, %v5894_v2 }
 0x218   : > { %v4979_v30 = vpop.eup %4978  ;;  %4998 = vrcp.f32 %v2291_v16  ;;  %4325 = vmatpush3.bf16.xpose.msra.mxu1 %v7255_v4  ;;  %7256 = vst [vmem:[#allocation33_spill] sm:$0xff] %v6536_v59 }
 0x219   : > { %v4981_v44 = vpop.eup %4980  ;;  %5000 = vtanh.f32 %v1350_v32  ;;  %v3880_v0 = vmul.f32 -1.442695, %v1364_v51  ;;  %v1367_v34 = vpop.f32.mrb[140].mxu0  ;;  %v2335_v12 = vadd.f32 1.0, %v4979_v30 }
 0x21a   : > { %v4983_v14 = vpop.eup %4982  ;;  %v2292_v61 = vadd.f32 1.0, %v4981_v44  ;;  %v1369_v28 = vpop.f32.mrb[141].mxu0  ;;  %5002 = vpow2.f32 %v3921_v33 }
 0x21b   : > { %v6540_v41 = vpop.eup %4984  ;;  %5004 = vpow2.f32 %v3880_v0  ;;  %v1370_v36 = vadd.f32 %v1369_v28, %v5867_v50  ;;  %v2673_v11 = vmul.f32 %v4983_v14, %v4969_v1  ;;  %v6543_v32 = vpop.f32.mrb[35].mxu1  ;;  %v1362_v0 = vadd.f32 %v1361_v45, %v5894_v2 }
 0x21c   : > { %v4987_v24 = vpop.eup %4986  ;;  %5006 = vrcp.f32 %v2292_v61  ;;  %v6549_v30 = vpop.f32.mrb[36].mxu1  ;;  %v1616_v61 = vadd.f32 %v6429_v29, %v5867_v50 }
 0x21d   : > { %v4989_v16 = vpop.eup %4988  ;;  %5008 = vtanh.f32 %v1356_v38  ;;  %v3881_v33 = vmul.f32 -1.442695, %v1370_v36  ;;  %v1373_v57 = vpop.f32.mrb[142].mxu0  ;;  %v4326_v51 = vpack.c.bf16 %v2673_v11, %v2672_v62  ;;  %v6552_v4 = vmul.f32 %v4987_v24, %v6511_v53 }
 0x21e   : > { %v4991_v1 = vpop.eup %4990  ;;  %v2293_v44 = vadd.f32 1.0, %v4989_v16  ;;  %v1375_v14 = vpop.f32.mrb[143].mxu0  ;;  %5010 = vrcp.f32 %v2335_v12  ;;  %v7258_v36 = vpack.c.bf16 %v6394_v9, %v6385_v13  ;;  %v1368_v12 = vadd.f32 %v1367_v34, %v5894_v2 }
 0x21f   : > { %7257 = vst [vmem:[#allocation34_spill] sm:$0xff] %v6552_v4  ;;  %v4993_v10 = vpop.eup %4992  ;;  %5012 = vpow2.f32 %v3881_v33  ;;  %v1376_v38 = vadd.f32 %v1375_v14, %v5867_v50  ;;  %4327 = vmatprep.subr.bf16.mxu1 %v4326_v51  ;;  %v6558_v62 = vmul.f32 %v4991_v1, %v4977_v42  ;;  %v6560_v28 = vpop.f32.mrb[37].mxu1  ;;  %v3922_v42 = vmul.f32 -1.442695, %v1616_v61 }
 0x220   : > { %v4995_v53 = vpop.eup %4994  ;;  %5014 = vrcp.f32 %v2293_v44  ;;  %4329 = vmatpush3.bf16.xpose.msra.mxu1 %v7258_v36  ;;  %v1374_v9 = vadd.f32 %v1373_v57, %v5894_v2  ;;  %v5354_v57 = vld [vmem:[%s7181_s3] sm:$0x1] }
 0x221   : > { %v4997_v45 = vpop.eup %4996  ;;  %v3882_v11 = vmul.f32 -1.442695, %v1376_v38  ;;  %v1379_v29 = vpop.f32.mrb[144].mxu0  ;;  %5016 = vtanh.f32 %v1608_v7 }
 0x222   : > { %v4999_v24 = vpop.eup %4998  ;;  %v2294_v16 = vadd.f32 1.0, %v4997_v45  ;;  %5018 = vtanh.f32 %v1362_v0  ;;  %v1381_v33 = vpop.f32.mrb[145].mxu0 }
 0x223   : > { %v5001_v51 = vpop.eup %5000  ;;  %5020 = vpow2.f32 %v3882_v11  ;;  %v1382_v1 = vadd.f32 %v1381_v33, %v5867_v50  ;;  %v6567_v44 = vmul.f32 %v4999_v24, %v4993_v10  ;;  %v6572_v11 = vpop.f32.mrb[38].mxu1 }
 0x224   : > { %v5003_v14 = vpop.eup %5002  ;;  %5022 = vrcp.f32 %v2294_v16  ;;  %7259 = vst [vmem:[#allocation35_spill] sm:$0xff] %v6572_v11  ;;  %v6580_v16 = vpop.f32.mrb[39].mxu1 }
 0x225   : > { %v5005_v13 = vpop.eup %5004  ;;  %5024 = vtanh.f32 %v1368_v12  ;;  %v3883_v34 = vmul.f32 -1.442695, %v1382_v1  ;;  %v1385_v38 = vpop.f32.mrb[146].mxu0  ;;  %v2336_v45 = vadd.f32 1.0, %v5003_v14 }
 0x226   : > { %v5007_v0 = vpop.eup %5006  ;;  %v2295_v36 = vadd.f32 1.0, %v5005_v13  ;;  %v1387_v61 = vpop.f32.mrb[147].mxu0  ;;  %5026 = vpow2.f32 %v3922_v42 }
 0x227   : > { %v5009_v10 = vpop.eup %5008  ;;  %5028 = vpow2.f32 %v3883_v34  ;;  %v1388_v24 = vadd.f32 %v1387_v61, %v5867_v50  ;;  %4013 = vmatmul.mubr.f32.vlgmr.msra.gmra.mrb[48].mxu1 %v5354_v57  ;;  %v6578_v12 = vmul.f32 %v5007_v0, %v4995_v53  ;;  %v6582_v1 = vpop.f32.mrb[40].mxu1  ;;  %v1614_v34 = vadd.f32 %v6426_v18, %v5894_v2 }
 0x228   : > { %v5011_v33 = vpop.eup %5010  ;;  %5030 = vrcp.f32 %v2295_v36  ;;  %7260 = vst [vmem:[#allocation36_spill] sm:$0xff] %v6582_v1  ;;  %4046 = vmatprep.mubr.f32.mxu1 %v5354_v57  ;;  %v1380_v0 = vadd.f32 %v1379_v29, %v5894_v2  ;;  %v1622_v36 = vadd.f32 %v6440_v46, %v5867_v50  ;;  %v6595_v27 = vpop.f32.mrb[41].mxu1  ;;  %v1386_v29 = vadd.f32 %v1385_v38, %v5894_v2 }
 0x229   : > { %v5013_v42 = vpop.eup %5012  ;;  %5032 = vtanh.f32 %v1374_v9  ;;  %v3884_v14 = vmul.f32 -1.442695, %v1388_v24  ;;  %v1391_v13 = vpop.f32.mrb[148].mxu0  ;;  %v6587_v61 = vmul.f32 %v5011_v33, %v6540_v41 }
 0x22a   : > { %v5015_v47 = vpop.eup %5014  ;;  %v2296_v53 = vadd.f32 1.0, %v5013_v42  ;;  %v1393_v7 = vpop.f32.mrb[149].mxu0  ;;  %5034 = vrcp.f32 %v2336_v45 }
 0x22b   : > { %7261 = vst [vmem:[#allocation37_spill] sm:$0xff] %v6587_v61  ;;  %v5017_v57 = vpop.eup %5016  ;;  %5036 = vpow2.f32 %v3884_v14  ;;  %v1394_v9 = vadd.f32 %v1393_v7, %v5867_v50  ;;  %v6593_v24 = vmul.f32 %v5015_v47, %v5001_v51  ;;  %v3923_v51 = vmul.f32 -1.442695, %v1622_v36 }
 0x22c   : > { %v5019_v18 = vpop.eup %5018  ;;  %5038 = vrcp.f32 %v2296_v53 }
 0x22d   : > { %v5021_v33 = vpop.eup %5020  ;;  %v3885_v45 = vmul.f32 -1.442695, %v1394_v9  ;;  %v1397_v42 = vpop.f32.mrb[150].mxu0  ;;  %5040 = vtanh.f32 %v1614_v34  ;;  %v1392_v34 = vadd.f32 %v1391_v13, %v5894_v2  ;;  %v1620_v13 = vadd.f32 %v6437_v49, %v5894_v2 }
 0x22e   : > { %v5023_v14 = vpop.eup %5022  ;;  %v2297_v7 = vadd.f32 1.0, %v5021_v33  ;;  %5042 = vtanh.f32 %v1380_v0  ;;  %v1399_v47 = vpop.f32.mrb[151].mxu0  ;;  %v1628_v49 = vadd.f32 %v6447_v21, %v5867_v50 }
 0x22f   : > { %v5025_v31 = vpop.eup %5024  ;;  %5044 = vpow2.f32 %v3885_v45  ;;  %v1400_v53 = vadd.f32 %v1399_v47, %v5867_v50  ;;  %v6603_v25 = vmul.f32 %v5023_v14, %v5009_v10  ;;  %v6609_v10 = vpop.f32.mrb[42].mxu1 }
 0x230   : > { %v5027_v41 = vpop.eup %5026  ;;  %5046 = vrcp.f32 %v2297_v7  ;;  %7262 = vst [vmem:[#allocation38_spill] sm:$0xff] %v6609_v10  ;;  %v3924_v61 = vmul.f32 -1.442695, %v1628_v49 }
 0x231   : > { %v5029_v38 = vpop.eup %5028  ;;  %5048 = vtanh.f32 %v1386_v29  ;;  %v3886_v9 = vmul.f32 -1.442695, %v1400_v53  ;;  %v1403_v26 = vpop.f32.mrb[152].mxu0  ;;  %v2337_v0 = vadd.f32 1.0, %v5027_v41 }
 0x232   : > { %v5031_v46 = vpop.eup %5030  ;;  %v2298_v22 = vadd.f32 1.0, %v5029_v38  ;;  %v1405_v33 = vpop.f32.mrb[153].mxu0  ;;  %5050 = vpow2.f32 %v3923_v51 }
 0x233   : > { %v5033_v36 = vpop.eup %5032  ;;  %5052 = vpow2.f32 %v3886_v9  ;;  %v1406_v45 = vadd.f32 %v1405_v33, %v5867_v50  ;;  %v6607_v47 = vmul.f32 %v5031_v46, %v5019_v18  ;;  %v6613_v29 = vpop.f32.mrb[43].mxu1 }
 0x234   : > { %v5035_v14 = vpop.eup %5034  ;;  %5054 = vrcp.f32 %v2298_v22  ;;  %v6617_v38 = vpop.f32.mrb[44].mxu1  ;;  %v1398_v22 = vadd.f32 %v1397_v42, %v5894_v2 }
 0x235   : > { %v5037_v7 = vpop.eup %5036  ;;  %5056 = vtanh.f32 %v1392_v34  ;;  %v3887_v53 = vmul.f32 -1.442695, %v1406_v45  ;;  %v1409_v41 = vpop.f32.mrb[154].mxu0  ;;  %7263 = vst [vmem:[#allocation39_spill] sm:$0xff] %v6617_v38  ;;  %v6619_v18 = vmul.f32 %v5035_v14, %v5017_v57  ;;  %v1404_v14 = vadd.f32 %v1403_v26, %v5894_v2 }
 0x236   : > { %v5039_v46 = vpop.eup %5038  ;;  %v2299_v9 = vadd.f32 1.0, %v5037_v7  ;;  %v1411_v33 = vpop.f32.mrb[155].mxu0  ;;  %5058 = vrcp.f32 %v2337_v0  ;;  %v1410_v26 = vadd.f32 %v1409_v41, %v5894_v2 }
 0x237   : > { %7264 = vst [vmem:[#allocation40_spill] sm:$0xff] %v6619_v18  ;;  %v6624_v23 = vpop.f32.mrb[45].mxu1  ;;  %v5041_v34 = vpop.eup %5040  ;;  %5060 = vpow2.f32 %v3887_v53  ;;  %v1412_v45 = vadd.f32 %v1411_v33, %v5867_v50  ;;  %v6627_v51 = vmul.f32 %v5039_v46, %v5025_v31 }
 0x238   : > { %v5043_v40 = vpop.eup %5042  ;;  %5062 = vrcp.f32 %v2299_v9 }
 0x239   : > { %v5045_v57 = vpop.eup %5044  ;;  %v3888_v7 = vmul.f32 -1.442695, %v1412_v45  ;;  %v1415_v42 = vpop.f32.mrb[156].mxu0  ;;  %5064 = vtanh.f32 %v1620_v13 }
 0x23a   : > { %v5047_v0 = vpop.eup %5046  ;;  %v2300_v4 = vadd.f32 1.0, %v5045_v57  ;;  %5066 = vtanh.f32 %v1398_v22  ;;  %v1417_v21 = vpop.f32.mrb[157].mxu0 }
 0x23b   : > { %v5049_v55 = vpop.eup %5048  ;;  %5068 = vpow2.f32 %v3888_v7  ;;  %v1418_v53 = vadd.f32 %v1417_v21, %v5867_v50  ;;  %v6631_v33 = vmul.f32 %v5047_v0, %v5033_v36 }
 0x23c   : > { %v5051_v31 = vpop.eup %5050  ;;  %5070 = vrcp.f32 %v2300_v4 }
 0x23d   : > { %v5053_v46 = vpop.eup %5052  ;;  %5072 = vtanh.f32 %v1404_v14  ;;  %v3889_v9 = vmul.f32 -1.442695, %v1418_v53  ;;  %v1421_v45 = vpop.f32.mrb[158].mxu0  ;;  %v2338_v59 = vadd.f32 1.0, %v5051_v31  ;;  %v1626_v53 = vadd.f32 %v6444_v20, %v5894_v2 }
 0x23e   : > { %v5055_v22 = vpop.eup %5054  ;;  %v2301_v57 = vadd.f32 1.0, %v5053_v46  ;;  %v1423_v49 = vpop.f32.mrb[159].mxu0  ;;  %5074 = vpow2.f32 %v3924_v61  ;;  %v1416_v61 = vadd.f32 %v1415_v42, %v5894_v2 }
 0x23f   : > { %v5057_v7 = vpop.eup %5056  ;;  %5076 = vpow2.f32 %v3889_v9  ;;  %v1424_v36 = vadd.f32 %v1423_v49, %v5867_v50  ;;  %v6637_v0 = vmul.f32 %v5055_v22, %v5043_v40  ;;  %v1634_v40 = vadd.f32 %v6457_v5, %v5867_v50 }
 0x240   : > { %v5059_v4 = vpop.eup %5058  ;;  %5078 = vrcp.f32 %v2301_v57 }
 0x241   : > { %v5061_v14 = vpop.eup %5060  ;;  %5080 = vtanh.f32 %v1410_v26  ;;  %v3890_v41 = vmul.f32 -1.442695, %v1424_v36  ;;  %v1427_v21 = vpop.f32.mrb[160].mxu0  ;;  %v6641_v13 = vmul.f32 %v5059_v4, %v5041_v34  ;;  %v1422_v36 = vadd.f32 %v1421_v45, %v5894_v2 }
 0x242   : > { %v5063_v46 = vpop.eup %5062  ;;  %v2302_v31 = vadd.f32 1.0, %v5061_v14  ;;  %v1429_v9 = vpop.f32.mrb[161].mxu0  ;;  %5082 = vrcp.f32 %v2338_v59 }
 0x243   : > { %7265 = vst [vmem:[#allocation41_spill] sm:$0xff] %v6641_v13  ;;  %v5065_v22 = vpop.eup %5064  ;;  %5084 = vpow2.f32 %v3890_v41  ;;  %v1430_v26 = vadd.f32 %v1429_v9, %v5867_v50  ;;  %v6647_v57 = vmul.f32 %v5063_v46, %v5049_v55  ;;  %v3925_v55 = vmul.f32 -1.442695, %v1634_v40 }
 0x244   : > { %v5067_v34 = vpop.eup %5066  ;;  %5086 = vrcp.f32 %v2302_v31 }
 0x245   : > { %v5069_v49 = vpop.eup %5068  ;;  %v3891_v42 = vmul.f32 -1.442695, %v1430_v26  ;;  %v1433_v4 = vpop.f32.mrb[162].mxu0  ;;  %5088 = vtanh.f32 %v1626_v53  ;;  %v1428_v53 = vadd.f32 %v1427_v21, %v5894_v2 }
 0x246   : > { %v5071_v59 = vpop.eup %5070  ;;  %v2303_v14 = vadd.f32 1.0, %v5069_v49  ;;  %5090 = vtanh.f32 %v1416_v61  ;;  %v1435_v41 = vpop.f32.mrb[163].mxu0 }
 0x247   : > { %v5073_v46 = vpop.eup %5072  ;;  %5092 = vpow2.f32 %v3891_v42  ;;  %v1436_v9 = vadd.f32 %v1435_v41, %v5867_v50  ;;  %v6655_v20 = vmul.f32 %v5071_v59, %v5057_v7 }
 0x248   : > { %v5075_v31 = vpop.eup %5074  ;;  %5094 = vrcp.f32 %v2303_v14 }
 0x249   : > { %v5077_v45 = vpop.eup %5076  ;;  %5096 = vtanh.f32 %v1422_v36  ;;  %v3892_v26 = vmul.f32 -1.442695, %v1436_v9  ;;  %v1439_v18 = vpop.f32.mrb[164].mxu0  ;;  %v2339_v61 = vadd.f32 1.0, %v5075_v31  ;;  %v1632_v36 = vadd.f32 %v6454_v52, %v5894_v2 }
 0x24a   : > { %v5079_v5 = vpop.eup %5078  ;;  %v2304_v13 = vadd.f32 1.0, %v5077_v45  ;;  %v1441_v49 = vpop.f32.mrb[165].mxu0  ;;  %5098 = vpow2.f32 %v3925_v55 }
 0x24b   : > { %v5081_v40 = vpop.eup %5080  ;;  %5100 = vpow2.f32 %v3892_v26  ;;  %v1442_v42 = vadd.f32 %v1441_v49, %v5867_v50  ;;  %v6659_v41 = vmul.f32 %v5079_v5, %v5067_v34  ;;  %v1434_v26 = vadd.f32 %v1433_v4, %v5894_v2 }
 0x24c   : > { %v5083_v7 = vpop.eup %5082  ;;  %5102 = vrcp.f32 %v2304_v13  ;;  %v1640_v13 = vadd.f32 %v6466_v35, %v5867_v50 }
 0x24d   : > { %v5085_v59 = vpop.eup %5084  ;;  %5104 = vtanh.f32 %v1428_v53  ;;  %v3893_v21 = vmul.f32 -1.442695, %v1442_v42  ;;  %v1445_v14 = vpop.f32.mrb[166].mxu0  ;;  %v6665_v31 = vmul.f32 %v5083_v7, %v5065_v22  ;;  %v1440_v22 = vadd.f32 %v1439_v18, %v5894_v2 }
 0x24e   : > { %v5087_v55 = vpop.eup %5086  ;;  %v2305_v45 = vadd.f32 1.0, %v5085_v59  ;;  %v1447_v34 = vpop.f32.mrb[167].mxu0  ;;  %5106 = vrcp.f32 %v2339_v61  ;;  %v3926_v6 = vmul.f32 -1.442695, %v1640_v13  ;;  %v1446_v18 = vadd.f32 %v1445_v14, %v5894_v2 }
 0x24f   : > { %v5089_v5 = vpop.eup %5088  ;;  %5108 = vpow2.f32 %v3893_v21  ;;  %v1448_v52 = vadd.f32 %v1447_v34, %v5867_v50  ;;  %v6671_v53 = vmul.f32 %v5087_v55, %v5073_v46 }
 0x250   : > { %v5091_v49 = vpop.eup %5090  ;;  %5110 = vrcp.f32 %v2305_v45 }
 0x251   : > { %v5093_v42 = vpop.eup %5092  ;;  %v3894_v7 = vmul.f32 -1.442695, %v1448_v52  ;;  %v1451_v59 = vpop.f32.mrb[168].mxu0  ;;  %5112 = vtanh.f32 %v1632_v36 }
 0x252   : > { %v5095_v4 = vpop.eup %5094  ;;  %v2306_v9 = vadd.f32 1.0, %v5093_v42  ;;  %5114 = vtanh.f32 %v1434_v26  ;;  %v1453_v61 = vpop.f32.mrb[169].mxu0 }
 0x253   : > { %v5097_v35 = vpop.eup %5096  ;;  %5116 = vpow2.f32 %v3894_v7  ;;  %v1454_v21 = vadd.f32 %v1453_v61, %v5867_v50  ;;  %v6675_v34 = vmul.f32 %v5095_v4, %v5081_v40 }
 0x254   : > { %v5099_v46 = vpop.eup %5098  ;;  %5118 = vrcp.f32 %v2306_v9 }
 0x255   : > { %v5101_v55 = vpop.eup %5100  ;;  %5120 = vtanh.f32 %v1440_v22  ;;  %v3895_v45 = vmul.f32 -1.442695, %v1454_v21  ;;  %v1457_v52 = vpop.f32.mrb[170].mxu0  ;;  %v2340_v38 = vadd.f32 1.0, %v5099_v46  ;;  %v1638_v21 = vadd.f32 %v6463_v8, %v5894_v2 }
 0x256   : > { %v5103_v26 = vpop.eup %5102  ;;  %v2307_v42 = vadd.f32 1.0, %v5101_v55  ;;  %v1459_v13 = vpop.f32.mrb[171].mxu0  ;;  %5122 = vpow2.f32 %v3926_v6  ;;  %v1452_v6 = vadd.f32 %v1451_v59, %v5894_v2 }
 0x257   : > { %v5105_v7 = vpop.eup %5104  ;;  %5124 = vpow2.f32 %v3895_v45  ;;  %v1460_v40 = vadd.f32 %v1459_v13, %v5867_v50  ;;  %v6681_v4 = vmul.f32 %v5103_v26, %v5091_v49  ;;  %v1646_v49 = vadd.f32 %v6478_v19, %v5867_v50 }
 0x258   : > { %v5107_v9 = vpop.eup %5106  ;;  %5126 = vrcp.f32 %v2307_v42 }
 0x259   : > { %v5109_v22 = vpop.eup %5108  ;;  %5128 = vtanh.f32 %v1446_v18  ;;  %v3896_v14 = vmul.f32 -1.442695, %v1460_v40  ;;  %v1463_v61 = vpop.f32.mrb[172].mxu0  ;;  %v6685_v36 = vmul.f32 %v5107_v9, %v5089_v5  ;;  %v1458_v40 = vadd.f32 %v1457_v52, %v5894_v2 }
 0x25a   : > { %v5111_v55 = vpop.eup %5110  ;;  %v2308_v46 = vadd.f32 1.0, %v5109_v22  ;;  %v1465_v45 = vpop.f32.mrb[173].mxu0  ;;  %5130 = vrcp.f32 %v2340_v38  ;;  %v1464_v52 = vadd.f32 %v1463_v61, %v5894_v2 }
 0x25b   : > { %v5113_v26 = vpop.eup %5112  ;;  %5132 = vpow2.f32 %v3896_v14  ;;  %v1466_v18 = vadd.f32 %v1465_v45, %v5867_v50  ;;  %v6691_v42 = vmul.f32 %v5111_v55, %v5097_v35  ;;  %v3927_v35 = vmul.f32 -1.442695, %v1646_v49 }
 0x25c   : > { %v5115_v5 = vpop.eup %5114  ;;  %5134 = vrcp.f32 %v2308_v46 }
 0x25d   : > { %v5117_v13 = vpop.eup %5116  ;;  %v3897_v59 = vmul.f32 -1.442695, %v1466_v18  ;;  %v1469_v9 = vpop.f32.mrb[174].mxu0  ;;  %5136 = vtanh.f32 %v1638_v21 }
 0x25e   : > { %v5119_v38 = vpop.eup %5118  ;;  %v2309_v22 = vadd.f32 1.0, %v5117_v13  ;;  %5138 = vtanh.f32 %v1452_v6  ;;  %v1471_v14 = vpop.f32.mrb[175].mxu0 }
 0x25f   : > { %v5121_v55 = vpop.eup %5120  ;;  %5140 = vpow2.f32 %v3897_v59  ;;  %v1472_v45 = vadd.f32 %v1471_v14, %v5867_v50  ;;  %v2690_v8 = vmul.f32 %v5119_v38, %v5105_v7  ;;  %v1644_v7 = vadd.f32 %v6473_v43, %v5894_v2 }
 0x260   : > { %v5123_v46 = vpop.eup %5122  ;;  %5142 = vrcp.f32 %v2309_v22 }
 0x261   : > { %v5125_v10 = vpop.eup %5124  ;;  %5144 = vtanh.f32 %v1458_v40  ;;  %v3898_v21 = vmul.f32 -1.442695, %v1472_v45  ;;  %v1475_v18 = vpop.f32.mrb[176].mxu0  ;;  %v2341_v13 = vadd.f32 1.0, %v5123_v46 }
 0x262   : > { %v5127_v1 = vpop.eup %5126  ;;  %v2310_v19 = vadd.f32 1.0, %v5125_v10  ;;  %v1477_v11 = vpop.f32.mrb[177].mxu0  ;;  %5146 = vpow2.f32 %v3927_v35  ;;  %v1470_v35 = vadd.f32 %v1469_v9, %v5894_v2  ;;  %v1476_v9 = vadd.f32 %v1475_v18, %v5894_v2 }
 0x263   : > { %v5129_v6 = vpop.eup %5128  ;;  %5148 = vpow2.f32 %v3898_v21  ;;  %v1478_v49 = vadd.f32 %v1477_v11, %v5867_v50  ;;  %v2691_v59 = vmul.f32 %v5127_v1, %v5115_v5  ;;  %v1652_v11 = vadd.f32 %v6485_v3, %v5867_v50 }
 0x264   : > { %v5131_v14 = vpop.eup %5130  ;;  %5150 = vrcp.f32 %v2310_v19 }
 0x265   : > { %v5133_v40 = vpop.eup %5132  ;;  %5152 = vtanh.f32 %v1464_v52  ;;  %v3899_v61 = vmul.f32 -1.442695, %v1478_v49  ;;  %v1481_v38 = vpop.f32.mrb[178].mxu0  ;;  %v4330_v22 = vpack.c.bf16 %v2691_v59, %v2690_v8  ;;  %v6703_v45 = vmul.f32 %v5131_v14, %v5113_v26 }
 0x266   : > { %v5135_v10 = vpop.eup %5134  ;;  %v2311_v46 = vadd.f32 1.0, %v5133_v40  ;;  %v1483_v21 = vpop.f32.mrb[179].mxu0  ;;  %5154 = vrcp.f32 %v2341_v13  ;;  %v7266_v26 = vpack.c.bf16 %v6567_v44, %v6558_v62  ;;  %v3928_v14 = vmul.f32 -1.442695, %v1652_v11 }
 0x267   : > { %v5137_v1 = vpop.eup %5136  ;;  %5156 = vpow2.f32 %v3899_v61  ;;  %v1484_v43 = vadd.f32 %v1483_v21, %v5867_v50  ;;  %4331 = vmatprep.subr.bf16.mxu1 %v4330_v22  ;;  %v2692_v5 = vmul.f32 %v5135_v10, %v5121_v55  ;;  %v1482_v44 = vadd.f32 %v1481_v38, %v5894_v2 }
 0x268   : > { %v5139_v19 = vpop.eup %5138  ;;  %5158 = vrcp.f32 %v2311_v46  ;;  %4333 = vmatpush3.bf16.xpose.msra.mxu1 %v7266_v26 }
 0x269   : > { %v5141_v8 = vpop.eup %5140  ;;  %v3900_v52 = vmul.f32 -1.442695, %v1484_v43  ;;  %v1487_v13 = vpop.f32.mrb[180].mxu0  ;;  %5160 = vtanh.f32 %v1644_v7 }
 0x26a   : > { %v5143_v49 = vpop.eup %5142  ;;  %v2312_v3 = vadd.f32 1.0, %v5141_v8  ;;  %5162 = vtanh.f32 %v1470_v35  ;;  %v1489_v59 = vpop.f32.mrb[181].mxu0 }
 0x26b   : > { %v5145_v40 = vpop.eup %5144  ;;  %5164 = vpow2.f32 %v3900_v52  ;;  %v1490_v55 = vadd.f32 %v1489_v59, %v5867_v50  ;;  %v2693_v61 = vmul.f32 %v5143_v49, %v5129_v6  ;;  %v1650_v49 = vadd.f32 %v6482_v60, %v5894_v2 }
 0x26c   : > { %v5147_v22 = vpop.eup %5146  ;;  %5166 = vrcp.f32 %v2312_v3 }
 0x26d   : > { %v5149_v62 = vpop.eup %5148  ;;  %5168 = vtanh.f32 %v1476_v9  ;;  %v3901_v18 = vmul.f32 -1.442695, %v1490_v55  ;;  %v1493_v10 = vpop.f32.mrb[182].mxu0  ;;  %v4334_v46 = vpack.c.bf16 %v2693_v61, %v2692_v5  ;;  %v2342_v35 = vadd.f32 1.0, %v5147_v22 }
 0x26e   : > { %v5151_v7 = vpop.eup %5150  ;;  %v2313_v21 = vadd.f32 1.0, %v5149_v62  ;;  %v1495_v43 = vpop.f32.mrb[183].mxu0  ;;  %5170 = vpow2.f32 %v3928_v14  ;;  %v7267_v9 = vpack.c.bf16 %v6593_v24, %v6578_v12  ;;  %v1488_v55 = vadd.f32 %v1487_v13, %v5894_v2 }
 0x26f   : > { %v5153_v11 = vpop.eup %5152  ;;  %5172 = vpow2.f32 %v3901_v18  ;;  %v1496_v26 = vadd.f32 %v1495_v43, %v5867_v50  ;;  %4335 = vmatprep.subr.bf16.mxu1 %v4334_v46  ;;  %v2694_v6 = vmul.f32 %v5151_v7, %v5139_v19  ;;  %v1658_v61 = vadd.f32 %v6501_v54, %v5867_v50 }
 0x270   : > { %v5155_v8 = vpop.eup %5154  ;;  %5174 = vrcp.f32 %v2313_v21  ;;  %4337 = vmatpush3.bf16.xpose.msra.mxu1 %v7267_v9 }
 0x271   : > { %v5157_v38 = vpop.eup %5156  ;;  %5176 = vtanh.f32 %v1482_v44  ;;  %v3902_v5 = vmul.f32 -1.442695, %v1496_v26  ;;  %v1499_v52 = vpop.f32.mrb[184].mxu0  ;;  %v6721_v3 = vmul.f32 %v5155_v8, %v5137_v1  ;;  %v1494_v44 = vadd.f32 %v1493_v10, %v5894_v2 }
 0x272   : > { %v5159_v59 = vpop.eup %5158  ;;  %v2314_v14 = vadd.f32 1.0, %v5157_v38  ;;  %v1501_v19 = vpop.f32.mrb[185].mxu0  ;;  %5178 = vrcp.f32 %v2342_v35  ;;  %v3929_v43 = vmul.f32 -1.442695, %v1658_v61  ;;  %v7268_v10 = vpack.c.bf16 %v6607_v47, %v6603_v25 }
 0x273   : > { %v5161_v12 = vpop.eup %5160  ;;  %5180 = vpow2.f32 %v3902_v5  ;;  %v1502_v24 = vadd.f32 %v1501_v19, %v5867_v50  ;;  %v2695_v22 = vmul.f32 %v5159_v59, %v5145_v40  ;;  %v4366_v62 = vpack.c.bf16 %v6721_v3, %v6703_v45 }
 0x274   : > { %v5163_v60 = vpop.eup %5162  ;;  %5182 = vrcp.f32 %v2314_v14 }
 0x275   : > { %v5165_v1 = vpop.eup %5164  ;;  %v3903_v18 = vmul.f32 -1.442695, %v1502_v24  ;;  %v1505_v13 = vpop.f32.mrb[186].mxu0  ;;  %v4338_v46 = vpack.c.bf16 %v2695_v22, %v2694_v6  ;;  %5184 = vtanh.f32 %v1650_v49  ;;  %v1500_v22 = vadd.f32 %v1499_v52, %v5894_v2 }
 0x276   : > { %v5167_v7 = vpop.eup %5166  ;;  %v2315_v21 = vadd.f32 1.0, %v5165_v1  ;;  %5186 = vtanh.f32 %v1488_v55  ;;  %v1507_v54 = vpop.f32.mrb[187].mxu0 }
 0x277   : > { %v5169_v35 = vpop.eup %5168  ;;  %5188 = vpow2.f32 %v3903_v18  ;;  %v1508_v40 = vadd.f32 %v1507_v54, %v5867_v50  ;;  %4339 = vmatprep.subr.bf16.mxu1 %v4338_v46  ;;  %v2696_v26 = vmul.f32 %v5167_v7, %v5153_v11 }
 0x278   : > { %v5171_v8 = vpop.eup %5170  ;;  %5190 = vrcp.f32 %v2315_v21  ;;  %4341 = vmatpush3.bf16.xpose.msra.mxu1 %v7268_v10 }
 0x279   : > { %v5173_v9 = vpop.eup %5172  ;;  %5192 = vtanh.f32 %v1494_v44  ;;  %v3904_v6 = vmul.f32 -1.442695, %v1508_v40  ;;  %v1511_v38 = vpop.f32.mrb[188].mxu0  ;;  %v2343_v14 = vadd.f32 1.0, %v5171_v8 }
 0x27a   : > { %v5175_v5 = vpop.eup %5174  ;;  %v2316_v49 = vadd.f32 1.0, %v5173_v9  ;;  %v1513_v59 = vpop.f32.mrb[189].mxu0  ;;  %5194 = vpow2.f32 %v3929_v43  ;;  %v1656_v43 = vadd.f32 %v6498_v48, %v5894_v2  ;;  %v1506_v9 = vadd.f32 %v1505_v13, %v5894_v2 }
 0x27b   : > { %v6734_v55 = vpop.f32.mrb[46].mxu1  ;;  %v5177_v19 = vpop.eup %5176  ;;  %5196 = vpow2.f32 %v3904_v6  ;;  %v1514_v11 = vadd.f32 %v1513_v59, %v5867_v50  ;;  %v2697_v61 = vmul.f32 %v5175_v5, %v5163_v60  ;;  %v1664_v60 = vadd.f32 %v6506_v37, %v5867_v50 }
 0x27c   : > { %v6737_v24 = vpop.f32.mrb[47].mxu1  ;;  %v5179_v25 = vpop.eup %5178  ;;  %5198 = vrcp.f32 %v2316_v49 }
 0x27d   : > { %v5181_v47 = vpop.eup %5180  ;;  %v3905_v1 = vmul.f32 -1.442695, %v1514_v11  ;;  %v1517_v44 = vpop.f32.mrb[190].mxu0  ;;  %v4342_v18 = vpack.c.bf16 %v2697_v61, %v2696_v26  ;;  %v6740_v46 = vmul.f32 %v5179_v25, %v5161_v12  ;;  %5200 = vrcp.f32 %v2343_v14 }
 0x27e   : > { %v5183_v7 = vpop.eup %5182  ;;  %v2317_v21 = vadd.f32 1.0, %v5181_v47  ;;  %v1519_v54 = vpop.f32.mrb[191].mxu0  ;;  %v7269_v12 = vpack.c.bf16 %v6631_v33, %v6627_v51  ;;  %v3930_v59 = vmul.f32 -1.442695, %v1664_v60  ;;  %v1512_v33 = vadd.f32 %v1511_v38, %v5894_v2 }
 0x27f   : > { %v5185_v40 = vpop.eup %5184  ;;  %5202 = vpow2.f32 %v3905_v1  ;;  %v1520_v8 = vadd.f32 %v1519_v54, %v5867_v50  ;;  %4343 = vmatprep.subr.bf16.mxu1 %v4342_v18  ;;  %v2698_v52 = vmul.f32 %v5183_v7, %v5169_v35  ;;  %v1518_v60 = vadd.f32 %v1517_v44, %v5894_v2 }
 0x280   : > { %v5187_v10 = vpop.eup %5186  ;;  %5204 = vrcp.f32 %v2317_v21  ;;  %4345 = vmatpush3.bf16.xpose.msra.mxu1 %v7269_v12 }
 0x281   : > { %v5189_v26 = vpop.eup %5188  ;;  %5206 = vtanh.f32 %v1500_v22  ;;  %v3906_v48 = vmul.f32 -1.442695, %v1520_v8  ;;  %v1523_v6 = vpop.f32.mrb[192].mxu0 }
 0x282   : > { %v5191_v5 = vpop.eup %5190  ;;  %v2318_v37 = vadd.f32 1.0, %v5189_v26  ;;  %v1525_v49 = vpop.f32.mrb[193].mxu0  ;;  %5208 = vtanh.f32 %v1656_v43  ;;  %v7270_v43 = vpack.c.bf16 %v6647_v57, %v6637_v0 }
 0x283   : > { %v5193_v14 = vpop.eup %5192  ;;  %5210 = vpow2.f32 %v3906_v48  ;;  %v1526_v35 = vadd.f32 %v1525_v49, %v5867_v50  ;;  %v2699_v11 = vmul.f32 %v5191_v5, %v5177_v19  ;;  %v1670_v5 = vadd.f32 %v6522_v63, %v5867_v50 }
 0x284   : > { %v5195_v61 = vpop.eup %5194  ;;  %5212 = vrcp.f32 %v2318_v37 }
 0x285   : > { %v5197_v51 = vpop.eup %5196  ;;  %5214 = vtanh.f32 %v1506_v9  ;;  %v3907_v25 = vmul.f32 -1.442695, %v1526_v35  ;;  %v1529_v13 = vpop.f32.mrb[194].mxu0  ;;  %v4346_v47 = vpack.c.bf16 %v2699_v11, %v2698_v52  ;;  %v2344_v7 = vadd.f32 1.0, %v5195_v61 }
 0x286   : > { %v5199_v22 = vpop.eup %5198  ;;  %v2319_v1 = vadd.f32 1.0, %v5197_v51  ;;  %v1531_v18 = vpop.f32.mrb[195].mxu0  ;;  %5216 = vpow2.f32 %v3930_v59  ;;  %v1524_v59 = vadd.f32 %v1523_v6, %v5894_v2 }
 0x287   : > { %5218 = vpow2.f32 %v3907_v25  ;;  %v1532_v21 = vadd.f32 %v1531_v18, %v5867_v50  ;;  %4347 = vmatprep.subr.bf16.mxu1 %v4346_v47  ;;  %v2700_v54 = vmul.f32 %v5199_v22, %v5187_v10  ;;  %v5201_v19 = vpop.eup %5200  ;;  %v1662_v10 = vadd.f32 %v6503_v17, %v5894_v2 }
 0x288   : > { %5220 = vrcp.f32 %v2319_v1  ;;  %4349 = vmatpush3.bf16.xpose.msra.mxu1 %v7270_v43  ;;  %v6758_v12 = vmul.f32 %v5201_v19, %v5185_v40  ;;  %v7271_v1 = vpack.c.bf16 %v6659_v41, %v6655_v20  ;;  %v1530_v43 = vadd.f32 %v1529_v13, %v5894_v2 }
 0x289   : > { %v5203_v38 = vpop.eup %5202  ;;  %5222 = vtanh.f32 %v1512_v33  ;;  %v3908_v8 = vmul.f32 -1.442695, %v1532_v21  ;;  %v1535_v52 = vpop.f32.mrb[196].mxu0  ;;  %v3931_v33 = vmul.f32 -1.442695, %v1670_v5 }
 0x28a   : > { %v5205_v26 = vpop.eup %5204  ;;  %v2320_v9 = vadd.f32 1.0, %v5203_v38  ;;  %5224 = vrcp.f32 %v2344_v7  ;;  %v1537_v48 = vpop.f32.mrb[197].mxu0  ;;  %v4370_v44 = vpack.c.bf16 %v6758_v12, %v6740_v46 }
 0x28b   : > { %v5207_v0 = vpop.eup %5206  ;;  %5226 = vpow2.f32 %v3908_v8  ;;  %v1538_v57 = vadd.f32 %v1537_v48, %v5867_v50  ;;  %v2701_v37 = vmul.f32 %v5205_v26, %v5193_v14  ;;  %v1536_v26 = vadd.f32 %v1535_v52, %v5894_v2 }
 0x28c   : > { %v5209_v40 = vpop.eup %5208  ;;  %5228 = vrcp.f32 %v2320_v9 }
 0x28d   : > { %v5211_v49 = vpop.eup %5210  ;;  %5230 = vtanh.f32 %v1518_v60  ;;  %v3909_v35 = vmul.f32 -1.442695, %v1538_v57  ;;  %v1541_v17 = vpop.f32.mrb[198].mxu0  ;;  %v4350_v11 = vpack.c.bf16 %v2701_v37, %v2700_v54  ;;  %v1676_v60 = vadd.f32 %v6527_v39, %v5867_v50 }
 0x28e   : > { %v5213_v61 = vpop.eup %5212  ;;  %v2321_v51 = vadd.f32 1.0, %v5211_v49  ;;  %5232 = vtanh.f32 %v1662_v10  ;;  %v1543_v63 = vpop.f32.mrb[199].mxu0 }
 0x28f   : > { %v5215_v25 = vpop.eup %5214  ;;  %5234 = vpow2.f32 %v3909_v35  ;;  %v1544_v14 = vadd.f32 %v1543_v63, %v5867_v50  ;;  %4351 = vmatprep.subr.bf16.mxu1 %v4350_v11  ;;  %v2702_v47 = vmul.f32 %v5213_v61, %v5207_v0  ;;  %v3932_v37 = vmul.f32 -1.442695, %v1676_v60 }
 0x290   : > { %v5217_v22 = vpop.eup %5216  ;;  %5236 = vrcp.f32 %v2321_v51  ;;  %4353 = vmatpush3.bf16.xpose.msra.mxu1 %v7271_v1  ;;  %v7272_v51 = vpack.c.bf16 %v6675_v34, %v6671_v53  ;;  %v1688_v34 = vadd.f32 %v6560_v28, %v5867_v50 }
 0x291   : > { %v5219_v6 = vpop.eup %5218  ;;  %5238 = vtanh.f32 %v1524_v59  ;;  %v2345_v18 = vadd.f32 1.0, %v5217_v22  ;;  %v3910_v7 = vmul.f32 -1.442695, %v1544_v14  ;;  %v1547_v21 = vpop.f32.mrb[200].mxu0  ;;  %v1668_v59 = vadd.f32 %v6517_v58, %v5894_v2 }
 0x292   : > { %v5221_v54 = vpop.eup %5220  ;;  %v2322_v19 = vadd.f32 1.0, %v5219_v6  ;;  %5240 = vpow2.f32 %v3931_v33  ;;  %v1549_v38 = vpop.f32.mrb[201].mxu0 }
 0x293   : > { %v5223_v8 = vpop.eup %5222  ;;  %5242 = vrcp.f32 %v2345_v18  ;;  %v1550_v20 = vadd.f32 %v1549_v38, %v5867_v50  ;;  %v2703_v41 = vmul.f32 %v5221_v54, %v5215_v25 }
 0x294   : > { %v5225_v9 = vpop.eup %5224  ;;  %5244 = vrcp.f32 %v2322_v19  ;;  %v1548_v19 = vadd.f32 %v1547_v21, %v5894_v2 }
 0x295   : > { %v5227_v10 = vpop.eup %5226  ;;  %5246 = vpow2.f32 %v3910_v7  ;;  %v3911_v48 = vmul.f32 -1.442695, %v1550_v20  ;;  %v6777_v5 = vpop.f32.mrb[202].mxu0  ;;  %v4354_v13 = vpack.c.bf16 %v2703_v41, %v2702_v47  ;;  %v6779_v0 = vmul.f32 %v5225_v9, %v5209_v40 }
 0x296   : > { %v5229_v57 = vpop.eup %5228  ;;  %5248 = vtanh.f32 %v1530_v43  ;;  %v2323_v39 = vadd.f32 1.0, %v5227_v10  ;;  %v1555_v49 = vpop.f32.mrb[203].mxu0  ;;  %v1682_v40 = vadd.f32 %v6543_v32, %v5867_v50  ;;  %v1542_v47 = vadd.f32 %v1541_v17, %v5894_v2 }
 0x297   : > { %v5231_v52 = vpop.eup %5230  ;;  %5250 = vtanh.f32 %v1536_v26  ;;  %v1556_v35 = vadd.f32 %v1555_v49, %v5867_v50  ;;  %4355 = vmatprep.subr.bf16.mxu1 %v4354_v13  ;;  %v2704_v11 = vmul.f32 %v5229_v57, %v5223_v8  ;;  %v1674_v20 = vadd.f32 %v6525_v15, %v5894_v2 }
 0x298   : > { %v5233_v61 = vpop.eup %5232  ;;  %5252 = vrcp.f32 %v2323_v39  ;;  %4357 = vmatpush3.bf16.xpose.msra.mxu1 %v7272_v51  ;;  %v3933_v32 = vmul.f32 -1.442695, %v1682_v40  ;;  %v7273_v10 = vpack.c.bf16 %v6691_v42, %v6681_v4  ;;  %v3934_v57 = vmul.f32 -1.442695, %v1688_v34 }
 0x299   : > { %v5235_v63 = vpop.eup %5234  ;;  %5254 = vpow2.f32 %v3911_v48  ;;  %v3912_v33 = vmul.f32 -1.442695, %v1556_v35  ;;  %v6789_v25 = vpop.f32.mrb[204].mxu0  ;;  %v7274_v15 = vpack.c.bf16 %v6685_v36, %v6665_v31 }
 0x29a   : > { %v5237_v14 = vpop.eup %5236  ;;  %v2324_v58 = vadd.f32 1.0, %v5235_v63  ;;  %5256 = vpow2.f32 %v3932_v37  ;;  %v1561_v22 = vpop.f32.mrb[205].mxu0 }
 0x29b   : > { %v5239_v1 = vpop.eup %5238  ;;  %5258 = vtanh.f32 %v1668_v59  ;;  %v2705_v6 = vmul.f32 %v5237_v14, %v5231_v52  ;;  %v1562_v53 = vadd.f32 %v1561_v22, %v5867_v50  ;;  %v1680_v14 = vadd.f32 %v6538_v56, %v5894_v2 }
 0x29c   : > { %v5241_v18 = vpop.eup %5240  ;;  %5260 = vrcp.f32 %v2324_v58 }
 0x29d   : > { %v5243_v7 = vpop.eup %5242  ;;  %v2346_v54 = vadd.f32 1.0, %v5241_v18  ;;  %5262 = vpow2.f32 %v3912_v33  ;;  %v6796_v43 = vpop.f32.mrb[206].mxu0  ;;  %v4358_v17 = vpack.c.bf16 %v2705_v6, %v2704_v11  ;;  %v3913_v21 = vmul.f32 -1.442695, %v1562_v53 }
 0x29e   : > { %v5245_v38 = vpop.eup %5244  ;;  %5264 = vtanh.f32 %v1542_v47  ;;  %v1567_v60 = vpop.f32.mrb[207].mxu0  ;;  %v6798_v8 = vmul.f32 %v5243_v7, %v5233_v61  ;;  %v1554_v11 = vadd.f32 %v6777_v5, %v5894_v2  ;;  %v1694_v61 = vadd.f32 %v6580_v16, %v5867_v50  ;;  %v6822_v5 = vld [vmem:[%s7181_s3] sm:$0x1] }
 0x29f   : > { %v5247_v26 = vpop.eup %5246  ;;  %5266 = vrcp.f32 %v2346_v54  ;;  %4359 = vmatprep.subr.bf16.mxu1 %v4358_v17  ;;  %v2706_v28 = vmul.f32 %v5245_v38, %v5239_v1  ;;  %v1568_v39 = vadd.f32 %v1567_v60, %v5867_v50  ;;  %v1560_v18 = vadd.f32 %v6789_v25, %v5894_v2 }
 0x2a0   : > { %v5249_v41 = vpop.eup %5248  ;;  %v2325_v9 = vadd.f32 1.0, %v5247_v26  ;;  %5268 = vpow2.f32 %v3933_v32  ;;  %4361 = vmatpush3.bf16.xpose.msra.mxu1 %v7273_v10  ;;  %v4374_v48 = vpack.c.bf16 %v6798_v8, %v6779_v0  ;;  %v3935_v22 = vmul.f32 -1.442695, %v1694_v61 }
 0x2a1   : > { %v5251_v13 = vpop.eup %5250  ;;  %5270 = vtanh.f32 %v1548_v19  ;;  %v6808_v37 = vpop.f32.mrb[208].mxu0  ;;  %4363 = vmatprep.subr.bf16.mxu1 %v7274_v15  ;;  %v3914_v31 = vmul.f32 -1.442695, %v1568_v39  ;;  %v1686_v7 = vadd.f32 %v6549_v30, %v5894_v2  ;;  %v1700_v54 = vadd.f32 %v6595_v27, %v5867_v50  ;;  %v7275_v39 = vld [vmem:[#allocation35_spill] sm:$0xff] }
 0x2a2   : > { %v5253_v49 = vpop.eup %5252  ;;  %5272 = vrcp.f32 %v2325_v9  ;;  %v1573_v52 = vpop.f32.mrb[209].mxu0  ;;  %v1566_v27 = vadd.f32 %v6796_v43, %v5894_v2  ;;  %v1692_v43 = vadd.f32 %v7275_v39, %v5894_v2  ;;  %v7283_v39 = vld [vmem:[#allocation37_spill] sm:$0xff] }
 0x2a3   : > { %v5255_v59 = vpop.eup %5254  ;;  %5274 = vtanh.f32 %v1674_v20  ;;  %v2707_v4 = vmul.f32 %v5253_v49, %v5249_v41  ;;  %v1574_v1 = vadd.f32 %v1573_v52, %v5867_v50  ;;  %v3936_v26 = vmul.f32 -1.442695, %v1700_v54 }
 0x2a4   : > { %v5257_v42 = vpop.eup %5256  ;;  %v2326_v35 = vadd.f32 1.0, %v5255_v59  ;;  %5276 = vpow2.f32 %v3913_v21  ;;  %v1712_v41 = vadd.f32 %v6624_v23, %v5867_v50 }
 0x2a5   : > { %v5259_v40 = vpop.eup %5258  ;;  %v2347_v51 = vadd.f32 1.0, %v5257_v42  ;;  %5278 = vpow2.f32 %v3934_v57  ;;  %v4364_v36 = vpack.c.bf16 %v2707_v4, %v2706_v28  ;;  %v3915_v45 = vmul.f32 -1.442695, %v1574_v1 }
 0x2a6   : > { %v5261_v63 = vpop.eup %5260  ;;  %5280 = vrcp.f32 %v2326_v35  ;;  %v1572_v35 = vadd.f32 %v6808_v37, %v5894_v2 }
 0x2a7   : > { %v5263_v33 = vpop.eup %5262  ;;  %5282 = vrcp.f32 %v2347_v51  ;;  %4047 = vmatmul.mubr.f32.vlgmr.msra.gmra.mrb[50].mxu1 %v6822_v5  ;;  %v2708_v16 = vmul.f32 %v5261_v63, %v5251_v13  ;;  %v7276_v51 = vld [vmem:[#allocation36_spill] sm:$0xff] }
 0x2a8   : > { %v5265_v58 = vpop.eup %5264  ;;  %5284 = vtanh.f32 %v1554_v11  ;;  %v2327_v47 = vadd.f32 1.0, %v5263_v33  ;;  %4365 = vmatpush3.bf16.xpose.msra.mxu1 %v4364_v36  ;;  %4080 = vmatprep.mubr.f32.mxu1 %v6822_v5  ;;  %v7277_v33 = vld [vmem:[#allocation38_spill] sm:$0xff] }
 0x2a9   : > { %v5267_v6 = vpop.eup %5266  ;;  %5286 = vpow2.f32 %v3914_v31  ;;  %4367 = vmatprep.subr.bf16.mxu1 %v4366_v62  ;;  %v1706_v62 = vadd.f32 %v6613_v29, %v5867_v50  ;;  %v3938_v50 = vmul.f32 -1.442695, %v1712_v41  ;;  %v1698_v31 = vadd.f32 %v7276_v51, %v5894_v2 }
 0x2aa   : > { %v5269_v56 = vpop.eup %5268  ;;  %5288 = vrcp.f32 %v2327_v47  ;;  %v6832_v32 = vmul.f32 %v5267_v6, %v5259_v40 }
 0x2ab   : > { %v5271_v53 = vpop.eup %5270  ;;  %5290 = vtanh.f32 %v1680_v14  ;;  %v2348_v34 = vadd.f32 1.0, %v5269_v56  ;;  %v3937_v29 = vmul.f32 -1.442695, %v1706_v62  ;;  %v1704_v14 = vadd.f32 %v7277_v33, %v5894_v2  ;;  %v7278_v56 = vld [vmem:[#allocation39_spill] sm:$0xff] }
 0x2ac   : > { %v5273_v19 = vpop.eup %5272  ;;  %5292 = vpow2.f32 %v3935_v22  ;;  %v1710_v0 = vadd.f32 %v7278_v56, %v5894_v2 }
 0x2ad   : > { %v5275_v3 = vpop.eup %5274  ;;  %5294 = vrcp.f32 %v2348_v34  ;;  %v2709_v25 = vmul.f32 %v5273_v19, %v5265_v58 }
 0x2ae   : > { %v5277_v17 = vpop.eup %5276  ;;  %5296 = vtanh.f32 %v1560_v18 }
 0x2af   : > { %v5279_v38 = vpop.eup %5278  ;;  %5298 = vtanh.f32 %v1686_v7  ;;  %v2328_v60 = vadd.f32 1.0, %v5277_v17  ;;  %v4368_v20 = vpack.c.bf16 %v2709_v25, %v2708_v16 }
 0x2b0   : > { %v5281_v30 = vpop.eup %5280  ;;  %v2349_v28 = vadd.f32 1.0, %v5279_v38  ;;  %5300 = vpow2.f32 %v3915_v45 }
 0x2b1   : > { %v5283_v9 = vpop.eup %5282  ;;  %5302 = vrcp.f32 %v2328_v60  ;;  %4369 = vmatpush3.bf16.xpose.msra.mxu1 %v4368_v20  ;;  %v2710_v21 = vmul.f32 %v5281_v30, %v5271_v53  ;;  %v7279_v60 = vld [vmem:[#allocation31_spill] sm:$0xff] }
 0x2b2   : > { %v5285_v10 = vpop.eup %5284  ;;  %5304 = vrcp.f32 %v2349_v28  ;;  %4371 = vmatprep.subr.bf16.mxu1 %v4370_v44  ;;  %v2731_v13 = vmul.f32 %v5283_v9, %v5275_v3 }
 0x2b3   : > { %v5287_v57 = vpop.eup %5286  ;;  %5306 = vpow2.f32 %v3936_v26 }
 0x2b4   : > { %v5289_v15 = vpop.eup %5288  ;;  %5308 = vtanh.f32 %v1566_v27  ;;  %v2329_v23 = vadd.f32 1.0, %v5287_v57  ;;  %v4378_v49 = vpack.c.bf16 %v2731_v13, %v6832_v32  ;;  %v7281_v13 = vld [vmem:[#allocation32_spill] sm:$0xff] }
 0x2b5   : > { %v5291_v52 = vpop.eup %5290  ;;  %5310 = vpow2.f32 %v3937_v29  ;;  %v2711_v59 = vmul.f32 %v5289_v15, %v5285_v10  ;;  %v7280_v10 = vld [vmem:[#allocation33_spill] sm:$0xff] }
 0x2b6   : > { %v5293_v4 = vpop.eup %5292  ;;  %5312 = vrcp.f32 %v2329_v23  ;;  %v7282_v57 = vpack.c.bf16 %v7280_v10, %v7281_v13  ;;  %v7286_v23 = vld [vmem:[#allocation41_spill] sm:$0xff] }
 0x2b7   : > { %v5295_v42 = vpop.eup %5294  ;;  %5314 = vtanh.f32 %v1692_v43  ;;  %v2350_v46 = vadd.f32 1.0, %v5293_v4  ;;  %v4372_v12 = vpack.c.bf16 %v2711_v59, %v2710_v21  ;;  %v7284_v43 = vld [vmem:[#allocation34_spill] sm:$0xff] }
 0x2b8   : > { %v5297_v44 = vpop.eup %5296  ;;  %5316 = vpow2.f32 %v3938_v50  ;;  %v2732_v11 = vmul.f32 %v5295_v42, %v5291_v52  ;;  %v7285_v15 = vpack.c.bf16 %v7283_v39, %v7284_v43  ;;  %v7287_v50 = vld [vmem:[#allocation40_spill] sm:$0xff] }
 0x2b9   : > { %v5299_v61 = vpop.eup %5298  ;;  %5318 = vrcp.f32 %v2350_v46  ;;  %4373 = vmatpush3.bf16.xpose.msra.mxu1 %v4372_v12  ;;  %v7289_v46 = vlaneseq }
 0x2ba   : > { %v5301_v40 = vpop.eup %5300  ;;  %4375 = vmatprep.subr.bf16.mxu1 %v4374_v48  ;;  %5320 = vtanh.f32 %v1572_v35 }
 0x2bb   : > { %v5303_v36 = vpop.eup %5302  ;;  %v2330_v63 = vadd.f32 1.0, %v5301_v40  ;;  %v3027_v12 = vand.u32 127, %v7289_v46 }
 0x2bc   : > { %v5305_v16 = vpop.eup %5304  ;;  %v2712_v37 = vmul.f32 %v5303_v36, %v5297_v44  ;;  %v3035_v44 = vstv %s3939_s28  ;;  %v2740_v36 = vstv %s2739_s27 }
 0x2bd   : > { %v5307_v58 = vpop.eup %5306  ;;  %5322 = vrcp.f32 %v2330_v63  ;;  %v2733_v47 = vmul.f32 %v5305_v16, %v5299_v61  ;;  %v3028_v35 = vadd.s32 128, %v3027_v12  ;;  %v3030_v61 = vadd.s32 384, %v3027_v12 }
 0x2be   : > { %v5309_v22 = vpop.eup %5308  ;;  %5324 = vtanh.f32 %v1698_v31  ;;  %v2351_v1 = vadd.f32 1.0, %v5307_v58  ;;  %v3036_v40 = vadd.s32 %v3035_v44, %v3027_v12  ;;  %v3031_v51 = vadd.s32 512, %v3027_v12 }
 0x2bf   : > { %v5311_v6 = vpop.eup %5310  ;;  %5326 = vtanh.f32 %v1704_v14  ;;  %v4382_v8 = vpack.c.bf16 %v2733_v47, %v2732_v11  ;;  %v3029_v11 = vadd.s32 256, %v3027_v12  ;;  %v3032_v31 = vadd.s32 640, %v3027_v12 }
 0x2c0   : > { %v5313_v48 = vpop.eup %5312  ;;  %5328 = vrcp.f32 %v2351_v1  ;;  %v2352_v18 = vadd.f32 1.0, %v5311_v6  ;;  %v3037_v63 = vadd.s32 %v3035_v44, %v3028_v35  ;;  %v3039_v14 = vadd.s32 %v3035_v44, %v3030_v61 }
 0x2c1   : > { %v5315_v32 = vpop.eup %5314  ;;  %v2713_v53 = vmul.f32 %v5313_v48, %v5309_v22  ;;  %v3038_v33 = vadd.s32 %v3035_v44, %v3029_v11  ;;  %vm3044_vm3 = vcmp.lt.s32.totalorder %v3036_v40, 2600  ;;  %v2810_v58 = vadd.f32 %v6737_v24, %v2740_v36  ;;  %v5356_v40 = vld [vmem:[%s5585_s17 + $0x80] sm:$0xff] }
 0x2c2   : > { %v5317_v34 = vpop.eup %5316  ;;  %5330 = vrcp.f32 %v2352_v18  ;;  %v3040_v47 = vadd.s32 %v3035_v44, %v3031_v51  ;;  %v3041_v22 = vadd.s32 %v3035_v44, %v3032_v31  ;;  %vm3045_vm4 = vcmp.lt.s32.totalorder %v3037_v63, 2600  ;;  %v5357_v51 = vld [vmem:[%s5585_s17 + $0x88] sm:$0xff]  ;;  %v5359_v63 = vld [vmem:[%s5585_s17 + $0x98] sm:$0xff] }
 0x2c3   : > { %v5319_v7 = vpop.eup %5318  ;;  %5332 = vtanh.f32 %v1710_v0  ;;  %v2353_v54 = vadd.f32 1.0, %v5317_v34  ;;  %v4376_v19 = vpack.c.bf16 %v2713_v53, %v2712_v37  ;;  %v2808_v37 = vadd.f32 %v6734_v55, %v2740_v36 }
 0x2c4   : > { %v2734_v45 = vmul.f32 %v5319_v7, %v5315_v32  ;;  %v5321_v3 = vpop.eup %5320  ;;  %v3033_v56 = vadd.s32 768, %v3027_v12  ;;  %vm3046_vm5 = vcmp.lt.s32.totalorder %v3038_v33, 2600  ;;  %vm3047_vm6 = vcmp.lt.s32.totalorder %v3039_v14, 2600 }
 0x2c5   : > { %5334 = vrcp.f32 %v2353_v54  ;;  %4377 = vmatpush3.bf16.xpose.msra.mxu1 %v4376_v19  ;;  %v3034_v0 = vadd.s32 896, %v3027_v12  ;;  %v6877_v32 = vsel %vm3044_vm3, %v2808_v37, -1e+30  ;;  %v6879_v53 = vsel %vm3045_vm4, %v2810_v58, -1e+30  ;;  %v7290_v19 = vld [vmem:[#allocation23_spill] sm:$0xff] }
 0x2c6   : > { %4379 = vmatprep.subr.bf16.mxu1 %v4378_v49  ;;  %v7288_v49 = vpack.c.bf16 %v7286_v23, %v7287_v50  ;;  %vm3048_vm7 = vcmp.lt.s32.totalorder %v3040_v47, 2600  ;;  %vm3049_vm8 = vcmp.lt.s32.totalorder %v3041_v22, 2600  ;;  %v3042_v34 = vadd.s32 %v3035_v44, %v3033_v56  ;;  %v5360_v58 = vld [vmem:[%s5585_s17 + $0xa0] sm:$0xff]  ;;  %v5361_v47 = vld [vmem:[%s5585_s17 + $0xa8] sm:$0xff] }
 0x2c7   : > { %v5323_v62 = vpop.eup %5322  ;;  %v3043_v7 = vadd.s32 %v3035_v44, %v3034_v0  ;;  %v3068_v54 = vcombine.low %v6877_v32, %v6879_v53  ;;  %v4394_v31 = vpack.c.bf16 %v5357_v51, %v5356_v40  ;;  %v5509_v14 = vmov 0   ;;  %v5362_v0 = vld [vmem:[%s5585_s17 + $0xb0] sm:$0xff]  ;;  %v7312_v51 = vld [vmem:[#allocation25_spill] sm:$0xff] }
 0x2c8   : > { %v5325_v25 = vpop.eup %5324  ;;  %v2714_v2 = vmul.f32 %v5323_v62, %v5321_v3  ;;  %vm3050_vm10 = vcmp.lt.s32.totalorder %v3042_v34, 2600  ;;  %4566 = vset.pattern.permute.xlu0 %v5509_v14  ;;  %4567 = vset.pattern.permute.xlu1 %v5509_v14  ;;  %v4402_v22 = vpack.c.bf16 %v5361_v47, %v5360_v58  ;;  %v7298_v34 = vld [vmem:[#allocation13_spill] sm:$0xff] }
 0x2c9   : > { %v5327_v17 = vpop.eup %5326  ;;  %vm3051_vm11 = vcmp.lt.s32.totalorder %v3043_v7, 2600 }
 0x2ca   : > { %v5329_v38 = vpop.eup %5328  ;;  %v4380_v26 = vpack.c.bf16 %v7279_v60, %v2714_v2 }
 0x2cb   : > { %v2735_v20 = vmul.f32 %v5329_v38, %v5325_v25 }
 0x2cc   : > { %v5331_v30 = vpop.eup %5330 }
 0x2cd   : > { %v5333_v28 = vpop.eup %5332  ;;  %4381 = vmatpush3.bf16.xpose.msra.mxu1 %v4380_v26  ;;  %v4386_v27 = vpack.c.bf16 %v2735_v20, %v2734_v45  ;;  %v2736_v41 = vmul.f32 %v5331_v30, %v5327_v17  ;;  %v3121_v20 = vsel %vm3120_vm9, %v6877_v32, -inf }
 0x2ce   : > { %4383 = vmatprep.subr.bf16.mxu1 %v4382_v8 }
 0x2cf   : > { %v5335_v9 = vpop.eup %5334 }
 0x2d0   : > { %v2737_v29 = vmul.f32 %v5335_v9, %v5333_v28  ;;  %v3122_v28 = vsel %vm3120_vm9, %v6879_v53, -inf }
 0x2d2   : > { %v4390_v21 = vpack.c.bf16 %v2737_v29, %v2736_v41 }
 0x2d5   : > { %4385 = vmatpush3.bf16.xpose.msra.mxu1 %v7282_v57 }
 0x2d6   : > { %4387 = vmatprep.subr.bf16.mxu1 %v4386_v27 }
 0x2dd   : > { %4389 = vmatpush3.bf16.xpose.msra.mxu1 %v7285_v15 }
 0x2de   : > { %4391 = vmatprep.subr.bf16.mxu1 %v4390_v21 }
 0x2e5   : > { %4393 = vmatpush3.bf16.xpose.msra.mxu1 %v7288_v49 }
 0x2e6   : > { %4395 = vmatprep.subr.bf16.mxu1 %v4394_v31 }
 0x2ec   : > { %4081 = vmatmul.mubr.f32.vlgmr.msra.gmra.mrb[52].mxu1 %v6822_v5  ;;  %v5508_v5 = vmov 1966171168  }
 0x2ed   : > { %v3073_v16 = vunpack.c.l.s4 %v5508_v5  ;;  %v7291_v5 = vld [vmem:[#allocation10_spill] sm:$0xff] }
 0x2ef   : > { %v3074_v8 = vunpack.c.0.s8 %v3073_v16  ;;  %v7292_v16 = vld [vmem:[#allocation9_spill] sm:$0xff] }
 0x2f0   : > { %v7293_v37 = vpack.c.bf16 %v7291_v5, %v7292_v16 }
 0x2f1   : > { %v3077_v45 = vsub.s32 %v3074_v8, %v7290_v19  ;;  %v5363_v8 = vld [vmem:[%s5585_s17 + $0xb8] sm:$0xff] }
 0x2f2   : > { %4397 = vmatpush3.bf16.msra.mxu1 %v7293_v37  ;;  %v7301_v19 = vld [vmem:[#allocation15_spill] sm:$0xff] }
 0x2f3   : > { %v3078_v30 = vrot.slane %v3068_v54, %v3077_v45  ;;  %v7300_v54 = vld [vmem:[#allocation16_spill] sm:$0xff] }
 0x2fa   : > { %v2878_v52 = vpop.f32.mrb[48].mxu1 }
 0x2fb   : > { %v2880_v59 = vpop.f32.mrb[49].mxu1  ;;  %v2879_v1 = vadd.f32 %v2878_v52, %v2740_v36 }
 0x2fc   : > { %v2881_v6 = vadd.f32 %v2880_v59, %v2740_v36 }
 0x2fd   : > { %v6881_v55 = vsel %vm3046_vm5, %v2879_v1, -1e+30  ;;  %v7294_v1 = vld [vmem:[#allocation12_spill] sm:$0xff] }
 0x2fe   : > { %v6883_v24 = vsel %vm3047_vm6, %v2881_v6, -1e+30  ;;  %v3123_v41 = vsel %vm3120_vm9, %v6881_v55, -inf  ;;  %v7295_v6 = vld [vmem:[#allocation11_spill] sm:$0xff] }
 0x2ff   : > { %v3069_v25 = vcombine.low %v6881_v55, %v6883_v24  ;;  %v3124_v43 = vsel %vm3120_vm9, %v6883_v24, -inf  ;;  %v7296_v56 = vpack.c.bf16 %v7294_v1, %v7295_v6  ;;  %v5376_v6 = vld [vmem:[%s5585_s17 + $0x100] sm:$0xff] }
 0x301   : > { %v3085_v9 = vrot.slane %v3069_v25, %v3077_v45  ;;  %v6943_v25 = vld [vmem:[#allocation2] sm:$0x1] }
 0x303   : > { %v3100_v52 = vcombine.low %v3078_v30, %v3085_v9  ;;  %v5366_v30 = vld [vmem:[%s5585_s17 + $0xd0] sm:$0xff]  ;;  %v7304_v9 = vld [vmem:[#allocation17_spill] sm:$0xff] }
 0x305   : > { %v3108_v35 = vrot.slane %v3100_v52, %v3077_v45 }
 0x37a   : > { %v2949_v4 = vpop.f32.mrb[50].mxu1 }
 0x37b   : > { %v2951_v42 = vpop.f32.mrb[51].mxu1  ;;  %v2950_v48 = vadd.f32 %v2949_v4, %v2740_v36 }
 0x37c   : > { %v2952_v18 = vadd.f32 %v2951_v42, %v2740_v36 }
 0x37d   : > { %v6888_v3 = vsel %vm3048_vm7, %v2950_v48, -1e+30  ;;  %v4406_v48 = vpack.c.bf16 %v5363_v8, %v5362_v0  ;;  %v5378_v8 = vld [vmem:[%s5585_s17 + $0x190] sm:$0xff] }
 0x37e   : > { %v6890_v62 = vsel %vm3049_vm8, %v2952_v18, -1e+30  ;;  %v3125_v17 = vsel %vm3120_vm9, %v6888_v3, -inf  ;;  %v7297_v18 = vld [vmem:[#allocation14_spill] sm:$0xff] }
 0x37f   : > { %v3127_v38 = vsel %vm3120_vm9, %v6890_v62, -inf  ;;  %v3070_v29 = vcombine.low %v6888_v3, %v6890_v62  ;;  %v3126_v57 = vmax.f32 %v3121_v20, %v3125_v17  ;;  %v7299_v7 = vpack.c.bf16 %v7297_v18, %v7298_v34 }
 0x380   : > { %v3128_v39 = vmax.f32 %v3122_v28, %v3127_v38  ;;  %v5367_v28 = vld [vmem:[%s5585_s17 + $0xd8] sm:$0xff] }
 0x381   : > { %v3092_v59 = vrot.slane %v3070_v29, %v3077_v45 }
 0x382   : > { %v3133_v42 = vmax.f32 %v3126_v57, %v3128_v39  ;;  %v5369_v57 = vld [vmem:[%s5585_s17 + $0xe8] sm:$0xff] }
 0x3bf   : > { %v3020_v2 = vpop.f32.mrb[52].mxu1 }
 0x3c0   : > { %v3021_v60 = vadd.f32 %v3020_v2, %v2740_v36  ;;  %v3022_v26 = vpop.f32.mrb[53].mxu1 }
 0x3c1   : > { %v3023_v27 = vadd.f32 %v3022_v26, %v2740_v36  ;;  %v5358_v36 = vld [vmem:[%s5585_s17 + $0x90] sm:$0xff]  ;;  %v5365_v26 = vld [vmem:[%s5585_s17 + $0xc8] sm:$0xff] }
 0x3c2   : > { %v6906_v21 = vsel %vm3050_vm10, %v3021_v60, -1e+30  ;;  %v4398_v33 = vpack.c.bf16 %v5359_v63, %v5358_v36  ;;  %v5364_v60 = vld [vmem:[%s5585_s17 + $0xc0] sm:$0xff] }
 0x3c3   : > { %v3129_v10 = vsel %vm3120_vm9, %v6906_v21, -inf  ;;  %v6910_v13 = vsel %vm3051_vm11, %v3023_v27, -1e+30  ;;  %v4410_v20 = vpack.c.bf16 %v5365_v26, %v5364_v60  ;;  %v4414_v27 = vpack.c.bf16 %v5367_v28, %v5366_v30  ;;  %v5382_v30 = vld [vmem:[%s5585_s17 + $0x1a0] sm:$0xff]  ;;  %v5383_v28 = vld [vmem:[%s5585_s17 + $0x1a8] sm:$0xff] }
 0x3c4   : > { %v3071_v15 = vcombine.low %v6906_v21, %v6910_v13  ;;  %v3131_v23 = vsel %vm3120_vm9, %v6910_v13, -inf  ;;  %v3130_v50 = vmax.f32 %v3123_v41, %v3129_v10  ;;  %4399 = vmatprep.subr.bf16.mxu1 %v4398_v33  ;;  %v7303_v41 = vld [vmem:[#allocation18_spill] sm:$0xff]  ;;  %v5368_v10 = vld [vmem:[%s5585_s17 + $0xe0] sm:$0xff] }
 0x3c5   : > { %v3132_v49 = vmax.f32 %v3124_v43, %v3131_v23  ;;  %4401 = vmatpush3.bf16.msra.mxu1 %v7296_v56  ;;  %v7305_v29 = vpack.c.bf16 %v7303_v41, %v7304_v9  ;;  %v4418_v39 = vpack.c.bf16 %v5369_v57, %v5368_v10  ;;  %v7306_v43 = vld [vmem:[#allocation20_spill] sm:$0xff]  ;;  %v5377_v56 = vld [vmem:[%s5585_s17 + $0x108] sm:$0xff] }
 0x3c6   : > { %v3099_v4 = vrot.slane %v3071_v15, %v3077_v45  ;;  %4403 = vmatprep.subr.bf16.mxu1 %v4402_v22  ;;  %v7307_v15 = vld [vmem:[#allocation19_spill] sm:$0xff]  ;;  %v4428_v0 = vpack.c.bf16 %v5377_v56, %v5376_v6  ;;  %v5384_v57 = vld [vmem:[%s5585_s17 + $0x120] sm:$0xff]  ;;  %v5401_v6 = vld [vmem:[%s5585_s17 + $0x168] sm:$0xff] }
 0x3c7   : > { %v3134_v46 = vmax.f32 %v3130_v50, %v3132_v49  ;;  %v7308_v23 = vpack.c.bf16 %v7306_v43, %v7307_v15  ;;  %v5370_v50 = vld [vmem:[%s5585_s17 + $0xf0] sm:$0xff]  ;;  %v5371_v49 = vld [vmem:[%s5585_s17 + $0xf8] sm:$0xff] }
 0x3c8   : > { %v3101_v12 = vcombine.low %v3092_v59, %v3099_v4  ;;  %v4422_v52 = vpack.c.bf16 %v5371_v49, %v5370_v50  ;;  %v5372_v59 = vld [vmem:[%s5585_s17 + $0x70] sm:$0xff]  ;;  %v5373_v4 = vld [vmem:[%s5585_s17 + $0x78] sm:$0xff] }
 0x3c9   : > { %v3135_v44 = vmax.f32 %v3133_v42, %v3134_v46  ;;  %4405 = vmatpush3.bf16.msra.mxu1 %v7299_v7  ;;  %v4424_v42 = vpack.c.bf16 %v5373_v4, %v5372_v59  ;;  %v7309_v46 = vld [vmem:[#allocation22_spill] sm:$0xff]  ;;  %v5387_v49 = vld [vmem:[%s5585_s17 + $0x1b8] sm:$0xff] }
 0x3ca   : > { %v3115_v11 = vrot.slane %v3101_v12, %v3077_v45  ;;  %4407 = vmatprep.subr.bf16.mxu1 %v4406_v48  ;;  %v7302_v45 = vpack.c.bf16 %v7300_v54, %v7301_v19  ;;  %v7310_v12 = vld [vmem:[#allocation21_spill] sm:$0xff]  ;;  %v5379_v48 = vld [vmem:[%s5585_s17 + $0x198] sm:$0xff]  ;;  %v5386_v50 = vld [vmem:[%s5585_s17 + $0x1b0] sm:$0xff] }
 0x3cb   : > { %3136 = vmax.xlane.f32.xlu0 %v3135_v44  ;;  %v7311_v44 = vpack.c.bf16 %v7309_v46, %v7310_v12  ;;  %v4430_v18 = vpack.c.bf16 %v5379_v48, %v5378_v8  ;;  %v5388_v12 = vld [vmem:[%s5585_s17 + $0x130] sm:$0xff]  ;;  %v5406_v48 = vld [vmem:[%s5585_s17 + $0x280] sm:$0xff] }
 0x3cc   : > { %v3116_v61 = vcombine.low %v3108_v35, %v3115_v11  ;;  %v5374_v35 = vld [vmem:[%s5585_s17 + $0x180] sm:$0xff]  ;;  %v5375_v11 = vld [vmem:[%s5585_s17 + $0x188] sm:$0xff] }
 0x3cd   : > { %4409 = vmatpush3.bf16.msra.mxu1 %v7302_v45  ;;  %v5380_v45 = vld [vmem:[%s5585_s17 + $0x110] sm:$0xff] }
 0x3ce   : > { %3118 = vst [vmem:[%s329_s20] sm:$0xff] %v3116_v61  ;;  %4411 = vmatprep.subr.bf16.mxu1 %v4410_v20  ;;  %v4426_v61 = vpack.c.bf16 %v5375_v11, %v5374_v35 }
 0x3d1   : > { %4413 = vmatpush3.bf16.msra.mxu1 %v7305_v29 }
 0x3d2   : > { %4415 = vmatprep.subr.bf16.mxu1 %v4414_v27  ;;  %v4434_v27 = vpack.c.bf16 %v5383_v28, %v5382_v30  ;;  %v5412_v30 = vld [vmem:[%s5585_s17 + $0x210] sm:$0xff]  ;;  %v5413_v28 = vld [vmem:[%s5585_s17 + $0x218] sm:$0xff] }
 0x3d5   : > { %4417 = vmatpush3.bf16.msra.mxu1 %v7308_v23 }
 0x3d6   : > { %4419 = vmatprep.subr.bf16.mxu1 %v4418_v39  ;;  %v5385_v39 = vld [vmem:[%s5585_s17 + $0x128] sm:$0xff] }
 0x3d7   : > { %v4436_v43 = vpack.c.bf16 %v5385_v39, %v5384_v57  ;;  %v5416_v57 = vld [vmem:[%s5585_s17 + $0x220] sm:$0xff]  ;;  %v5417_v39 = vld [vmem:[%s5585_s17 + $0x228] sm:$0xff] }
 0x3d9   : > { %4421 = vmatpush3.bf16.msra.mxu1 %v7311_v44  ;;  %v5389_v44 = vld [vmem:[%s5585_s17 + $0x138] sm:$0xff] }
 0x3da   : > { %4423 = vmatprep.subr.bf16.mxu1 %v4422_v52  ;;  %v4438_v52 = vpack.c.bf16 %v5387_v49, %v5386_v50  ;;  %v4440_v35 = vpack.c.bf16 %v5389_v44, %v5388_v12  ;;  %v5420_v49 = vld [vmem:[%s5585_s17 + $0x230] sm:$0xff]  ;;  %v5424_v12 = vld [vmem:[%s5585_s17 + $0x240] sm:$0xff]  ;;  %v5425_v44 = vld [vmem:[%s5585_s17 + $0x248] sm:$0xff] }
 0x3dd   : > { %4425 = vmatpush3.bf16.msra.mxu1 %v4424_v42 }
 0x3de   : > { %4427 = vmatprep.subr.bf16.mxu1 %v4426_v61 }
 0x458   : > { %v3137_v2 = vpop.xlane.xlu0 %3136 }
 0x459   : > { %v6946_v17 = vmax.f32 %v6943_v25, %v3137_v2  ;;  %v5381_v2 = vld [vmem:[%s5585_s17 + $0x118] sm:$0xff] }
 0x45a   : > { %v4432_v60 = vpack.c.bf16 %v5381_v2, %v5380_v45  ;;  %v5410_v2 = vld [vmem:[%s5585_s17 + $0x290] sm:$0xff] }
 0x45b   : > { %v3139_v38 = vsub.f32 %v6943_v25, %v6946_v17  ;;  %3491 = vst.msk [vmem:[#allocation2] sm:$0x1] %vm3195_vm12, %v6946_v17  ;;  %3144 = vperm.xlu0 %4566, %v6946_v17   ;;  %v5402_v17 = vld [vmem:[%s5585_s17 + $0x1f0] sm:$0xff] }
 0x4da   : > { %v3145_v40 = vpop.permute.xlu0 %3144 }
 0x4db   : > { %v3150_v31 = vrot.slane %v3145_v40, %v7312_v51  ;;  %v5390_v40 = vld [vmem:[%s5585_s17 + $0x1c0] sm:$0xff] }
 0x4dd   : > { %v3151_v36 = vsub.f32 %v6877_v32, %v3150_v31  ;;  %v3152_v63 = vsub.f32 %v6879_v53, %v3150_v31  ;;  %v3154_v33 = vsub.f32 %v6883_v24, %v3150_v31  ;;  %v3153_v14 = vsub.f32 %v6881_v55, %v3150_v31 }
 0x4de   : > { %v3155_v5 = vsub.f32 %v6888_v3, %v3150_v31  ;;  %v3156_v47 = vsub.f32 %v6890_v62, %v3150_v31  ;;  %v3157_v32 = vsub.f32 %v6906_v21, %v3150_v31  ;;  %v3158_v55 = vsub.f32 %v6910_v13, %v3150_v31  ;;  %v5391_v31 = vld [vmem:[%s5585_s17 + $0x1c8] sm:$0xff] }
 0x4df   : > { %v3159_v16 = vmul.f32 1.442695, %v3151_v36  ;;  %v3161_v37 = vmul.f32 1.442695, %v3152_v63  ;;  %v3165_v58 = vmul.f32 1.442695, %v3154_v33  ;;  %v4442_v36 = vpack.c.bf16 %v5391_v31, %v5390_v40 }
 0x4e0   : > { %v3163_v22 = vmul.f32 1.442695, %v3153_v14  ;;  %v3167_v53 = vmul.f32 1.442695, %v3155_v5  ;;  %v3169_v24 = vmul.f32 1.442695, %v3156_v47 }
 0x4e1   : > { %5336 = vpow2.f32 %v3159_v16  ;;  %v3171_v3 = vmul.f32 1.442695, %v3157_v32  ;;  %v3173_v1 = vmul.f32 1.442695, %v3158_v55  ;;  %v5392_v14 = vld [vmem:[%s5585_s17 + $0x140] sm:$0xff]  ;;  %v5393_v5 = vld [vmem:[%s5585_s17 + $0x148] sm:$0xff] }
 0x4e2   : > { %5338 = vpow2.f32 %v3161_v37  ;;  %v4444_v16 = vpack.c.bf16 %v5393_v5, %v5392_v14  ;;  %v5394_v37 = vld [vmem:[%s5585_s17 + $0x1d0] sm:$0xff]  ;;  %v5431_v14 = vld [vmem:[%s5585_s17 + $0x2e8] sm:$0xff] }
 0x4e3   : > { %5340 = vpow2.f32 %v3165_v58  ;;  %v5395_v58 = vld [vmem:[%s5585_s17 + $0x1d8] sm:$0xff]  ;;  %v5396_v32 = vld [vmem:[%s5585_s17 + $0x150] sm:$0xff] }
 0x4e4   : > { %5342 = vpow2.f32 %v3163_v22  ;;  %v4446_v47 = vpack.c.bf16 %v5395_v58, %v5394_v37  ;;  %v3140_v22 = vmul.f32 1.442695, %v3139_v38  ;;  %v5403_v38 = vld [vmem:[%s5585_s17 + $0x1f8] sm:$0xff]  ;;  %v5428_v31 = vld [vmem:[%s5585_s17 + $0x250] sm:$0xff]  ;;  %v5433_v37 = vld [vmem:[%s5585_s17 + $0x268] sm:$0xff] }
 0x4e5   : > { %5344 = vpow2.f32 %v3167_v53  ;;  %v5397_v53 = vld [vmem:[%s5585_s17 + $0x158] sm:$0xff]  ;;  %v4454_v56 = vpack.c.bf16 %v5403_v38, %v5402_v17  ;;  %v5442_v38 = vld [vmem:[%s5585_s17 + $0x390] sm:$0xff] }
 0x4e6   : > { %5346 = vpow2.f32 %v3169_v24  ;;  %v4448_v55 = vpack.c.bf16 %v5397_v53, %v5396_v32  ;;  %v5398_v24 = vld [vmem:[%s5585_s17 + $0x1e0] sm:$0xff]  ;;  %v5436_v53 = vld [vmem:[%s5585_s17 + $0x270] sm:$0xff] }
 0x4e7   : > { %5348 = vpow2.f32 %v3171_v3  ;;  %v5399_v3 = vld [vmem:[%s5585_s17 + $0x1e8] sm:$0xff] }
 0x4e8   : > { %5350 = vpow2.f32 %v3173_v1  ;;  %v4450_v1 = vpack.c.bf16 %v5399_v3, %v5398_v24  ;;  %v5438_v3 = vld [vmem:[%s5585_s17 + $0x380] sm:$0xff] }
 0x4e9   : > { %5352 = vpow2.f32 %v3140_v22  ;;  %v5435_v22 = vld [vmem:[%s5585_s17 + $0x2f8] sm:$0xff] }
 0x4eb   : > { %v5337_v62 = vpop.eup %5336 }
 0x4ec   : > { %v5339_v21 = vpop.eup %5338  ;;  %v3177_v13 = vsel %vm3120_vm9, %v5337_v62, 0.0 }
 0x4ed   : > { %v5341_v34 = vpop.eup %5340  ;;  %3272 = vmatprep.mubr.f32.mxu1 %v5339_v21  ;;  %v3178_v7 = vsel %vm3120_vm9, %v5339_v21, 0.0  ;;  %v5405_v21 = vld [vmem:[%s5585_s17 + $0x178] sm:$0xff] }
 0x4ee   : > { %v6989_v54 = vpop.eup %5342  ;;  %3273 = vmatmul.mubr.f32.vlgmr.msra.gmra.mrb[54].mxu1 %v5337_v62  ;;  %v3179_v19 = vadd.f32 %v3178_v7, %v3177_v13  ;;  %v3182_v9 = vsel %vm3120_vm9, %v5341_v34, 0.0  ;;  %v5400_v62 = vld [vmem:[%s5585_s17 + $0x160] sm:$0xff]  ;;  %v5409_v7 = vld [vmem:[%s5585_s17 + $0x208] sm:$0xff] }
 0x4ef   : > { %4429 = vmatpush3.bf16.msra.mxu1 %v4428_v0  ;;  %3342 = vmatprep.mubr.f32.mxu1 %v5341_v34  ;;  %v3180_v26 = vsel %vm3120_vm9, %v6989_v54, 0.0  ;;  %v6995_v20 = vpop.eup %5344  ;;  %v4452_v25 = vpack.c.bf16 %v5401_v6, %v5400_v62  ;;  %v5404_v0 = vld [vmem:[%s5585_s17 + $0x170] sm:$0xff]  ;;  %v5408_v34 = vld [vmem:[%s5585_s17 + $0x200] sm:$0xff] }
 0x4f0   : > { %4431 = vmatprep.subr.bf16.mxu1 %v4430_v18  ;;  %v3181_v41 = vadd.f32 %v3180_v26, %v3179_v19  ;;  %v7000_v29 = vpop.eup %5346  ;;  %v3184_v15 = vsel %vm3120_vm9, %v6995_v20, 0.0  ;;  %v4456_v8 = vpack.c.bf16 %v5405_v21, %v5404_v0  ;;  %v5407_v18 = vld [vmem:[%s5585_s17 + $0x288] sm:$0xff]  ;;  %v4460_v19 = vpack.c.bf16 %v5409_v7, %v5408_v34  ;;  %v5440_v6 = vld [vmem:[%s5585_s17 + $0x300] sm:$0xff]  ;;  %v5444_v21 = vld [vmem:[%s5585_s17 + $0x310] sm:$0xff] }
 0x4f1   : > { %v7006_v23 = vpop.eup %5348  ;;  %v3186_v4 = vsel %vm3120_vm9, %v7000_v29, 0.0  ;;  %v4458_v13 = vpack.c.bf16 %v5407_v18, %v5406_v48  ;;  %v5446_v18 = vld [vmem:[%s5585_s17 + $0x3a0] sm:$0xff] }
 0x4f2   : > { %v3183_v10 = vadd.f32 %v3182_v9, %v3181_v41  ;;  %v7012_v42 = vpop.eup %5350  ;;  %v3188_v11 = vsel %vm3120_vm9, %v7006_v23, 0.0  ;;  %v5414_v41 = vld [vmem:[%s5585_s17 + $0x2a0] sm:$0xff]  ;;  %v5415_v9 = vld [vmem:[%s5585_s17 + $0x2a8] sm:$0xff] }
 0x4f3   : > { %4433 = vmatpush3.bf16.msra.mxu1 %v4432_v60  ;;  %v3190_v63 = vsel %vm3120_vm9, %v7012_v42, 0.0  ;;  %v7043_v45 = vpop.eup %5352  ;;  %v5411_v60 = vld [vmem:[%s5585_s17 + $0x298] sm:$0xff]  ;;  %v5448_v7 = vld [vmem:[%s5585_s17 + $0x320] sm:$0xff] }
 0x4f4   : > { %4435 = vmatprep.subr.bf16.mxu1 %v4434_v27  ;;  %v3185_v59 = vadd.f32 %v3184_v15, %v3183_v10  ;;  %v4462_v26 = vpack.c.bf16 %v5411_v60, %v5410_v2  ;;  %v4464_v27 = vpack.c.bf16 %v5413_v28, %v5412_v30  ;;  %v4466_v10 = vpack.c.bf16 %v5415_v9, %v5414_v41  ;;  %v5419_v15 = vld [vmem:[%s5585_s17 + $0x2b8] sm:$0xff]  ;;  %v5450_v2 = vld [vmem:[%s5585_s17 + $0x3b0] sm:$0xff]  ;;  %v5455_v41 = vld [vmem:[%s5585_s17 + $0x3c8] sm:$0xff] }
 0x4f5   : > { %v5451_v60 = vld [vmem:[%s5585_s17 + $0x3b8] sm:$0xff]  ;;  %v5452_v30 = vld [vmem:[%s5585_s17 + $0x330] sm:$0xff] }
 0x4f6   : > { %v3187_v46 = vadd.f32 %v3186_v4, %v3185_v59  ;;  %v5422_v59 = vld [vmem:[%s5585_s17 + $0x2c0] sm:$0xff]  ;;  %v5423_v4 = vld [vmem:[%s5585_s17 + $0x2c8] sm:$0xff] }
 0x4f7   : > { %4437 = vmatpush3.bf16.msra.mxu1 %v4436_v43  ;;  %v5418_v43 = vld [vmem:[%s5585_s17 + $0x2b0] sm:$0xff] }
 0x4f8   : > { %4439 = vmatprep.subr.bf16.mxu1 %v4438_v52  ;;  %v3189_v61 = vadd.f32 %v3188_v11, %v3187_v46  ;;  %v4470_v50 = vpack.c.bf16 %v5419_v15, %v5418_v43  ;;  %v4474_v46 = vpack.c.bf16 %v5423_v4, %v5422_v59  ;;  %v5426_v11 = vld [vmem:[%s5585_s17 + $0x2d0] sm:$0xff]  ;;  %v5459_v43 = vld [vmem:[%s5585_s17 + $0x3d8] sm:$0xff] }
 0x4f9   : > { %v7314_v59 = vld [vmem:[#allocation24_spill] sm:$0xff] }
 0x4fa   : > { %v3191_v33 = vadd.f32 %v3190_v63, %v3189_v61  ;;  %v5427_v61 = vld [vmem:[%s5585_s17 + $0x2d8] sm:$0xff] }
 0x4fb   : > { %4441 = vmatpush3.bf16.msra.mxu1 %v4440_v35  ;;  %v4476_v35 = vpack.c.bf16 %v5425_v44, %v5424_v12  ;;  %v4478_v40 = vpack.c.bf16 %v5427_v61, %v5426_v11  ;;  %v5463_v12 = vld [vmem:[%s5585_s17 + $0x3f8] sm:$0xff] }
 0x4fc   : > { %3192 = vadd.xlane.f32.xlu1 %v3191_v33  ;;  %4443 = vmatprep.subr.bf16.mxu1 %v4442_v36  ;;  %v5429_v36 = vld [vmem:[%s5585_s17 + $0x258] sm:$0xff]  ;;  %v5430_v33 = vld [vmem:[%s5585_s17 + $0x2e0] sm:$0xff] }
 0x4fd   : > { %v4480_v63 = vpack.c.bf16 %v5429_v36, %v5428_v31  ;;  %v4482_v5 = vpack.c.bf16 %v5431_v14, %v5430_v33  ;;  %v7317_v11 = vld [vmem:[#allocation27_spill] sm:$0xff]  ;;  %v7320_v31 = vld [vmem:[#allocation29_spill] sm:$0xff] }
 0x4ff   : > { %4445 = vmatpush3.bf16.msra.mxu1 %v4444_v16  ;;  %v5432_v16 = vld [vmem:[%s5585_s17 + $0x260] sm:$0xff] }
 0x500   : > { %4447 = vmatprep.subr.bf16.mxu1 %v4446_v47  ;;  %v4484_v58 = vpack.c.bf16 %v5433_v37, %v5432_v16  ;;  %v5434_v47 = vld [vmem:[%s5585_s17 + $0x2f0] sm:$0xff] }
 0x501   : > { %v4486_v32 = vpack.c.bf16 %v5435_v22, %v5434_v47 }
 0x503   : > { %4449 = vmatpush3.bf16.msra.mxu1 %v4448_v55  ;;  %v5437_v55 = vld [vmem:[%s5585_s17 + $0x278] sm:$0xff] }
 0x504   : > { %4451 = vmatprep.subr.bf16.mxu1 %v4450_v1  ;;  %v4488_v24 = vpack.c.bf16 %v5437_v55, %v5436_v53  ;;  %v5439_v1 = vld [vmem:[%s5585_s17 + $0x388] sm:$0xff] }
 0x505   : > { %v4490_v62 = vpack.c.bf16 %v5439_v1, %v5438_v3 }
 0x507   : > { %4453 = vmatpush3.bf16.msra.mxu1 %v4452_v25  ;;  %v5441_v25 = vld [vmem:[%s5585_s17 + $0x308] sm:$0xff] }
 0x508   : > { %4455 = vmatprep.subr.bf16.mxu1 %v4454_v56  ;;  %v4492_v17 = vpack.c.bf16 %v5441_v25, %v5440_v6  ;;  %v5443_v56 = vld [vmem:[%s5585_s17 + $0x398] sm:$0xff] }
 0x509   : > { %v4494_v0 = vpack.c.bf16 %v5443_v56, %v5442_v38 }
 0x50b   : > { %4457 = vmatpush3.bf16.msra.mxu1 %v4456_v8  ;;  %v5445_v8 = vld [vmem:[%s5585_s17 + $0x318] sm:$0xff] }
 0x50c   : > { %4459 = vmatprep.subr.bf16.mxu1 %v4458_v13  ;;  %v4496_v48 = vpack.c.bf16 %v5445_v8, %v5444_v21  ;;  %v5447_v13 = vld [vmem:[%s5585_s17 + $0x3a8] sm:$0xff]  ;;  %v3510_v8 = vld [vmem:[%s7183_s5] sm:$0xff] (!%p3940_p6) }
 0x50d   : > { %3200 = vperm.xlu1 %4567, %v7043_v45   ;;  %v4498_v34 = vpack.c.bf16 %v5447_v13, %v5446_v18  ;;  %v5511_v18 = vmov (!%p3940_p6), 0.0|0.0  }
 0x50e   : > { %3343 = vmatmul.mubr.f32.vlgmr.msra.gmra.mrb[56].mxu1 %v6989_v54  ;;  %v4468_v54 = vpack.c.bf16 %v5417_v39, %v5416_v57  ;;  %v5457_v57 = vld [vmem:[%s5585_s17 + $0x340] sm:$0xff]  ;;  %4522 = vmatprep.subr.bf16.mxu0 (!%p3940_p6), %v5511_v18 }
 0x50f   : > { %4461 = vmatpush3.bf16.msra.mxu1 %v4460_v19  ;;  %3412 = vmatprep.mubr.f32.mxu1 %v7000_v29  ;;  %v5421_v29 = vld [vmem:[%s5585_s17 + $0x238] sm:$0xff]  ;;  %v5449_v19 = vld [vmem:[%s5585_s17 + $0x328] sm:$0xff] }
 0x510   : > { %4463 = vmatprep.subr.bf16.mxu1 %v4462_v26  ;;  %v4472_v52 = vpack.c.bf16 %v5421_v29, %v5420_v49  ;;  %v4502_v26 = vpack.c.bf16 %v5451_v60, %v5450_v2  ;;  %v5461_v49 = vld [vmem:[%s5585_s17 + $0x3e8] sm:$0xff] }
 0x511   : > { %v3515_v2 = vld [vmem:[%s7183_s5 + $0x28] sm:$0xff] (!%p3940_p6) }
 0x513   : > { %4465 = vmatpush3.bf16.msra.mxu1 %v4464_v27  ;;  %v5454_v27 = vld [vmem:[%s5585_s17 + $0x3c0] sm:$0xff] }
 0x514   : > { %4467 = vmatprep.subr.bf16.mxu1 %v4466_v10  ;;  %v4506_v9 = vpack.c.bf16 %v5455_v41, %v5454_v27  ;;  %v5456_v10 = vld [vmem:[%s5585_s17 + $0x348] sm:$0xff]  ;;  %v5513_v27 = vmov (!%p3940_p6), 0.0  }
 0x515   : > { %v4508_v39 = vpack.c.bf16 %v5456_v10, %v5457_v57  ;;  %4247 = vmatprep.mubr.msk.f32.mxu0 (!%p3940_p6), %vm5512_vm14, %v5513_v27  ;;  %v7322_v10 = vld [vmem:[#allocation25_spill] sm:$0xff] (!%p3940_p6) }
 0x517   : > { %4469 = vmatpush3.bf16.msra.mxu1 %v4468_v54  ;;  %v5458_v54 = vld [vmem:[%s5585_s17 + $0x3d0] sm:$0xff] }
 0x518   : > { %4471 = vmatprep.subr.bf16.mxu1 %v4470_v50  ;;  %v4510_v15 = vpack.c.bf16 %v5459_v43, %v5458_v54  ;;  %v5460_v50 = vld [vmem:[%s5585_s17 + $0x3e0] sm:$0xff] }
 0x519   : > { %v4514_v29 = vpack.c.bf16 %v5461_v49, %v5460_v50  ;;  %v3518_v54 = vld [vmem:[%s7184_s6] sm:$0x1] (!%p3940_p6) }
 0x51b   : > { %4473 = vmatpush3.bf16.msra.mxu1 %v4472_v52  ;;  %v7313_v52 = vld [vmem:[#allocation26_spill] sm:$0xff] }
 0x51c   : > { %4475 = vmatprep.subr.bf16.mxu1 %v4474_v46  ;;  %v7315_v4 = vpack.c.bf16 %v7313_v52, %v7314_v59  ;;  %v5462_v46 = vld [vmem:[%s5585_s17 + $0x3f0] sm:$0xff] }
 0x51d   : > { %v4518_v44 = vpack.c.bf16 %v5463_v12, %v5462_v46 }
 0x51f   : > { %4477 = vmatpush3.bf16.msra.mxu1 %v4476_v35  ;;  %v7316_v35 = vld [vmem:[#allocation28_spill] sm:$0xff] }
 0x520   : > { %4479 = vmatprep.subr.bf16.mxu1 %v4478_v40  ;;  %v7318_v61 = vpack.c.bf16 %v7316_v35, %v7317_v11  ;;  %v7319_v40 = vld [vmem:[#allocation30_spill] sm:$0xff] }
 0x521   : > { %v7321_v36 = vpack.c.bf16 %v7319_v40, %v7320_v31 }
 0x523   : > { %4481 = vmatpush3.bf16.msra.mxu1 %v4480_v63  ;;  %v3175_v63 = vld [vmem:[#allocation3] sm:$0x1] }
 0x524   : > { %4483 = vmatprep.subr.bf16.mxu1 %v4482_v5  ;;  %v3176_v33 = vmul.f32 %v7043_v45, %v3175_v63  ;;  %v3197_v45 = vld [vmem:[#allocation4] sm:$0x1] }
 0x527   : > { %4485 = vmatpush3.bf16.msra.mxu1 %v4484_v58 }
 0x528   : > { %4487 = vmatprep.subr.bf16.mxu1 %v4486_v32 }
 0x52b   : > { %4489 = vmatpush3.bf16.msra.mxu1 %v4488_v24 }
 0x52c   : > { %4491 = vmatprep.subr.bf16.mxu1 %v4490_v62 }
 0x52e   : > { %3413 = vmatmul.mubr.f32.vlgmr.msra.gmra.mrb[58].mxu1 %v6995_v20  ;;  %v4500_v20 = vpack.c.bf16 %v5449_v19, %v5448_v7  ;;  %v3513_v7 = vld [vmem:[%s7183_s5 + $0x18] sm:$0xff] (!%p3940_p6) }
 0x52f   : > { %4493 = vmatpush3.bf16.msra.mxu1 %v4492_v17  ;;  %3482 = vmatprep.mubr.f32.mxu1 %v7012_v42  ;;  %v5453_v42 = vld [vmem:[%s5585_s17 + $0x338] sm:$0xff] }
 0x530   : > { %4495 = vmatprep.subr.bf16.mxu1 %v4494_v0  ;;  %v4504_v28 = vpack.c.bf16 %v5453_v42, %v5452_v30  ;;  %v3517_v30 = vld [vmem:[%s7183_s5 + $0x38] sm:$0xff] (!%p3940_p6) }
 0x533   : > { %4497 = vmatpush3.bf16.msra.mxu1 %v4496_v48  ;;  %v5510_v48 = vmov (!%p3940_p6), 0  }
 0x534   : > { %4499 = vmatprep.subr.bf16.mxu1 %v4498_v34  ;;  %5464 = vset.pattern.permute.xlu0 (!%p3940_p6), %v5510_v48  ;;  %v3512_v34 = vld [vmem:[%s7183_s5 + $0x10] sm:$0xff] (!%p3940_p6) }
 0x535   : > { %v4526_v19 = vpack.c.bf16 (!%p3940_p6), %v3513_v7, %v3512_v34 }
 0x537   : > { %4501 = vmatpush3.bf16.msra.mxu1 %v4500_v20  ;;  %v3514_v20 = vld [vmem:[%s7183_s5 + $0x20] sm:$0xff] (!%p3940_p6) }
 0x538   : > { %4503 = vmatprep.subr.bf16.mxu1 %v4502_v26  ;;  %v4529_v60 = vpack.c.bf16 (!%p3940_p6), %v3515_v2, %v3514_v20  ;;  %v3516_v26 = vld [vmem:[%s7183_s5 + $0x30] sm:$0xff] (!%p3940_p6) }
 0x53b   : > { %4505 = vmatpush3.bf16.msra.mxu1 %v4504_v28  ;;  %v4532_v28 = vpack.c.bf16 (!%p3940_p6), %v3517_v30, %v3516_v26 }
 0x53c   : > { %4507 = vmatprep.subr.bf16.mxu1 %v4506_v9 }
 0x53f   : > { %4509 = vmatpush3.bf16.msra.mxu1 %v4508_v39 }
 0x540   : > { %4511 = vmatprep.subr.bf16.mxu1 %v4510_v15 }
 0x543   : > { %4513 = vmatpush3.bf16.msra.mxu1 %v7315_v4 }
 0x544   : > { %4515 = vmatprep.subr.bf16.mxu1 %v4514_v29 }
 0x547   : > { %4517 = vmatpush3.bf16.msra.mxu1 %v7318_v61 }
 0x548   : > { %4519 = vmatprep.subr.bf16.mxu1 %v4518_v44 }
 0x54b   : > { %4521 = vmatpush3.bf16.msra.mxu1 %v7321_v36 }
 0x54e   : > { %3483 = vmatmul.mubr.f32.vlgmr.msra.gmra.mrb[60].mxu1 %v7006_v23 }
 0x589   : > { %v3193_v14 = vpop.xlane.xlu1 %3192 }
 0x58a   : > { %v3194_v5 = vadd.f32 %v3193_v14, %v3176_v33 }
 0x58c   : > { %3196 = vst.msk [vmem:[#allocation3] sm:$0x1] %vm3195_vm12, %v3194_v5 }
 0x58d   : > { %v3201_v62 = vpop.permute.xlu1 %3200 }
 0x58e   : > { %v3206_v23 = vrot.slane %v3201_v62, %v7312_v51  ;;  %v3511_v51 = vld [vmem:[%s7183_s5 + $0x8] sm:$0xff] (!%p3940_p6) }
 0x58f   : > { %v4523_v13 = vpack.c.bf16 (!%p3940_p6), %v3511_v51, %v3510_v8 }
 0x590   : > { %v3207_v38 = vmul.f32 %v3206_v23, %v3197_v45 }
 0x591   : > { %4524 = vmatpush3.bf16.msra.mxu0 (!%p3940_p6), %v4523_v13 }
 0x592   : > { %4525 = vmatprep.subr.bf16.mxu0 (!%p3940_p6), %v5511_v18 }
 0x593   : > { %v3496_v21 = vld [vmem:[#allocation3] sm:$0x1] (!%p3940_p6) }
 0x594   : > { %5465 = vrcp.f32 (!%p3940_p6), %v3496_v21 }
 0x595   : > { %4527 = vmatpush3.bf16.msra.mxu0 (!%p3940_p6), %v4526_v19 }
 0x596   : > { %4528 = vmatprep.subr.bf16.mxu0 (!%p3940_p6), %v5511_v18 }
 0x599   : > { %4530 = vmatpush3.bf16.msra.mxu0 (!%p3940_p6), %v4529_v60 }
 0x59a   : > { %4531 = vmatprep.subr.bf16.mxu0 (!%p3940_p6), %v5511_v18 }
 0x59d   : > { %4533 = vmatpush3.bf16.msra.mxu0 (!%p3940_p6), %v4532_v28 }
 0x59e   : > { %v5466_v42 = vpop.eup (!%p3940_p6), %5465 }
 0x59f   : > { %3501 = vperm.xlu0 (!%p3940_p6), %5464, %v5466_v42  }
 0x5c1   : > { %v4114_v16 = vpop.f32.mrb[54].mxu1 }
 0x5c2   : > { %v4115_v37 = vpop.f32.mrb[55].mxu1 }
 0x5c3   : > { %v4116_v58 = vadd.f32 %v4115_v37, %v4114_v16 }
 0x5e1   : > { %v4149_v47 = vpop.f32.mrb[56].mxu1 }
 0x5e2   : > { %v4150_v22 = vpop.f32.mrb[57].mxu1 }
 0x5e3   : > { %v4151_v32 = vadd.f32 %v4150_v22, %v4149_v47 }
 0x5e5   : > { %v3345_v53 = vadd.f32 %v4151_v32, %v4116_v58 }
 0x601   : > { %v4184_v55 = vpop.f32.mrb[58].mxu1 }
 0x602   : > { %v4185_v24 = vpop.f32.mrb[59].mxu1 }
 0x603   : > { %v4186_v3 = vadd.f32 %v4185_v24, %v4184_v55 }
 0x605   : > { %v3415_v1 = vadd.f32 %v4186_v3, %v3345_v53 }
 0x61e   : > { %v3502_v9 = vpop.permute.xlu0 (!%p3940_p6), %3501 }
 0x61f   : > { %v3507_v57 = vrot.slane (!%p3940_p6), %v3502_v9, %v7322_v10 }
 0x621   : > { %v4219_v6 = vpop.f32.mrb[60].mxu1 }
 0x622   : > { %v4220_v25 = vpop.f32.mrb[61].mxu1 }
 0x623   : > { %v4221_v17 = vadd.f32 %v4220_v25, %v4219_v6  ;;  %3495 = sbr.rel (%p3940_p6) target bundleno = 1802 (0x70a), region = 56 }
 0x625   : > { %v3485_v56 = vadd.f32 %v4221_v17, %v3415_v1 }
 0x627   : > { %v3488_v0 = vadd.f32 %v3485_v56, %v3207_v38 }
 0x629   : > { %3490 = vst.msk [vmem:[#allocation4] sm:$0x1] %vm3489_vm13, %v3488_v0 }
 0x630   : > { %v3498_v41 = vld [vmem:[#allocation4] sm:$0x1] }
 0x631   : > { %v3508_v39 = vmul.f32 %v3507_v57, %v3498_v41 }
 0x633   : > { %3509 = vst.msk [vmem:[#allocation6] sm:$0x1] %vm3489_vm13, %v3508_v39  ;;  %4248 = vmatmul.mubr.msk.f32.vlgmr.msra.gmra.mrb[0].mxu0 %vm496_vm2, %v3508_v39 }
 0x706   : > { %v3588_v43 = vpop.f32.mrb[0].mxu0 }
 0x707   : > { %v3589_v15 = vadd.f32 %v3588_v43, %v3518_v54  ;;  %v4249_v50 = vpop.f32.mrb[1].mxu0 }
 0x709   : > { %3593 = vst.msk [vmem:[%s7187_s9] sm:$0x1] %vm3592_vm15, %v3589_v15 }
 0x70a PF: > { %p4546_p7 = scmp.eq.s32.totalorder %s5574_s12, 2  ;;  %s5514_s13 = smov [#allocation6]  }
 0x70b   : > { %s3609_s17 = sshll.u32 %s5514_s13, 4  ;;  %s3610_s17 = int_to_ptr.vmem [resolvable:$true] %s3609_s17 }
 0x70c   : > { %s5467_s20 = scalar_lea.vmem %s3610_s17, 16  ;;  %s5473_s10 = scalar_lea.vmem %s3610_s17, 32 }
 0x70d   : > { %p5468_p8 = scmp.ne.s32.totalorder %s3610_s17, %s5467_s20  ;;  %p5474_p11 = scmp.lt.s32.totalorder %s3610_s17, %s3610_s17 }
 0x70e   : > { %p5475_p12 = scmp.lt.s32.totalorder %s5473_s10, %s5467_s20 }
 0x70f   : > { %p5469_p9 = pnand %p5468_p8, %p4546_p7 }
 0x710   : > { %p5476_p13 = por %p5475_p12, %p5474_p11 }
 0x711   : > { %p5470_p10 = pneg %p5469_p9 }
 0x713   : > { %p5477_p0 = pnand %p5476_p13, %p5470_p10 }
 0x715   : > { %5480 = shalt.err (!%p5477_p0)
}
 0x716   : > { %s5481_s15 = scalar_lea.hbm %s7186_s8, 16 }
 0x717   : > { %p5482_p1 = scmp.ne.s32.totalorder %s7186_s8, %s5481_s15  ;;  %p5487_p4 = scmp.lt.u32.totalorder %s5481_s15, %s7186_s8 }
 0x719   : > { %p5483_p2 = pnand %p5482_p1, %p4546_p7 }
 0x71b   : > { %p5484_p3 = pneg %p5483_p2 }
 0x71d   : > { %p5489_p5 = pnand %p5487_p4, %p5484_p3 }
 0x71f   : > { %5492 = shalt.err (!%p5489_p5)
}
 0x720   : > { %4543 = dma.vmem_to_hbm [thread:$0]  (%p4546_p7), %s3610_s17, 16, %s7186_s8, [#allocation7]  }
 0x721   : > { %5498 = dma.done.wait (%p4546_p7), [#allocation7], 16  }
 0x722   : > { %5500 = vsyncadd (%p4546_p7), [#allocation7], 4294967280 }
 0x723 PF: > { %s22_s11 = sadd.s32 1, %s5503_s11  }
 0x724   : > { %p19_p6 = scmp.ge.s32.totalorder %s22_s11, 5  }
 0x726   :  { %21 = sbr.rel (!%p19_p6) target bundleno = 3 (0x3), region = 103 }
 0x72d   :  { %3635 = vsyncpa [#allocation7], 1 }
 0x72e   :  { %3637 = vsyncpa [#allocation7 + $0x1], 1 }

</bundles_post_ra>
